<compile_context>
chip_gen: v6e
topology: v6e:2x2x1
jax: 0.10.0
libtpu: 0.0.40
codegen_flags: <defaults>
</compile_context>

<pallas_src>
import functools

import jax
import jax.numpy as jnp
from jax import lax
from jax.experimental import pallas as pl
from jax.experimental.pallas import tpu as pltpu


TILE_M = 1024   # max rows per grid step (lane axis); multiple of 128
GT_CHUNK = 8    # GT boxes processed per inner-loop step (sublane rows)


def _round_up(x, m):
    return ((x + m - 1) // m) * m


def _bce_with_logits(x, z):
    # numerically stable BCEWithLogitsLoss(reduction='none'), matches PyTorch
    return jnp.maximum(x, 0.0) - x * z + jnp.log(1.0 + jnp.exp(-jnp.abs(x)))


# ---------------------------------------------------------------------------
# Fused Pallas kernel: all 3 detection layers, tiled over M, lane-dense
# ---------------------------------------------------------------------------
def _yolo_fused_kernel(tile_layer_ref,               # scalar prefetch (SMEM, int32)
                       p_ref, pd_ref, lab_ref, bb_ref,   # inputs
                       o_ref,                        # output (1, 3, TM), written last
                       acc_ref,                      # VMEM scratch (8, TM) accumulator
                       *, nc, iou_thresh, inv_img2, chunk):
    t = pl.program_id(1)

    @pl.when(t == 0)
    def _():
        acc_ref[...] = jnp.zeros_like(acc_ref)

    lid = tile_layer_ref[t]
    inv2 = jnp.where(lid == 0, inv_img2[0],
                     jnp.where(lid == 1, inv_img2[1], inv_img2[2])).astype(jnp.float32)

    p = p_ref[0].astype(jnp.float32)       # (5+nc, TM)
    pd = pd_ref[0].astype(jnp.float32)     # (4,    TM)
    lab = lab_ref[0].astype(jnp.float32)   # (6+nc, TM)

    p_conf = p[4:5, :]                     # (1, TM)
    p_cls = p[5:5 + nc, :]                 # (nc, TM)

    px, py, pw, ph = pd[0:1, :], pd[1:2, :], pd[2:3, :], pd[3:4, :]
    lx, ly, lw, lh = lab[0:1, :], lab[1:2, :], lab[2:3, :], lab[3:4, :]
    obj = lab[4:5, :]
    mix = lab[5:6, :]
    lcls = lab[6:6 + nc, :]
    bbox_scale = 2.0 - lw * lh * inv2      # computed in-kernel (no extra channel)

    # ---- GIOU(pred_xywh, label_xywh) per row -> (1, TM) ----------------------
    p_x1 = px - pw * 0.5; p_y1 = py - ph * 0.5
    p_x2 = px + pw * 0.5; p_y2 = py + ph * 0.5
    l_x1 = lx - lw * 0.5; l_y1 = ly - lh * 0.5
    l_x2 = lx + lw * 0.5; l_y2 = ly + lh * 0.5
    # corner normalization (torch.min/max of the two corners)
    p_x1n = jnp.minimum(p_x1, p_x2); p_x2n = jnp.maximum(p_x1, p_x2)
    p_y1n = jnp.minimum(p_y1, p_y2); p_y2n = jnp.maximum(p_y1, p_y2)
    l_x1n = jnp.minimum(l_x1, l_x2); l_x2n = jnp.maximum(l_x1, l_x2)
    l_y1n = jnp.minimum(l_y1, l_y2); l_y2n = jnp.maximum(l_y1, l_y2)

    area_p = (p_x2n - p_x1n) * (p_y2n - p_y1n)
    area_l = (l_x2n - l_x1n) * (l_y2n - l_y1n)
    iw = jnp.maximum(jnp.minimum(p_x2n, l_x2n) - jnp.maximum(p_x1n, l_x1n), 0.0)
    ih = jnp.maximum(jnp.minimum(p_y2n, l_y2n) - jnp.maximum(p_y1n, l_y1n), 0.0)
    inter = iw * ih
    union = area_p + area_l - inter
    iou_gt = inter / union
    ew = jnp.maximum(jnp.maximum(p_x2n, l_x2n) - jnp.minimum(p_x1n, l_x1n), 0.0)
    eh = jnp.maximum(jnp.maximum(p_y2n, l_y2n) - jnp.minimum(p_y1n, l_y1n), 0.0)
    enclose = ew * eh
    giou = iou_gt - (enclose - union) / enclose                 # (1, TM)

    loss_giou = obj * bbox_scale * (1.0 - giou) * mix           # (1, TM)

    # ---- IOU(pred, all GT bboxes of this image/layer): divide-free, chunked --
    # max_b(iou_b) < thresh  <=>  max_b(inter_b - thresh*union_b) < 0
    # (valid since union_b > 0 for every row; pred boxes have w,h > 0).
    area_pd = pw * ph                        # (1, TM)
    nb_pad = bb_ref.shape[2]
    n_chunks = nb_pad // chunk
    tm = area_pd.shape[1]

    def gt_chunk_body(c, run_max):
        bbc = bb_ref[0, 0, pl.ds(c * chunk, chunk), :].astype(jnp.float32)  # (chunk, 4)
        bx, by = bbc[:, 0:1], bbc[:, 1:2]
        bw, bh = bbc[:, 2:3], bbc[:, 3:4]
        b_x1 = bx - bw * 0.5; b_y1 = by - bh * 0.5
        b_x2 = bx + bw * 0.5; b_y2 = by + bh * 0.5
        iw2 = jnp.maximum(jnp.minimum(p_x2, b_x2) - jnp.maximum(p_x1, b_x1), 0.0)
        ih2 = jnp.maximum(jnp.minimum(p_y2, b_y2) - jnp.maximum(p_y1, b_y1), 0.0)
        inter2 = iw2 * ih2                                      # (chunk, TM)
        union2 = area_pd + bw * bh - inter2
        score = inter2 - iou_thresh * union2
        return jnp.maximum(run_max, jnp.max(score, axis=0, keepdims=True))

    run_max0 = jnp.full((1, tm), -jnp.inf, dtype=jnp.float32)
    score_max = lax.fori_loop(0, n_chunks, gt_chunk_body, run_max0, unroll=True)
    noobj = (1.0 - obj) * (score_max < 0.0).astype(jnp.float32)

    # ---- confidence loss: FocalLoss(gamma=2, alpha=1); reuse exp(-|x|) --------
    x = p_conf
    e = jnp.exp(-jnp.abs(x))
    bce_conf = jnp.maximum(x, 0.0) - x * obj + jnp.log(1.0 + e)
    inv1pe = 1.0 / (1.0 + e)
    sig = jnp.where(x >= 0.0, inv1pe, e * inv1pe)               # sigmoid(x)
    d = jnp.abs(obj - sig)
    loss_conf = (obj + noobj) * (bce_conf * d * d) * mix        # (1, TM)

    # ---- class loss: BCE over classes, fold obj*mix outside the class sum ----
    bce_cls = _bce_with_logits(p_cls, lcls)                     # (nc, TM)
    loss_cls = obj * mix * jnp.sum(bce_cls, axis=0, keepdims=True)   # (1, TM)

    # accumulate lane-dense partials into the sublane-aligned (8, TM) scratch
    zeros_fill = jnp.zeros((acc_ref.shape[0] - 3, tm), jnp.float32)
    acc_ref[...] += jnp.concatenate(
        [loss_giou, loss_conf, loss_cls, zeros_fill], axis=0)

    @pl.when(t == pl.num_programs(1) - 1)
    def _():
        o_ref[0] = acc_ref[0:3, :]


# ---------------------------------------------------------------------------
# Wrapper: channel-major layout, single concat per tensor, fused pallas_call
# ---------------------------------------------------------------------------
class YoloV3Loss:
    """JAX/Pallas port of YoloV3Loss.forward (tunning=False path)."""

    def __init__(self, anchors, strides, iou_threshold_loss=0.5, tunning=False,
                 tile_m=TILE_M, gt_chunk=GT_CHUNK):
        self._strides = strides
        self._iou_threshold_loss = float(iou_threshold_loss)
        self._tile_m = int(tile_m)
        self._gt_chunk = int(gt_chunk)
        self.tunning = tunning

    def __call__(self, p, p_d, label_sbbox, label_mbbox, label_lbbox,
                 sbboxes, mbboxes, lbboxes, p_base=None, p_d_base=None):
        labels = (label_sbbox, label_mbbox, label_lbbox)
        bbs = (sbboxes, mbboxes, lbboxes)
        bs = p[0].shape[0]
        nc = p[0].shape[-1] - 5
        Cp = 5 + nc
        Cl = labels[0].shape[-1]              # 6 + nc

        # per-layer row counts; clamp tile size to the largest layer (128-aligned)
        Ms = [p[l].shape[1] * p[l].shape[2] * p[l].shape[3] for l in range(3)]
        tile_m = max(128, min(self._tile_m, _round_up(max(Ms), 128)))

        inv_img2 = tuple(
            1.0 / float(self._strides[l] * p[l].shape[1]) ** 2 for l in range(3))

        # one transpose per layer + ONE concatenate per tensor (pads fused in)
        pieces_p, pieces_pd, pieces_lab, tiles = [], [], [], []
        for l in range(3):
            p_l, pd_l, lab_l = p[l], p_d[l], labels[l]
            M = Ms[l]
            n_t = pl.cdiv(M, tile_m)
            pad = n_t * tile_m - M
            tiles.append(n_t)
            pieces_p.append(jnp.moveaxis(p_l, -1, 1).reshape(bs, Cp, M))
            pieces_pd.append(jnp.moveaxis(pd_l[..., :4], -1, 1).reshape(bs, 4, M))
            pieces_lab.append(jnp.moveaxis(lab_l, -1, 1).reshape(bs, Cl, M))
            if pad:
                # padded rows: unit-area boxes keep GIOU/IOU finite; obj=0, mix=0
                # zero out their loss contribution.
                pieces_p.append(jnp.zeros((bs, Cp, pad), p_l.dtype))
                pieces_pd.append(
                    jnp.zeros((bs, 4, pad), pd_l.dtype).at[:, 2:4, :].set(1.0))
                pieces_lab.append(
                    jnp.zeros((bs, Cl, pad), lab_l.dtype).at[:, 2:4, :].set(1.0))
        p_cat = jnp.concatenate(pieces_p, axis=2)
        pd_cat = jnp.concatenate(pieces_pd, axis=2)
        lab_cat = jnp.concatenate(pieces_lab, axis=2)
        n_tiles = sum(tiles)

        # per-tile int32 layer id (SMEM scalar prefetch) -> selects bbox block
        tile_layer = jnp.asarray(
            sum(([l] * tiles[l] for l in range(3)), []), dtype=jnp.int32)

        # GT boxes: (bs, 3, Nb, 4), pad Nb to a multiple of the chunk (zero boxes
        # give iou = 0, which never changes the max / threshold decision).
        chunk = self._gt_chunk
        bb_cat = jnp.stack(bbs, axis=1)
        Nb = bb_cat.shape[2]
        Nb_pad = _round_up(Nb, chunk)
        if Nb_pad != Nb:
            bb_cat = jnp.pad(bb_cat, ((0, 0), (0, 0), (0, Nb_pad - Nb), (0, 0)))

        kernel = functools.partial(
            _yolo_fused_kernel, nc=nc, iou_thresh=self._iou_threshold_loss,
            inv_img2=inv_img2, chunk=chunk)

        out = pl.pallas_call(
            kernel,
            out_shape=jax.ShapeDtypeStruct((bs, 3, tile_m), jnp.float32),
            grid_spec=pltpu.PrefetchScalarGridSpec(
                num_scalar_prefetch=1,
                grid=(bs, n_tiles),
                in_specs=[
                    pl.BlockSpec((1, Cp, tile_m), lambda b, t, tl: (b, 0, t)),
                    pl.BlockSpec((1, 4, tile_m), lambda b, t, tl: (b, 0, t)),
                    pl.BlockSpec((1, Cl, tile_m), lambda b, t, tl: (b, 0, t)),
                    pl.BlockSpec((1, 1, Nb_pad, 4), lambda b, t, tl: (b, tl[t], 0, 0)),
                ],
                out_specs=pl.BlockSpec((1, 3, tile_m), lambda b, t, tl: (b, 0, 0)),
                scratch_shapes=[pltpu.VMEM((8, tile_m), jnp.float32)],
            ),
            compiler_params=pltpu.CompilerParams(
                dimension_semantics=("parallel", "arbitrary"),
                vmem_limit_bytes=8 * 1024 * 1024),
        )(tile_layer, p_cat, pd_cat, lab_cat, bb_cat)

        sums = jnp.sum(out, axis=(0, 2)) / bs            # (3,)
        loss_giou, loss_conf, loss_cls = sums[0], sums[1], sums[2]
        loss = loss_giou + loss_conf + loss_cls
        if self.tunning:
            # Reference fs loss is L1(base_p_fs, base_p) over identical slices of p,
            # hence identically zero.
            # TODO(synk): p_base / p_d_base fine-tuning branch not exercised here.
            loss = loss + 0.1 * jnp.float32(0.0)
        return loss, loss_giou, loss_conf, loss_cls


# ---------------------------------------------------------------------------
# pure-JAX reference (direct port of the torch code) for validation
# ---------------------------------------------------------------------------
def _ref_giou(b1, b2):
    b1 = jnp.concatenate([b1[..., :2] - b1[..., 2:] * 0.5,
                          b1[..., :2] + b1[..., 2:] * 0.5], -1)
    b2 = jnp.concatenate([b2[..., :2] - b2[..., 2:] * 0.5,
                          b2[..., :2] + b2[..., 2:] * 0.5], -1)
    b1 = jnp.concatenate([jnp.minimum(b1[..., :2], b1[..., 2:]),
                          jnp.maximum(b1[..., :2], b1[..., 2:])], -1)
    b2 = jnp.concatenate([jnp.minimum(b2[..., :2], b2[..., 2:]),
                          jnp.maximum(b2[..., :2], b2[..., 2:])], -1)
    a1 = (b1[..., 2] - b1[..., 0]) * (b1[..., 3] - b1[..., 1])
    a2 = (b2[..., 2] - b2[..., 0]) * (b2[..., 3] - b2[..., 1])
    lu = jnp.maximum(b1[..., :2], b2[..., :2])
    rd = jnp.minimum(b1[..., 2:], b2[..., 2:])
    it = jnp.maximum(rd - lu, 0.0)
    inter = it[..., 0] * it[..., 1]
    union = a1 + a2 - inter
    iou = inter / union
    elu = jnp.minimum(b1[..., :2], b2[..., :2])
    erd = jnp.maximum(b1[..., 2:], b2[..., 2:])
    es = jnp.maximum(erd - elu, 0.0)
    ea = es[..., 0] * es[..., 1]
    return iou - (ea - union) / ea


def _ref_iou(b1, b2):
    a1 = b1[..., 2] * b1[..., 3]
    a2 = b2[..., 2] * b2[..., 3]
    b1 = jnp.concatenate([b1[..., :2] - b1[..., 2:] * 0.5,
                          b1[..., :2] + b1[..., 2:] * 0.5], -1)
    b2 = jnp.concatenate([b2[..., :2] - b2[..., 2:] * 0.5,
                          b2[..., :2] + b2[..., 2:] * 0.5], -1)
    lu = jnp.maximum(b1[..., :2], b2[..., :2])
    rd = jnp.minimum(b1[..., 2:], b2[..., 2:])
    it = jnp.maximum(rd - lu, 0.0)
    inter = it[..., 0] * it[..., 1]
    return inter / (a1 + a2 - inter)


def _ref_layer_loss(p, p_d, label, bboxes, stride, iou_thresh=0.5):
    bs, g = p.shape[:2]
    img_size = stride * g
    p_conf = p[..., 4:5]
    p_cls = p[..., 5:]
    p_d_xywh = p_d[..., :4]
    label_xywh = label[..., :4]
    obj = label[..., 4:5]
    mix = label[..., 5:6]
    lcls = label[..., 6:]
    giou = _ref_giou(p_d_xywh, label_xywh)[..., None]
    scale = 2.0 - label_xywh[..., 2:3] * label_xywh[..., 3:4] / img_size ** 2
    loss_giou = obj * scale * (1.0 - giou) * mix
    iou = _ref_iou(p_d_xywh[..., None, :], bboxes[:, None, None, None, :, :])
    iou_max = jnp.max(iou, axis=-1, keepdims=True)
    noobj = (1.0 - obj) * (iou_max < iou_thresh).astype(jnp.float32)
    bce = _bce_with_logits(p_conf, obj)
    focal = bce * jnp.abs(obj - jax.nn.sigmoid(p_conf)) ** 2.0
    loss_conf = (obj * focal + noobj * focal) * mix
    loss_cls = obj * _bce_with_logits(p_cls, lcls) * mix
    lg = jnp.sum(loss_giou) / bs
    lc = jnp.sum(loss_conf) / bs
    lk = jnp.sum(loss_cls) / bs
    return lg + lc + lk, lg, lc, lk


# ---------------------------------------------------------------------------
if __name__ == "__main__":
    bs, na, nc, Nb = 2, 3, 20, 150
    strides = (8, 16, 32)
    img = 64
    grids = [img // s for s in strides]          # (8, 4, 2)

    key = jax.random.PRNGKey(0)

    def make_layer(k, g):
        k1, k2, k3, k4, k5, k6, k7, k8, k9 = jax.random.split(k, 9)
        p = jax.random.normal(k1, (bs, g, g, na, 5 + nc), jnp.float32)
        xy = jax.random.uniform(k2, (bs, g, g, na, 2), minval=0.0, maxval=float(img))
        wh = jax.random.uniform(k3, (bs, g, g, na, 2), minval=4.0, maxval=img / 2.0)
        rest = jax.random.uniform(k4, (bs, g, g, na, 1 + nc))
        p_d = jnp.concatenate([xy, wh, rest], -1)
        lxy = jax.random.uniform(k5, (bs, g, g, na, 2), minval=0.0, maxval=float(img))
        lwh = jax.random.uniform(k6, (bs, g, g, na, 2), minval=4.0, maxval=img / 2.0)
        lobj = (jax.random.uniform(k7, (bs, g, g, na, 1)) > 0.7).astype(jnp.float32)
        lmix = jax.random.uniform(k8, (bs, g, g, na, 1), minval=0.5, maxval=1.0)
        lcls = (jax.random.uniform(k9, (bs, g, g, na, nc)) > 0.9).astype(jnp.float32)
        label = jnp.concatenate([lxy, lwh, lobj, lmix, lcls], -1)
        return p, p_d, label

    def make_bboxes(k):
        ka, kb = jax.random.split(k)
        bxy = jax.random.uniform(ka, (bs, Nb, 2), minval=0.0, maxval=float(img))
        bwh = jax.random.uniform(kb, (bs, Nb, 2), minval=4.0, maxval=img / 2.0)
        return jnp.concatenate([bxy, bwh], -1)

    keys = jax.random.split(key, 6)
    p0, pd0, lab0 = make_layer(keys[0], grids[0])
    p1, pd1, lab1 = make_layer(keys[1], grids[1])
    p2, pd2, lab2 = make_layer(keys[2], grids[2])
    sbboxes = make_bboxes(keys[3])
    mbboxes = make_bboxes(keys[4])
    lbboxes = make_bboxes(keys[5])

    loss_fn = YoloV3Loss(anchors=None, strides=strides, iou_threshold_loss=0.5,
                         tunning=False)
    out = loss_fn([p0, p1, p2], [pd0, pd1, pd2], lab0, lab1, lab2,
                  sbboxes, mbboxes, lbboxes)
    out = jax.block_until_ready(out)

    # validate against the pure-JAX reference port of the torch code
    refs = [_ref_layer_loss(p0, pd0, lab0, sbboxes, strides[0]),
            _ref_layer_loss(p1, pd1, lab1, mbboxes, strides[1]),
            _ref_layer_loss(p2, pd2, lab2, lbboxes, strides[2])]
    ref_tot = tuple(sum(r[i] for r in refs) for i in range(4))
    for got, want in zip(out, ref_tot):
        assert jnp.allclose(got, want, rtol=1e-2, atol=1e-2), (got, want)

    print("KERNEL_OK")
</pallas_src>

<mosaic_0001>
module attributes {stable_mosaic.version = 11 : i64} {
  func.func @_yolo_fused_kernel(%arg0: i32, %arg1: i32, %arg2: memref<3xi32, #tpu.memory_space<smem>>, %arg3: memref<1x25x256xf32, #tpu.memory_space<vmem>>, %arg4: memref<1x4x256xf32, #tpu.memory_space<vmem>>, %arg5: memref<1x26x256xf32, #tpu.memory_space<vmem>>, %arg6: memref<1x1x152x4xf32, #tpu.memory_space<vmem>>, %arg7: memref<1x3x256xf32, #tpu.memory_space<vmem>>, %arg8: memref<8x256xf32, #tpu.memory_space<vmem>>) attributes {dimension_semantics = [#tpu.dimension_semantics<parallel>, #tpu.dimension_semantics<arbitrary>], iteration_bounds = array<i64: 2, 3>, scalar_prefetch = 1 : i64, scratch_operands = 1 : i64, tpu.core_type = #tpu.core_type<tc>, window_params = [{transform_indices = @transform_0, window_bounds = array<i64: 1, 25, 256>}, {transform_indices = @transform_1, window_bounds = array<i64: 1, 4, 256>}, {transform_indices = @transform_2, window_bounds = array<i64: 1, 26, 256>}, {transform_indices = @transform_3, window_bounds = array<i64: 1, 1, 152, 4>}, {transform_indices = @transform_4, window_bounds = array<i64: 1, 3, 256>}]} {
    %c0_i32 = arith.constant 0 : i32
    %0 = arith.cmpi eq, %arg1, %c0_i32 : i32
    %1 = arith.extui %0 : i1 to i32
    %c0_i32_0 = arith.constant 0 : i32
    %2 = arith.cmpi ne, %1, %c0_i32_0 : i32
    scf.if %2 {
      %cst_276 = arith.constant 0.000000e+00 : f32
      %1114 = vector.broadcast %cst_276 : f32 to vector<8x256xf32>
      %c0_277 = arith.constant 0 : index
      %c0_278 = arith.constant 0 : index
      %1115 = vector.load %arg8[%c0_277, %c0_278] : memref<8x256xf32, #tpu.memory_space<vmem>>, vector<8x256xf32>
      tpu.vector_store %arg8[%c0_277, %c0_278], %1114 {strides = array<i32>} : memref<8x256xf32, #tpu.memory_space<vmem>>, vector<8x256xf32>,
    } else {
    }
    %3 = arith.index_cast %arg1 : i32 to index
    %4 = memref.load %arg2[%3] : memref<3xi32, #tpu.memory_space<smem>>
    %c0_i32_1 = arith.constant 0 : i32
    %5 = arith.cmpi eq, %4, %c0_i32_1 : i32
    %c1_i32 = arith.constant 1 : i32
    %6 = arith.cmpi eq, %4, %c1_i32 : i32
    %cst = arith.constant 2.44140625E-4 : f32
    %cst_2 = arith.constant 2.44140625E-4 : f32
    %7 = arith.select %6, %cst, %cst_2 : f32
    %cst_3 = arith.constant 2.44140625E-4 : f32
    %8 = arith.select %5, %cst_3, %7 : f32
    %c0 = arith.constant 0 : index
    %c0_4 = arith.constant 0 : index
    %c0_5 = arith.constant 0 : index
    %9 = vector.load %arg3[%c0, %c0_4, %c0_5] : memref<1x25x256xf32, #tpu.memory_space<vmem>>, vector<1x25x256xf32>
    %10 = vector.shape_cast %9 : vector<1x25x256xf32> to vector<25x256xf32>
    %c0_6 = arith.constant 0 : index
    %c0_7 = arith.constant 0 : index
    %c0_8 = arith.constant 0 : index
    %11 = vector.load %arg4[%c0_6, %c0_7, %c0_8] : memref<1x4x256xf32, #tpu.memory_space<vmem>>, vector<1x4x256xf32>
    %12 = vector.shape_cast %11 : vector<1x4x256xf32> to vector<4x256xf32>
    %c0_9 = arith.constant 0 : index
    %c0_10 = arith.constant 0 : index
    %c0_11 = arith.constant 0 : index
    %13 = vector.load %arg5[%c0_9, %c0_10, %c0_11] : memref<1x26x256xf32, #tpu.memory_space<vmem>>, vector<1x26x256xf32>
    %14 = vector.shape_cast %13 : vector<1x26x256xf32> to vector<26x256xf32>
    %15 = vector.extract_strided_slice %10 {offsets = [4, 0], sizes = [1, 256], strides = [1, 1]} : vector<25x256xf32> to vector<1x256xf32>
    %16 = vector.extract_strided_slice %10 {offsets = [5, 0], sizes = [20, 256], strides = [1, 1]} : vector<25x256xf32> to vector<20x256xf32>
    %17 = vector.extract_strided_slice %12 {offsets = [0, 0], sizes = [1, 256], strides = [1, 1]} : vector<4x256xf32> to vector<1x256xf32>
    %18 = vector.extract_strided_slice %12 {offsets = [1, 0], sizes = [1, 256], strides = [1, 1]} : vector<4x256xf32> to vector<1x256xf32>
    %19 = vector.extract_strided_slice %12 {offsets = [2, 0], sizes = [1, 256], strides = [1, 1]} : vector<4x256xf32> to vector<1x256xf32>
    %20 = vector.extract_strided_slice %12 {offsets = [3, 0], sizes = [1, 256], strides = [1, 1]} : vector<4x256xf32> to vector<1x256xf32>
    %21 = vector.extract_strided_slice %14 {offsets = [0, 0], sizes = [1, 256], strides = [1, 1]} : vector<26x256xf32> to vector<1x256xf32>
    %22 = vector.extract_strided_slice %14 {offsets = [1, 0], sizes = [1, 256], strides = [1, 1]} : vector<26x256xf32> to vector<1x256xf32>
    %23 = vector.extract_strided_slice %14 {offsets = [2, 0], sizes = [1, 256], strides = [1, 1]} : vector<26x256xf32> to vector<1x256xf32>
    %24 = vector.extract_strided_slice %14 {offsets = [3, 0], sizes = [1, 256], strides = [1, 1]} : vector<26x256xf32> to vector<1x256xf32>
    %25 = vector.extract_strided_slice %14 {offsets = [4, 0], sizes = [1, 256], strides = [1, 1]} : vector<26x256xf32> to vector<1x256xf32>
    %26 = vector.extract_strided_slice %14 {offsets = [5, 0], sizes = [1, 256], strides = [1, 1]} : vector<26x256xf32> to vector<1x256xf32>
    %27 = vector.extract_strided_slice %14 {offsets = [6, 0], sizes = [20, 256], strides = [1, 1]} : vector<26x256xf32> to vector<20x256xf32>
    %28 = arith.mulf %23, %24 : vector<1x256xf32>
    %29 = vector.broadcast %8 : f32 to vector<1x256xf32>
    %30 = arith.mulf %28, %29 : vector<1x256xf32>
    %cst_12 = arith.constant 2.000000e+00 : f32
    %31 = vector.broadcast %cst_12 : f32 to vector<1x256xf32>
    %32 = arith.subf %31, %30 : vector<1x256xf32>
    %cst_13 = arith.constant 5.000000e-01 : f32
    %33 = vector.broadcast %cst_13 : f32 to vector<1x256xf32>
    %34 = arith.mulf %19, %33 : vector<1x256xf32>
    %35 = arith.subf %17, %34 : vector<1x256xf32>
    %cst_14 = arith.constant 5.000000e-01 : f32
    %36 = vector.broadcast %cst_14 : f32 to vector<1x256xf32>
    %37 = arith.mulf %20, %36 : vector<1x256xf32>
    %38 = arith.subf %18, %37 : vector<1x256xf32>
    %cst_15 = arith.constant 5.000000e-01 : f32
    %39 = vector.broadcast %cst_15 : f32 to vector<1x256xf32>
    %40 = arith.mulf %19, %39 : vector<1x256xf32>
    %41 = arith.addf %17, %40 : vector<1x256xf32>
    %cst_16 = arith.constant 5.000000e-01 : f32
    %42 = vector.broadcast %cst_16 : f32 to vector<1x256xf32>
    %43 = arith.mulf %20, %42 : vector<1x256xf32>
    %44 = arith.addf %18, %43 : vector<1x256xf32>
    %cst_17 = arith.constant 5.000000e-01 : f32
    %45 = vector.broadcast %cst_17 : f32 to vector<1x256xf32>
    %46 = arith.mulf %23, %45 : vector<1x256xf32>
    %47 = arith.subf %21, %46 : vector<1x256xf32>
    %cst_18 = arith.constant 5.000000e-01 : f32
    %48 = vector.broadcast %cst_18 : f32 to vector<1x256xf32>
    %49 = arith.mulf %24, %48 : vector<1x256xf32>
    %50 = arith.subf %22, %49 : vector<1x256xf32>
    %cst_19 = arith.constant 5.000000e-01 : f32
    %51 = vector.broadcast %cst_19 : f32 to vector<1x256xf32>
    %52 = arith.mulf %23, %51 : vector<1x256xf32>
    %53 = arith.addf %21, %52 : vector<1x256xf32>
    %cst_20 = arith.constant 5.000000e-01 : f32
    %54 = vector.broadcast %cst_20 : f32 to vector<1x256xf32>
    %55 = arith.mulf %24, %54 : vector<1x256xf32>
    %56 = arith.addf %22, %55 : vector<1x256xf32>
    %57 = arith.minimumf %35, %41 : vector<1x256xf32>
    %58 = arith.maximumf %35, %41 : vector<1x256xf32>
    %59 = arith.minimumf %38, %44 : vector<1x256xf32>
    %60 = arith.maximumf %38, %44 : vector<1x256xf32>
    %61 = arith.minimumf %47, %53 : vector<1x256xf32>
    %62 = arith.maximumf %47, %53 : vector<1x256xf32>
    %63 = arith.minimumf %50, %56 : vector<1x256xf32>
    %64 = arith.maximumf %50, %56 : vector<1x256xf32>
    %65 = arith.subf %58, %57 : vector<1x256xf32>
    %66 = arith.subf %60, %59 : vector<1x256xf32>
    %67 = arith.mulf %65, %66 : vector<1x256xf32>
    %68 = arith.subf %62, %61 : vector<1x256xf32>
    %69 = arith.subf %64, %63 : vector<1x256xf32>
    %70 = arith.mulf %68, %69 : vector<1x256xf32>
    %71 = arith.minimumf %58, %62 : vector<1x256xf32>
    %72 = arith.maximumf %57, %61 : vector<1x256xf32>
    %73 = arith.subf %71, %72 : vector<1x256xf32>
    %cst_21 = arith.constant 0.000000e+00 : f32
    %74 = vector.broadcast %cst_21 : f32 to vector<1x256xf32>
    %75 = arith.maximumf %73, %74 : vector<1x256xf32>
    %76 = arith.minimumf %60, %64 : vector<1x256xf32>
    %77 = arith.maximumf %59, %63 : vector<1x256xf32>
    %78 = arith.subf %76, %77 : vector<1x256xf32>
    %cst_22 = arith.constant 0.000000e+00 : f32
    %79 = vector.broadcast %cst_22 : f32 to vector<1x256xf32>
    %80 = arith.maximumf %78, %79 : vector<1x256xf32>
    %81 = arith.mulf %75, %80 : vector<1x256xf32>
    %82 = arith.addf %67, %70 : vector<1x256xf32>
    %83 = arith.subf %82, %81 : vector<1x256xf32>
    %84 = arith.divf %81, %83 : vector<1x256xf32>
    %85 = arith.maximumf %58, %62 : vector<1x256xf32>
    %86 = arith.minimumf %57, %61 : vector<1x256xf32>
    %87 = arith.subf %85, %86 : vector<1x256xf32>
    %cst_23 = arith.constant 0.000000e+00 : f32
    %88 = vector.broadcast %cst_23 : f32 to vector<1x256xf32>
    %89 = arith.maximumf %87, %88 : vector<1x256xf32>
    %90 = arith.maximumf %60, %64 : vector<1x256xf32>
    %91 = arith.minimumf %59, %63 : vector<1x256xf32>
    %92 = arith.subf %90, %91 : vector<1x256xf32>
    %cst_24 = arith.constant 0.000000e+00 : f32
    %93 = vector.broadcast %cst_24 : f32 to vector<1x256xf32>
    %94 = arith.maximumf %92, %93 : vector<1x256xf32>
    %95 = arith.mulf %89, %94 : vector<1x256xf32>
    %96 = arith.subf %95, %83 : vector<1x256xf32>
    %97 = arith.divf %96, %95 : vector<1x256xf32>
    %98 = arith.subf %84, %97 : vector<1x256xf32>
    %99 = arith.mulf %25, %32 : vector<1x256xf32>
    %cst_25 = arith.constant 1.000000e+00 : f32
    %100 = vector.broadcast %cst_25 : f32 to vector<1x256xf32>
    %101 = arith.subf %100, %98 : vector<1x256xf32>
    %102 = arith.mulf %99, %101 : vector<1x256xf32>
    %103 = arith.mulf %102, %26 : vector<1x256xf32>
    %104 = arith.mulf %19, %20 : vector<1x256xf32>
    %cst_26 = arith.constant 0xFF800000 : f32
    %105 = vector.broadcast %cst_26 : f32 to vector<1x256xf32>
    %c0_i32_27 = arith.constant 0 : i32
    %c8_i32 = arith.constant 8 : i32
    %106 = arith.muli %c0_i32_27, %c8_i32 : i32
    %c0_28 = arith.constant 0 : index
    %c0_29 = arith.constant 0 : index
    %107 = arith.index_cast %106 : i32 to index
    %c0_30 = arith.constant 0 : index
    %108 = vector.load %arg6[%c0_28, %c0_29, %107, %c0_30] : memref<1x1x152x4xf32, #tpu.memory_space<vmem>>, vector<1x1x8x4xf32>
    %109 = vector.shape_cast %108 : vector<1x1x8x4xf32> to vector<8x4xf32>
    %110 = vector.extract_strided_slice %109 {offsets = [0, 0], sizes = [8, 1], strides = [1, 1]} : vector<8x4xf32> to vector<8x1xf32>
    %111 = vector.extract_strided_slice %109 {offsets = [0, 1], sizes = [8, 1], strides = [1, 1]} : vector<8x4xf32> to vector<8x1xf32>
    %112 = vector.extract_strided_slice %109 {offsets = [0, 2], sizes = [8, 1], strides = [1, 1]} : vector<8x4xf32> to vector<8x1xf32>
    %113 = vector.extract_strided_slice %109 {offsets = [0, 3], sizes = [8, 1], strides = [1, 1]} : vector<8x4xf32> to vector<8x1xf32>
    %cst_31 = arith.constant 5.000000e-01 : f32
    %114 = vector.broadcast %cst_31 : f32 to vector<8x1xf32>
    %115 = arith.mulf %112, %114 : vector<8x1xf32>
    %116 = arith.subf %110, %115 : vector<8x1xf32>
    %cst_32 = arith.constant 5.000000e-01 : f32
    %117 = vector.broadcast %cst_32 : f32 to vector<8x1xf32>
    %118 = arith.mulf %113, %117 : vector<8x1xf32>
    %119 = arith.subf %111, %118 : vector<8x1xf32>
    %cst_33 = arith.constant 5.000000e-01 : f32
    %120 = vector.broadcast %cst_33 : f32 to vector<8x1xf32>
    %121 = arith.mulf %112, %120 : vector<8x1xf32>
    %122 = arith.addf %110, %121 : vector<8x1xf32>
    %cst_34 = arith.constant 5.000000e-01 : f32
    %123 = vector.broadcast %cst_34 : f32 to vector<8x1xf32>
    %124 = arith.mulf %113, %123 : vector<8x1xf32>
    %125 = arith.addf %111, %124 : vector<8x1xf32>
    %126 = vector.broadcast %41 : vector<1x256xf32> to vector<8x256xf32>
    %127 = vector.broadcast %122 : vector<8x1xf32> to vector<8x256xf32>
    %128 = arith.minimumf %126, %127 : vector<8x256xf32>
    %129 = vector.broadcast %35 : vector<1x256xf32> to vector<8x256xf32>
    %130 = vector.broadcast %116 : vector<8x1xf32> to vector<8x256xf32>
    %131 = arith.maximumf %129, %130 : vector<8x256xf32>
    %132 = arith.subf %128, %131 : vector<8x256xf32>
    %cst_35 = arith.constant 0.000000e+00 : f32
    %133 = vector.broadcast %cst_35 : f32 to vector<8x256xf32>
    %134 = arith.maximumf %132, %133 : vector<8x256xf32>
    %135 = vector.broadcast %44 : vector<1x256xf32> to vector<8x256xf32>
    %136 = vector.broadcast %125 : vector<8x1xf32> to vector<8x256xf32>
    %137 = arith.minimumf %135, %136 : vector<8x256xf32>
    %138 = vector.broadcast %38 : vector<1x256xf32> to vector<8x256xf32>
    %139 = vector.broadcast %119 : vector<8x1xf32> to vector<8x256xf32>
    %140 = arith.maximumf %138, %139 : vector<8x256xf32>
    %141 = arith.subf %137, %140 : vector<8x256xf32>
    %cst_36 = arith.constant 0.000000e+00 : f32
    %142 = vector.broadcast %cst_36 : f32 to vector<8x256xf32>
    %143 = arith.maximumf %141, %142 : vector<8x256xf32>
    %144 = arith.mulf %134, %143 : vector<8x256xf32>
    %145 = arith.mulf %112, %113 : vector<8x1xf32>
    %146 = vector.broadcast %104 : vector<1x256xf32> to vector<8x256xf32>
    %147 = vector.broadcast %145 : vector<8x1xf32> to vector<8x256xf32>
    %148 = arith.addf %146, %147 : vector<8x256xf32>
    %149 = arith.subf %148, %144 : vector<8x256xf32>
    %cst_37 = arith.constant 5.000000e-01 : f32
    %150 = vector.broadcast %cst_37 : f32 to vector<8x256xf32>
    %151 = arith.mulf %150, %149 : vector<8x256xf32>
    %152 = arith.subf %144, %151 : vector<8x256xf32>
    %cst_38 = arith.constant dense<0xFF800000> : vector<256xf32>
    %153 = vector.multi_reduction <maximumf>, %152, %cst_38 [0] : vector<8x256xf32> to vector<256xf32>
    %154 = vector.shape_cast %153 : vector<256xf32> to vector<1x256xf32>
    %155 = arith.maximumf %105, %154 : vector<1x256xf32>
    %c1_i32_39 = arith.constant 1 : i32
    %c8_i32_40 = arith.constant 8 : i32
    %156 = arith.muli %c1_i32_39, %c8_i32_40 : i32
    %c0_41 = arith.constant 0 : index
    %c0_42 = arith.constant 0 : index
    %157 = arith.index_cast %156 : i32 to index
    %c0_43 = arith.constant 0 : index
    %158 = vector.load %arg6[%c0_41, %c0_42, %157, %c0_43] : memref<1x1x152x4xf32, #tpu.memory_space<vmem>>, vector<1x1x8x4xf32>
    %159 = vector.shape_cast %158 : vector<1x1x8x4xf32> to vector<8x4xf32>
    %160 = vector.extract_strided_slice %159 {offsets = [0, 0], sizes = [8, 1], strides = [1, 1]} : vector<8x4xf32> to vector<8x1xf32>
    %161 = vector.extract_strided_slice %159 {offsets = [0, 1], sizes = [8, 1], strides = [1, 1]} : vector<8x4xf32> to vector<8x1xf32>
    %162 = vector.extract_strided_slice %159 {offsets = [0, 2], sizes = [8, 1], strides = [1, 1]} : vector<8x4xf32> to vector<8x1xf32>
    %163 = vector.extract_strided_slice %159 {offsets = [0, 3], sizes = [8, 1], strides = [1, 1]} : vector<8x4xf32> to vector<8x1xf32>
    %cst_44 = arith.constant 5.000000e-01 : f32
    %164 = vector.broadcast %cst_44 : f32 to vector<8x1xf32>
    %165 = arith.mulf %162, %164 : vector<8x1xf32>
    %166 = arith.subf %160, %165 : vector<8x1xf32>
    %cst_45 = arith.constant 5.000000e-01 : f32
    %167 = vector.broadcast %cst_45 : f32 to vector<8x1xf32>
    %168 = arith.mulf %163, %167 : vector<8x1xf32>
    %169 = arith.subf %161, %168 : vector<8x1xf32>
    %cst_46 = arith.constant 5.000000e-01 : f32
    %170 = vector.broadcast %cst_46 : f32 to vector<8x1xf32>
    %171 = arith.mulf %162, %170 : vector<8x1xf32>
    %172 = arith.addf %160, %171 : vector<8x1xf32>
    %cst_47 = arith.constant 5.000000e-01 : f32
    %173 = vector.broadcast %cst_47 : f32 to vector<8x1xf32>
    %174 = arith.mulf %163, %173 : vector<8x1xf32>
    %175 = arith.addf %161, %174 : vector<8x1xf32>
    %176 = vector.broadcast %41 : vector<1x256xf32> to vector<8x256xf32>
    %177 = vector.broadcast %172 : vector<8x1xf32> to vector<8x256xf32>
    %178 = arith.minimumf %176, %177 : vector<8x256xf32>
    %179 = vector.broadcast %35 : vector<1x256xf32> to vector<8x256xf32>
    %180 = vector.broadcast %166 : vector<8x1xf32> to vector<8x256xf32>
    %181 = arith.maximumf %179, %180 : vector<8x256xf32>
    %182 = arith.subf %178, %181 : vector<8x256xf32>
    %cst_48 = arith.constant 0.000000e+00 : f32
    %183 = vector.broadcast %cst_48 : f32 to vector<8x256xf32>
    %184 = arith.maximumf %182, %183 : vector<8x256xf32>
    %185 = vector.broadcast %44 : vector<1x256xf32> to vector<8x256xf32>
    %186 = vector.broadcast %175 : vector<8x1xf32> to vector<8x256xf32>
    %187 = arith.minimumf %185, %186 : vector<8x256xf32>
    %188 = vector.broadcast %38 : vector<1x256xf32> to vector<8x256xf32>
    %189 = vector.broadcast %169 : vector<8x1xf32> to vector<8x256xf32>
    %190 = arith.maximumf %188, %189 : vector<8x256xf32>
    %191 = arith.subf %187, %190 : vector<8x256xf32>
    %cst_49 = arith.constant 0.000000e+00 : f32
    %192 = vector.broadcast %cst_49 : f32 to vector<8x256xf32>
    %193 = arith.maximumf %191, %192 : vector<8x256xf32>
    %194 = arith.mulf %184, %193 : vector<8x256xf32>
    %195 = arith.mulf %162, %163 : vector<8x1xf32>
    %196 = vector.broadcast %104 : vector<1x256xf32> to vector<8x256xf32>
    %197 = vector.broadcast %195 : vector<8x1xf32> to vector<8x256xf32>
    %198 = arith.addf %196, %197 : vector<8x256xf32>
    %199 = arith.subf %198, %194 : vector<8x256xf32>
    %cst_50 = arith.constant 5.000000e-01 : f32
    %200 = vector.broadcast %cst_50 : f32 to vector<8x256xf32>
    %201 = arith.mulf %200, %199 : vector<8x256xf32>
    %202 = arith.subf %194, %201 : vector<8x256xf32>
    %cst_51 = arith.constant dense<0xFF800000> : vector<256xf32>
    %203 = vector.multi_reduction <maximumf>, %202, %cst_51 [0] : vector<8x256xf32> to vector<256xf32>
    %204 = vector.shape_cast %203 : vector<256xf32> to vector<1x256xf32>
    %205 = arith.maximumf %155, %204 : vector<1x256xf32>
    %c2_i32 = arith.constant 2 : i32
    %c8_i32_52 = arith.constant 8 : i32
    %206 = arith.muli %c2_i32, %c8_i32_52 : i32
    %c0_53 = arith.constant 0 : index
    %c0_54 = arith.constant 0 : index
    %207 = arith.index_cast %206 : i32 to index
    %c0_55 = arith.constant 0 : index
    %208 = vector.load %arg6[%c0_53, %c0_54, %207, %c0_55] : memref<1x1x152x4xf32, #tpu.memory_space<vmem>>, vector<1x1x8x4xf32>
    %209 = vector.shape_cast %208 : vector<1x1x8x4xf32> to vector<8x4xf32>
    %210 = vector.extract_strided_slice %209 {offsets = [0, 0], sizes = [8, 1], strides = [1, 1]} : vector<8x4xf32> to vector<8x1xf32>
    %211 = vector.extract_strided_slice %209 {offsets = [0, 1], sizes = [8, 1], strides = [1, 1]} : vector<8x4xf32> to vector<8x1xf32>
    %212 = vector.extract_strided_slice %209 {offsets = [0, 2], sizes = [8, 1], strides = [1, 1]} : vector<8x4xf32> to vector<8x1xf32>
    %213 = vector.extract_strided_slice %209 {offsets = [0, 3], sizes = [8, 1], strides = [1, 1]} : vector<8x4xf32> to vector<8x1xf32>
    %cst_56 = arith.constant 5.000000e-01 : f32
    %214 = vector.broadcast %cst_56 : f32 to vector<8x1xf32>
    %215 = arith.mulf %212, %214 : vector<8x1xf32>
    %216 = arith.subf %210, %215 : vector<8x1xf32>
    %cst_57 = arith.constant 5.000000e-01 : f32
    %217 = vector.broadcast %cst_57 : f32 to vector<8x1xf32>
    %218 = arith.mulf %213, %217 : vector<8x1xf32>
    %219 = arith.subf %211, %218 : vector<8x1xf32>
    %cst_58 = arith.constant 5.000000e-01 : f32
    %220 = vector.broadcast %cst_58 : f32 to vector<8x1xf32>
    %221 = arith.mulf %212, %220 : vector<8x1xf32>
    %222 = arith.addf %210, %221 : vector<8x1xf32>
    %cst_59 = arith.constant 5.000000e-01 : f32
    %223 = vector.broadcast %cst_59 : f32 to vector<8x1xf32>
    %224 = arith.mulf %213, %223 : vector<8x1xf32>
    %225 = arith.addf %211, %224 : vector<8x1xf32>
    %226 = vector.broadcast %41 : vector<1x256xf32> to vector<8x256xf32>
    %227 = vector.broadcast %222 : vector<8x1xf32> to vector<8x256xf32>
    %228 = arith.minimumf %226, %227 : vector<8x256xf32>
    %229 = vector.broadcast %35 : vector<1x256xf32> to vector<8x256xf32>
    %230 = vector.broadcast %216 : vector<8x1xf32> to vector<8x256xf32>
    %231 = arith.maximumf %229, %230 : vector<8x256xf32>
    %232 = arith.subf %228, %231 : vector<8x256xf32>
    %cst_60 = arith.constant 0.000000e+00 : f32
    %233 = vector.broadcast %cst_60 : f32 to vector<8x256xf32>
    %234 = arith.maximumf %232, %233 : vector<8x256xf32>
    %235 = vector.broadcast %44 : vector<1x256xf32> to vector<8x256xf32>
    %236 = vector.broadcast %225 : vector<8x1xf32> to vector<8x256xf32>
    %237 = arith.minimumf %235, %236 : vector<8x256xf32>
    %238 = vector.broadcast %38 : vector<1x256xf32> to vector<8x256xf32>
    %239 = vector.broadcast %219 : vector<8x1xf32> to vector<8x256xf32>
    %240 = arith.maximumf %238, %239 : vector<8x256xf32>
    %241 = arith.subf %237, %240 : vector<8x256xf32>
    %cst_61 = arith.constant 0.000000e+00 : f32
    %242 = vector.broadcast %cst_61 : f32 to vector<8x256xf32>
    %243 = arith.maximumf %241, %242 : vector<8x256xf32>
    %244 = arith.mulf %234, %243 : vector<8x256xf32>
    %245 = arith.mulf %212, %213 : vector<8x1xf32>
    %246 = vector.broadcast %104 : vector<1x256xf32> to vector<8x256xf32>
    %247 = vector.broadcast %245 : vector<8x1xf32> to vector<8x256xf32>
    %248 = arith.addf %246, %247 : vector<8x256xf32>
    %249 = arith.subf %248, %244 : vector<8x256xf32>
    %cst_62 = arith.constant 5.000000e-01 : f32
    %250 = vector.broadcast %cst_62 : f32 to vector<8x256xf32>
    %251 = arith.mulf %250, %249 : vector<8x256xf32>
    %252 = arith.subf %244, %251 : vector<8x256xf32>
    %cst_63 = arith.constant dense<0xFF800000> : vector<256xf32>
    %253 = vector.multi_reduction <maximumf>, %252, %cst_63 [0] : vector<8x256xf32> to vector<256xf32>
    %254 = vector.shape_cast %253 : vector<256xf32> to vector<1x256xf32>
    %255 = arith.maximumf %205, %254 : vector<1x256xf32>
    %c3_i32 = arith.constant 3 : i32
    %c8_i32_64 = arith.constant 8 : i32
    %256 = arith.muli %c3_i32, %c8_i32_64 : i32
    %c0_65 = arith.constant 0 : index
    %c0_66 = arith.constant 0 : index
    %257 = arith.index_cast %256 : i32 to index
    %c0_67 = arith.constant 0 : index
    %258 = vector.load %arg6[%c0_65, %c0_66, %257, %c0_67] : memref<1x1x152x4xf32, #tpu.memory_space<vmem>>, vector<1x1x8x4xf32>
    %259 = vector.shape_cast %258 : vector<1x1x8x4xf32> to vector<8x4xf32>
    %260 = vector.extract_strided_slice %259 {offsets = [0, 0], sizes = [8, 1], strides = [1, 1]} : vector<8x4xf32> to vector<8x1xf32>
    %261 = vector.extract_strided_slice %259 {offsets = [0, 1], sizes = [8, 1], strides = [1, 1]} : vector<8x4xf32> to vector<8x1xf32>
    %262 = vector.extract_strided_slice %259 {offsets = [0, 2], sizes = [8, 1], strides = [1, 1]} : vector<8x4xf32> to vector<8x1xf32>
    %263 = vector.extract_strided_slice %259 {offsets = [0, 3], sizes = [8, 1], strides = [1, 1]} : vector<8x4xf32> to vector<8x1xf32>
    %cst_68 = arith.constant 5.000000e-01 : f32
    %264 = vector.broadcast %cst_68 : f32 to vector<8x1xf32>
    %265 = arith.mulf %262, %264 : vector<8x1xf32>
    %266 = arith.subf %260, %265 : vector<8x1xf32>
    %cst_69 = arith.constant 5.000000e-01 : f32
    %267 = vector.broadcast %cst_69 : f32 to vector<8x1xf32>
    %268 = arith.mulf %263, %267 : vector<8x1xf32>
    %269 = arith.subf %261, %268 : vector<8x1xf32>
    %cst_70 = arith.constant 5.000000e-01 : f32
    %270 = vector.broadcast %cst_70 : f32 to vector<8x1xf32>
    %271 = arith.mulf %262, %270 : vector<8x1xf32>
    %272 = arith.addf %260, %271 : vector<8x1xf32>
    %cst_71 = arith.constant 5.000000e-01 : f32
    %273 = vector.broadcast %cst_71 : f32 to vector<8x1xf32>
    %274 = arith.mulf %263, %273 : vector<8x1xf32>
    %275 = arith.addf %261, %274 : vector<8x1xf32>
    %276 = vector.broadcast %41 : vector<1x256xf32> to vector<8x256xf32>
    %277 = vector.broadcast %272 : vector<8x1xf32> to vector<8x256xf32>
    %278 = arith.minimumf %276, %277 : vector<8x256xf32>
    %279 = vector.broadcast %35 : vector<1x256xf32> to vector<8x256xf32>
    %280 = vector.broadcast %266 : vector<8x1xf32> to vector<8x256xf32>
    %281 = arith.maximumf %279, %280 : vector<8x256xf32>
    %282 = arith.subf %278, %281 : vector<8x256xf32>
    %cst_72 = arith.constant 0.000000e+00 : f32
    %283 = vector.broadcast %cst_72 : f32 to vector<8x256xf32>
    %284 = arith.maximumf %282, %283 : vector<8x256xf32>
    %285 = vector.broadcast %44 : vector<1x256xf32> to vector<8x256xf32>
    %286 = vector.broadcast %275 : vector<8x1xf32> to vector<8x256xf32>
    %287 = arith.minimumf %285, %286 : vector<8x256xf32>
    %288 = vector.broadcast %38 : vector<1x256xf32> to vector<8x256xf32>
    %289 = vector.broadcast %269 : vector<8x1xf32> to vector<8x256xf32>
    %290 = arith.maximumf %288, %289 : vector<8x256xf32>
    %291 = arith.subf %287, %290 : vector<8x256xf32>
    %cst_73 = arith.constant 0.000000e+00 : f32
    %292 = vector.broadcast %cst_73 : f32 to vector<8x256xf32>
    %293 = arith.maximumf %291, %292 : vector<8x256xf32>
    %294 = arith.mulf %284, %293 : vector<8x256xf32>
    %295 = arith.mulf %262, %263 : vector<8x1xf32>
    %296 = vector.broadcast %104 : vector<1x256xf32> to vector<8x256xf32>
    %297 = vector.broadcast %295 : vector<8x1xf32> to vector<8x256xf32>
    %298 = arith.addf %296, %297 : vector<8x256xf32>
    %299 = arith.subf %298, %294 : vector<8x256xf32>
    %cst_74 = arith.constant 5.000000e-01 : f32
    %300 = vector.broadcast %cst_74 : f32 to vector<8x256xf32>
    %301 = arith.mulf %300, %299 : vector<8x256xf32>
    %302 = arith.subf %294, %301 : vector<8x256xf32>
    %cst_75 = arith.constant dense<0xFF800000> : vector<256xf32>
    %303 = vector.multi_reduction <maximumf>, %302, %cst_75 [0] : vector<8x256xf32> to vector<256xf32>
    %304 = vector.shape_cast %303 : vector<256xf32> to vector<1x256xf32>
    %305 = arith.maximumf %255, %304 : vector<1x256xf32>
    %c4_i32 = arith.constant 4 : i32
    %c8_i32_76 = arith.constant 8 : i32
    %306 = arith.muli %c4_i32, %c8_i32_76 : i32
    %c0_77 = arith.constant 0 : index
    %c0_78 = arith.constant 0 : index
    %307 = arith.index_cast %306 : i32 to index
    %c0_79 = arith.constant 0 : index
    %308 = vector.load %arg6[%c0_77, %c0_78, %307, %c0_79] : memref<1x1x152x4xf32, #tpu.memory_space<vmem>>, vector<1x1x8x4xf32>
    %309 = vector.shape_cast %308 : vector<1x1x8x4xf32> to vector<8x4xf32>
    %310 = vector.extract_strided_slice %309 {offsets = [0, 0], sizes = [8, 1], strides = [1, 1]} : vector<8x4xf32> to vector<8x1xf32>
    %311 = vector.extract_strided_slice %309 {offsets = [0, 1], sizes = [8, 1], strides = [1, 1]} : vector<8x4xf32> to vector<8x1xf32>
    %312 = vector.extract_strided_slice %309 {offsets = [0, 2], sizes = [8, 1], strides = [1, 1]} : vector<8x4xf32> to vector<8x1xf32>
    %313 = vector.extract_strided_slice %309 {offsets = [0, 3], sizes = [8, 1], strides = [1, 1]} : vector<8x4xf32> to vector<8x1xf32>
    %cst_80 = arith.constant 5.000000e-01 : f32
    %314 = vector.broadcast %cst_80 : f32 to vector<8x1xf32>
    %315 = arith.mulf %312, %314 : vector<8x1xf32>
    %316 = arith.subf %310, %315 : vector<8x1xf32>
    %cst_81 = arith.constant 5.000000e-01 : f32
    %317 = vector.broadcast %cst_81 : f32 to vector<8x1xf32>
    %318 = arith.mulf %313, %317 : vector<8x1xf32>
    %319 = arith.subf %311, %318 : vector<8x1xf32>
    %cst_82 = arith.constant 5.000000e-01 : f32
    %320 = vector.broadcast %cst_82 : f32 to vector<8x1xf32>
    %321 = arith.mulf %312, %320 : vector<8x1xf32>
    %322 = arith.addf %310, %321 : vector<8x1xf32>
    %cst_83 = arith.constant 5.000000e-01 : f32
    %323 = vector.broadcast %cst_83 : f32 to vector<8x1xf32>
    %324 = arith.mulf %313, %323 : vector<8x1xf32>
    %325 = arith.addf %311, %324 : vector<8x1xf32>
    %326 = vector.broadcast %41 : vector<1x256xf32> to vector<8x256xf32>
    %327 = vector.broadcast %322 : vector<8x1xf32> to vector<8x256xf32>
    %328 = arith.minimumf %326, %327 : vector<8x256xf32>
    %329 = vector.broadcast %35 : vector<1x256xf32> to vector<8x256xf32>
    %330 = vector.broadcast %316 : vector<8x1xf32> to vector<8x256xf32>
    %331 = arith.maximumf %329, %330 : vector<8x256xf32>
    %332 = arith.subf %328, %331 : vector<8x256xf32>
    %cst_84 = arith.constant 0.000000e+00 : f32
    %333 = vector.broadcast %cst_84 : f32 to vector<8x256xf32>
    %334 = arith.maximumf %332, %333 : vector<8x256xf32>
    %335 = vector.broadcast %44 : vector<1x256xf32> to vector<8x256xf32>
    %336 = vector.broadcast %325 : vector<8x1xf32> to vector<8x256xf32>
    %337 = arith.minimumf %335, %336 : vector<8x256xf32>
    %338 = vector.broadcast %38 : vector<1x256xf32> to vector<8x256xf32>
    %339 = vector.broadcast %319 : vector<8x1xf32> to vector<8x256xf32>
    %340 = arith.maximumf %338, %339 : vector<8x256xf32>
    %341 = arith.subf %337, %340 : vector<8x256xf32>
    %cst_85 = arith.constant 0.000000e+00 : f32
    %342 = vector.broadcast %cst_85 : f32 to vector<8x256xf32>
    %343 = arith.maximumf %341, %342 : vector<8x256xf32>
    %344 = arith.mulf %334, %343 : vector<8x256xf32>
    %345 = arith.mulf %312, %313 : vector<8x1xf32>
    %346 = vector.broadcast %104 : vector<1x256xf32> to vector<8x256xf32>
    %347 = vector.broadcast %345 : vector<8x1xf32> to vector<8x256xf32>
    %348 = arith.addf %346, %347 : vector<8x256xf32>
    %349 = arith.subf %348, %344 : vector<8x256xf32>
    %cst_86 = arith.constant 5.000000e-01 : f32
    %350 = vector.broadcast %cst_86 : f32 to vector<8x256xf32>
    %351 = arith.mulf %350, %349 : vector<8x256xf32>
    %352 = arith.subf %344, %351 : vector<8x256xf32>
    %cst_87 = arith.constant dense<0xFF800000> : vector<256xf32>
    %353 = vector.multi_reduction <maximumf>, %352, %cst_87 [0] : vector<8x256xf32> to vector<256xf32>
    %354 = vector.shape_cast %353 : vector<256xf32> to vector<1x256xf32>
    %355 = arith.maximumf %305, %354 : vector<1x256xf32>
    %c5_i32 = arith.constant 5 : i32
    %c8_i32_88 = arith.constant 8 : i32
    %356 = arith.muli %c5_i32, %c8_i32_88 : i32
    %c0_89 = arith.constant 0 : index
    %c0_90 = arith.constant 0 : index
    %357 = arith.index_cast %356 : i32 to index
    %c0_91 = arith.constant 0 : index
    %358 = vector.load %arg6[%c0_89, %c0_90, %357, %c0_91] : memref<1x1x152x4xf32, #tpu.memory_space<vmem>>, vector<1x1x8x4xf32>
    %359 = vector.shape_cast %358 : vector<1x1x8x4xf32> to vector<8x4xf32>
    %360 = vector.extract_strided_slice %359 {offsets = [0, 0], sizes = [8, 1], strides = [1, 1]} : vector<8x4xf32> to vector<8x1xf32>
    %361 = vector.extract_strided_slice %359 {offsets = [0, 1], sizes = [8, 1], strides = [1, 1]} : vector<8x4xf32> to vector<8x1xf32>
    %362 = vector.extract_strided_slice %359 {offsets = [0, 2], sizes = [8, 1], strides = [1, 1]} : vector<8x4xf32> to vector<8x1xf32>
    %363 = vector.extract_strided_slice %359 {offsets = [0, 3], sizes = [8, 1], strides = [1, 1]} : vector<8x4xf32> to vector<8x1xf32>
    %cst_92 = arith.constant 5.000000e-01 : f32
    %364 = vector.broadcast %cst_92 : f32 to vector<8x1xf32>
    %365 = arith.mulf %362, %364 : vector<8x1xf32>
    %366 = arith.subf %360, %365 : vector<8x1xf32>
    %cst_93 = arith.constant 5.000000e-01 : f32
    %367 = vector.broadcast %cst_93 : f32 to vector<8x1xf32>
    %368 = arith.mulf %363, %367 : vector<8x1xf32>
    %369 = arith.subf %361, %368 : vector<8x1xf32>
    %cst_94 = arith.constant 5.000000e-01 : f32
    %370 = vector.broadcast %cst_94 : f32 to vector<8x1xf32>
    %371 = arith.mulf %362, %370 : vector<8x1xf32>
    %372 = arith.addf %360, %371 : vector<8x1xf32>
    %cst_95 = arith.constant 5.000000e-01 : f32
    %373 = vector.broadcast %cst_95 : f32 to vector<8x1xf32>
    %374 = arith.mulf %363, %373 : vector<8x1xf32>
    %375 = arith.addf %361, %374 : vector<8x1xf32>
    %376 = vector.broadcast %41 : vector<1x256xf32> to vector<8x256xf32>
    %377 = vector.broadcast %372 : vector<8x1xf32> to vector<8x256xf32>
    %378 = arith.minimumf %376, %377 : vector<8x256xf32>
    %379 = vector.broadcast %35 : vector<1x256xf32> to vector<8x256xf32>
    %380 = vector.broadcast %366 : vector<8x1xf32> to vector<8x256xf32>
    %381 = arith.maximumf %379, %380 : vector<8x256xf32>
    %382 = arith.subf %378, %381 : vector<8x256xf32>
    %cst_96 = arith.constant 0.000000e+00 : f32
    %383 = vector.broadcast %cst_96 : f32 to vector<8x256xf32>
    %384 = arith.maximumf %382, %383 : vector<8x256xf32>
    %385 = vector.broadcast %44 : vector<1x256xf32> to vector<8x256xf32>
    %386 = vector.broadcast %375 : vector<8x1xf32> to vector<8x256xf32>
    %387 = arith.minimumf %385, %386 : vector<8x256xf32>
    %388 = vector.broadcast %38 : vector<1x256xf32> to vector<8x256xf32>
    %389 = vector.broadcast %369 : vector<8x1xf32> to vector<8x256xf32>
    %390 = arith.maximumf %388, %389 : vector<8x256xf32>
    %391 = arith.subf %387, %390 : vector<8x256xf32>
    %cst_97 = arith.constant 0.000000e+00 : f32
    %392 = vector.broadcast %cst_97 : f32 to vector<8x256xf32>
    %393 = arith.maximumf %391, %392 : vector<8x256xf32>
    %394 = arith.mulf %384, %393 : vector<8x256xf32>
    %395 = arith.mulf %362, %363 : vector<8x1xf32>
    %396 = vector.broadcast %104 : vector<1x256xf32> to vector<8x256xf32>
    %397 = vector.broadcast %395 : vector<8x1xf32> to vector<8x256xf32>
    %398 = arith.addf %396, %397 : vector<8x256xf32>
    %399 = arith.subf %398, %394 : vector<8x256xf32>
    %cst_98 = arith.constant 5.000000e-01 : f32
    %400 = vector.broadcast %cst_98 : f32 to vector<8x256xf32>
    %401 = arith.mulf %400, %399 : vector<8x256xf32>
    %402 = arith.subf %394, %401 : vector<8x256xf32>
    %cst_99 = arith.constant dense<0xFF800000> : vector<256xf32>
    %403 = vector.multi_reduction <maximumf>, %402, %cst_99 [0] : vector<8x256xf32> to vector<256xf32>
    %404 = vector.shape_cast %403 : vector<256xf32> to vector<1x256xf32>
    %405 = arith.maximumf %355, %404 : vector<1x256xf32>
    %c6_i32 = arith.constant 6 : i32
    %c8_i32_100 = arith.constant 8 : i32
    %406 = arith.muli %c6_i32, %c8_i32_100 : i32
    %c0_101 = arith.constant 0 : index
    %c0_102 = arith.constant 0 : index
    %407 = arith.index_cast %406 : i32 to index
    %c0_103 = arith.constant 0 : index
    %408 = vector.load %arg6[%c0_101, %c0_102, %407, %c0_103] : memref<1x1x152x4xf32, #tpu.memory_space<vmem>>, vector<1x1x8x4xf32>
    %409 = vector.shape_cast %408 : vector<1x1x8x4xf32> to vector<8x4xf32>
    %410 = vector.extract_strided_slice %409 {offsets = [0, 0], sizes = [8, 1], strides = [1, 1]} : vector<8x4xf32> to vector<8x1xf32>
    %411 = vector.extract_strided_slice %409 {offsets = [0, 1], sizes = [8, 1], strides = [1, 1]} : vector<8x4xf32> to vector<8x1xf32>
    %412 = vector.extract_strided_slice %409 {offsets = [0, 2], sizes = [8, 1], strides = [1, 1]} : vector<8x4xf32> to vector<8x1xf32>
    %413 = vector.extract_strided_slice %409 {offsets = [0, 3], sizes = [8, 1], strides = [1, 1]} : vector<8x4xf32> to vector<8x1xf32>
    %cst_104 = arith.constant 5.000000e-01 : f32
    %414 = vector.broadcast %cst_104 : f32 to vector<8x1xf32>
    %415 = arith.mulf %412, %414 : vector<8x1xf32>
    %416 = arith.subf %410, %415 : vector<8x1xf32>
    %cst_105 = arith.constant 5.000000e-01 : f32
    %417 = vector.broadcast %cst_105 : f32 to vector<8x1xf32>
    %418 = arith.mulf %413, %417 : vector<8x1xf32>
    %419 = arith.subf %411, %418 : vector<8x1xf32>
    %cst_106 = arith.constant 5.000000e-01 : f32
    %420 = vector.broadcast %cst_106 : f32 to vector<8x1xf32>
    %421 = arith.mulf %412, %420 : vector<8x1xf32>
    %422 = arith.addf %410, %421 : vector<8x1xf32>
    %cst_107 = arith.constant 5.000000e-01 : f32
    %423 = vector.broadcast %cst_107 : f32 to vector<8x1xf32>
    %424 = arith.mulf %413, %423 : vector<8x1xf32>
    %425 = arith.addf %411, %424 : vector<8x1xf32>
    %426 = vector.broadcast %41 : vector<1x256xf32> to vector<8x256xf32>
    %427 = vector.broadcast %422 : vector<8x1xf32> to vector<8x256xf32>
    %428 = arith.minimumf %426, %427 : vector<8x256xf32>
    %429 = vector.broadcast %35 : vector<1x256xf32> to vector<8x256xf32>
    %430 = vector.broadcast %416 : vector<8x1xf32> to vector<8x256xf32>
    %431 = arith.maximumf %429, %430 : vector<8x256xf32>
    %432 = arith.subf %428, %431 : vector<8x256xf32>
    %cst_108 = arith.constant 0.000000e+00 : f32
    %433 = vector.broadcast %cst_108 : f32 to vector<8x256xf32>
    %434 = arith.maximumf %432, %433 : vector<8x256xf32>
    %435 = vector.broadcast %44 : vector<1x256xf32> to vector<8x256xf32>
    %436 = vector.broadcast %425 : vector<8x1xf32> to vector<8x256xf32>
    %437 = arith.minimumf %435, %436 : vector<8x256xf32>
    %438 = vector.broadcast %38 : vector<1x256xf32> to vector<8x256xf32>
    %439 = vector.broadcast %419 : vector<8x1xf32> to vector<8x256xf32>
    %440 = arith.maximumf %438, %439 : vector<8x256xf32>
    %441 = arith.subf %437, %440 : vector<8x256xf32>
    %cst_109 = arith.constant 0.000000e+00 : f32
    %442 = vector.broadcast %cst_109 : f32 to vector<8x256xf32>
    %443 = arith.maximumf %441, %442 : vector<8x256xf32>
    %444 = arith.mulf %434, %443 : vector<8x256xf32>
    %445 = arith.mulf %412, %413 : vector<8x1xf32>
    %446 = vector.broadcast %104 : vector<1x256xf32> to vector<8x256xf32>
    %447 = vector.broadcast %445 : vector<8x1xf32> to vector<8x256xf32>
    %448 = arith.addf %446, %447 : vector<8x256xf32>
    %449 = arith.subf %448, %444 : vector<8x256xf32>
    %cst_110 = arith.constant 5.000000e-01 : f32
    %450 = vector.broadcast %cst_110 : f32 to vector<8x256xf32>
    %451 = arith.mulf %450, %449 : vector<8x256xf32>
    %452 = arith.subf %444, %451 : vector<8x256xf32>
    %cst_111 = arith.constant dense<0xFF800000> : vector<256xf32>
    %453 = vector.multi_reduction <maximumf>, %452, %cst_111 [0] : vector<8x256xf32> to vector<256xf32>
    %454 = vector.shape_cast %453 : vector<256xf32> to vector<1x256xf32>
    %455 = arith.maximumf %405, %454 : vector<1x256xf32>
    %c7_i32 = arith.constant 7 : i32
    %c8_i32_112 = arith.constant 8 : i32
    %456 = arith.muli %c7_i32, %c8_i32_112 : i32
    %c0_113 = arith.constant 0 : index
    %c0_114 = arith.constant 0 : index
    %457 = arith.index_cast %456 : i32 to index
    %c0_115 = arith.constant 0 : index
    %458 = vector.load %arg6[%c0_113, %c0_114, %457, %c0_115] : memref<1x1x152x4xf32, #tpu.memory_space<vmem>>, vector<1x1x8x4xf32>
    %459 = vector.shape_cast %458 : vector<1x1x8x4xf32> to vector<8x4xf32>
    %460 = vector.extract_strided_slice %459 {offsets = [0, 0], sizes = [8, 1], strides = [1, 1]} : vector<8x4xf32> to vector<8x1xf32>
    %461 = vector.extract_strided_slice %459 {offsets = [0, 1], sizes = [8, 1], strides = [1, 1]} : vector<8x4xf32> to vector<8x1xf32>
    %462 = vector.extract_strided_slice %459 {offsets = [0, 2], sizes = [8, 1], strides = [1, 1]} : vector<8x4xf32> to vector<8x1xf32>
    %463 = vector.extract_strided_slice %459 {offsets = [0, 3], sizes = [8, 1], strides = [1, 1]} : vector<8x4xf32> to vector<8x1xf32>
    %cst_116 = arith.constant 5.000000e-01 : f32
    %464 = vector.broadcast %cst_116 : f32 to vector<8x1xf32>
    %465 = arith.mulf %462, %464 : vector<8x1xf32>
    %466 = arith.subf %460, %465 : vector<8x1xf32>
    %cst_117 = arith.constant 5.000000e-01 : f32
    %467 = vector.broadcast %cst_117 : f32 to vector<8x1xf32>
    %468 = arith.mulf %463, %467 : vector<8x1xf32>
    %469 = arith.subf %461, %468 : vector<8x1xf32>
    %cst_118 = arith.constant 5.000000e-01 : f32
    %470 = vector.broadcast %cst_118 : f32 to vector<8x1xf32>
    %471 = arith.mulf %462, %470 : vector<8x1xf32>
    %472 = arith.addf %460, %471 : vector<8x1xf32>
    %cst_119 = arith.constant 5.000000e-01 : f32
    %473 = vector.broadcast %cst_119 : f32 to vector<8x1xf32>
    %474 = arith.mulf %463, %473 : vector<8x1xf32>
    %475 = arith.addf %461, %474 : vector<8x1xf32>
    %476 = vector.broadcast %41 : vector<1x256xf32> to vector<8x256xf32>
    %477 = vector.broadcast %472 : vector<8x1xf32> to vector<8x256xf32>
    %478 = arith.minimumf %476, %477 : vector<8x256xf32>
    %479 = vector.broadcast %35 : vector<1x256xf32> to vector<8x256xf32>
    %480 = vector.broadcast %466 : vector<8x1xf32> to vector<8x256xf32>
    %481 = arith.maximumf %479, %480 : vector<8x256xf32>
    %482 = arith.subf %478, %481 : vector<8x256xf32>
    %cst_120 = arith.constant 0.000000e+00 : f32
    %483 = vector.broadcast %cst_120 : f32 to vector<8x256xf32>
    %484 = arith.maximumf %482, %483 : vector<8x256xf32>
    %485 = vector.broadcast %44 : vector<1x256xf32> to vector<8x256xf32>
    %486 = vector.broadcast %475 : vector<8x1xf32> to vector<8x256xf32>
    %487 = arith.minimumf %485, %486 : vector<8x256xf32>
    %488 = vector.broadcast %38 : vector<1x256xf32> to vector<8x256xf32>
    %489 = vector.broadcast %469 : vector<8x1xf32> to vector<8x256xf32>
    %490 = arith.maximumf %488, %489 : vector<8x256xf32>
    %491 = arith.subf %487, %490 : vector<8x256xf32>
    %cst_121 = arith.constant 0.000000e+00 : f32
    %492 = vector.broadcast %cst_121 : f32 to vector<8x256xf32>
    %493 = arith.maximumf %491, %492 : vector<8x256xf32>
    %494 = arith.mulf %484, %493 : vector<8x256xf32>
    %495 = arith.mulf %462, %463 : vector<8x1xf32>
    %496 = vector.broadcast %104 : vector<1x256xf32> to vector<8x256xf32>
    %497 = vector.broadcast %495 : vector<8x1xf32> to vector<8x256xf32>
    %498 = arith.addf %496, %497 : vector<8x256xf32>
    %499 = arith.subf %498, %494 : vector<8x256xf32>
    %cst_122 = arith.constant 5.000000e-01 : f32
    %500 = vector.broadcast %cst_122 : f32 to vector<8x256xf32>
    %501 = arith.mulf %500, %499 : vector<8x256xf32>
    %502 = arith.subf %494, %501 : vector<8x256xf32>
    %cst_123 = arith.constant dense<0xFF800000> : vector<256xf32>
    %503 = vector.multi_reduction <maximumf>, %502, %cst_123 [0] : vector<8x256xf32> to vector<256xf32>
    %504 = vector.shape_cast %503 : vector<256xf32> to vector<1x256xf32>
    %505 = arith.maximumf %455, %504 : vector<1x256xf32>
    %c8_i32_124 = arith.constant 8 : i32
    %c8_i32_125 = arith.constant 8 : i32
    %506 = arith.muli %c8_i32_124, %c8_i32_125 : i32
    %c0_126 = arith.constant 0 : index
    %c0_127 = arith.constant 0 : index
    %507 = arith.index_cast %506 : i32 to index
    %c0_128 = arith.constant 0 : index
    %508 = vector.load %arg6[%c0_126, %c0_127, %507, %c0_128] : memref<1x1x152x4xf32, #tpu.memory_space<vmem>>, vector<1x1x8x4xf32>
    %509 = vector.shape_cast %508 : vector<1x1x8x4xf32> to vector<8x4xf32>
    %510 = vector.extract_strided_slice %509 {offsets = [0, 0], sizes = [8, 1], strides = [1, 1]} : vector<8x4xf32> to vector<8x1xf32>
    %511 = vector.extract_strided_slice %509 {offsets = [0, 1], sizes = [8, 1], strides = [1, 1]} : vector<8x4xf32> to vector<8x1xf32>
    %512 = vector.extract_strided_slice %509 {offsets = [0, 2], sizes = [8, 1], strides = [1, 1]} : vector<8x4xf32> to vector<8x1xf32>
    %513 = vector.extract_strided_slice %509 {offsets = [0, 3], sizes = [8, 1], strides = [1, 1]} : vector<8x4xf32> to vector<8x1xf32>
    %cst_129 = arith.constant 5.000000e-01 : f32
    %514 = vector.broadcast %cst_129 : f32 to vector<8x1xf32>
    %515 = arith.mulf %512, %514 : vector<8x1xf32>
    %516 = arith.subf %510, %515 : vector<8x1xf32>
    %cst_130 = arith.constant 5.000000e-01 : f32
    %517 = vector.broadcast %cst_130 : f32 to vector<8x1xf32>
    %518 = arith.mulf %513, %517 : vector<8x1xf32>
    %519 = arith.subf %511, %518 : vector<8x1xf32>
    %cst_131 = arith.constant 5.000000e-01 : f32
    %520 = vector.broadcast %cst_131 : f32 to vector<8x1xf32>
    %521 = arith.mulf %512, %520 : vector<8x1xf32>
    %522 = arith.addf %510, %521 : vector<8x1xf32>
    %cst_132 = arith.constant 5.000000e-01 : f32
    %523 = vector.broadcast %cst_132 : f32 to vector<8x1xf32>
    %524 = arith.mulf %513, %523 : vector<8x1xf32>
    %525 = arith.addf %511, %524 : vector<8x1xf32>
    %526 = vector.broadcast %41 : vector<1x256xf32> to vector<8x256xf32>
    %527 = vector.broadcast %522 : vector<8x1xf32> to vector<8x256xf32>
    %528 = arith.minimumf %526, %527 : vector<8x256xf32>
    %529 = vector.broadcast %35 : vector<1x256xf32> to vector<8x256xf32>
    %530 = vector.broadcast %516 : vector<8x1xf32> to vector<8x256xf32>
    %531 = arith.maximumf %529, %530 : vector<8x256xf32>
    %532 = arith.subf %528, %531 : vector<8x256xf32>
    %cst_133 = arith.constant 0.000000e+00 : f32
    %533 = vector.broadcast %cst_133 : f32 to vector<8x256xf32>
    %534 = arith.maximumf %532, %533 : vector<8x256xf32>
    %535 = vector.broadcast %44 : vector<1x256xf32> to vector<8x256xf32>
    %536 = vector.broadcast %525 : vector<8x1xf32> to vector<8x256xf32>
    %537 = arith.minimumf %535, %536 : vector<8x256xf32>
    %538 = vector.broadcast %38 : vector<1x256xf32> to vector<8x256xf32>
    %539 = vector.broadcast %519 : vector<8x1xf32> to vector<8x256xf32>
    %540 = arith.maximumf %538, %539 : vector<8x256xf32>
    %541 = arith.subf %537, %540 : vector<8x256xf32>
    %cst_134 = arith.constant 0.000000e+00 : f32
    %542 = vector.broadcast %cst_134 : f32 to vector<8x256xf32>
    %543 = arith.maximumf %541, %542 : vector<8x256xf32>
    %544 = arith.mulf %534, %543 : vector<8x256xf32>
    %545 = arith.mulf %512, %513 : vector<8x1xf32>
    %546 = vector.broadcast %104 : vector<1x256xf32> to vector<8x256xf32>
    %547 = vector.broadcast %545 : vector<8x1xf32> to vector<8x256xf32>
    %548 = arith.addf %546, %547 : vector<8x256xf32>
    %549 = arith.subf %548, %544 : vector<8x256xf32>
    %cst_135 = arith.constant 5.000000e-01 : f32
    %550 = vector.broadcast %cst_135 : f32 to vector<8x256xf32>
    %551 = arith.mulf %550, %549 : vector<8x256xf32>
    %552 = arith.subf %544, %551 : vector<8x256xf32>
    %cst_136 = arith.constant dense<0xFF800000> : vector<256xf32>
    %553 = vector.multi_reduction <maximumf>, %552, %cst_136 [0] : vector<8x256xf32> to vector<256xf32>
    %554 = vector.shape_cast %553 : vector<256xf32> to vector<1x256xf32>
    %555 = arith.maximumf %505, %554 : vector<1x256xf32>
    %c9_i32 = arith.constant 9 : i32
    %c8_i32_137 = arith.constant 8 : i32
    %556 = arith.muli %c9_i32, %c8_i32_137 : i32
    %c0_138 = arith.constant 0 : index
    %c0_139 = arith.constant 0 : index
    %557 = arith.index_cast %556 : i32 to index
    %c0_140 = arith.constant 0 : index
    %558 = vector.load %arg6[%c0_138, %c0_139, %557, %c0_140] : memref<1x1x152x4xf32, #tpu.memory_space<vmem>>, vector<1x1x8x4xf32>
    %559 = vector.shape_cast %558 : vector<1x1x8x4xf32> to vector<8x4xf32>
    %560 = vector.extract_strided_slice %559 {offsets = [0, 0], sizes = [8, 1], strides = [1, 1]} : vector<8x4xf32> to vector<8x1xf32>
    %561 = vector.extract_strided_slice %559 {offsets = [0, 1], sizes = [8, 1], strides = [1, 1]} : vector<8x4xf32> to vector<8x1xf32>
    %562 = vector.extract_strided_slice %559 {offsets = [0, 2], sizes = [8, 1], strides = [1, 1]} : vector<8x4xf32> to vector<8x1xf32>
    %563 = vector.extract_strided_slice %559 {offsets = [0, 3], sizes = [8, 1], strides = [1, 1]} : vector<8x4xf32> to vector<8x1xf32>
    %cst_141 = arith.constant 5.000000e-01 : f32
    %564 = vector.broadcast %cst_141 : f32 to vector<8x1xf32>
    %565 = arith.mulf %562, %564 : vector<8x1xf32>
    %566 = arith.subf %560, %565 : vector<8x1xf32>
    %cst_142 = arith.constant 5.000000e-01 : f32
    %567 = vector.broadcast %cst_142 : f32 to vector<8x1xf32>
    %568 = arith.mulf %563, %567 : vector<8x1xf32>
    %569 = arith.subf %561, %568 : vector<8x1xf32>
    %cst_143 = arith.constant 5.000000e-01 : f32
    %570 = vector.broadcast %cst_143 : f32 to vector<8x1xf32>
    %571 = arith.mulf %562, %570 : vector<8x1xf32>
    %572 = arith.addf %560, %571 : vector<8x1xf32>
    %cst_144 = arith.constant 5.000000e-01 : f32
    %573 = vector.broadcast %cst_144 : f32 to vector<8x1xf32>
    %574 = arith.mulf %563, %573 : vector<8x1xf32>
    %575 = arith.addf %561, %574 : vector<8x1xf32>
    %576 = vector.broadcast %41 : vector<1x256xf32> to vector<8x256xf32>
    %577 = vector.broadcast %572 : vector<8x1xf32> to vector<8x256xf32>
    %578 = arith.minimumf %576, %577 : vector<8x256xf32>
    %579 = vector.broadcast %35 : vector<1x256xf32> to vector<8x256xf32>
    %580 = vector.broadcast %566 : vector<8x1xf32> to vector<8x256xf32>
    %581 = arith.maximumf %579, %580 : vector<8x256xf32>
    %582 = arith.subf %578, %581 : vector<8x256xf32>
    %cst_145 = arith.constant 0.000000e+00 : f32
    %583 = vector.broadcast %cst_145 : f32 to vector<8x256xf32>
    %584 = arith.maximumf %582, %583 : vector<8x256xf32>
    %585 = vector.broadcast %44 : vector<1x256xf32> to vector<8x256xf32>
    %586 = vector.broadcast %575 : vector<8x1xf32> to vector<8x256xf32>
    %587 = arith.minimumf %585, %586 : vector<8x256xf32>
    %588 = vector.broadcast %38 : vector<1x256xf32> to vector<8x256xf32>
    %589 = vector.broadcast %569 : vector<8x1xf32> to vector<8x256xf32>
    %590 = arith.maximumf %588, %589 : vector<8x256xf32>
    %591 = arith.subf %587, %590 : vector<8x256xf32>
    %cst_146 = arith.constant 0.000000e+00 : f32
    %592 = vector.broadcast %cst_146 : f32 to vector<8x256xf32>
    %593 = arith.maximumf %591, %592 : vector<8x256xf32>
    %594 = arith.mulf %584, %593 : vector<8x256xf32>
    %595 = arith.mulf %562, %563 : vector<8x1xf32>
    %596 = vector.broadcast %104 : vector<1x256xf32> to vector<8x256xf32>
    %597 = vector.broadcast %595 : vector<8x1xf32> to vector<8x256xf32>
    %598 = arith.addf %596, %597 : vector<8x256xf32>
    %599 = arith.subf %598, %594 : vector<8x256xf32>
    %cst_147 = arith.constant 5.000000e-01 : f32
    %600 = vector.broadcast %cst_147 : f32 to vector<8x256xf32>
    %601 = arith.mulf %600, %599 : vector<8x256xf32>
    %602 = arith.subf %594, %601 : vector<8x256xf32>
    %cst_148 = arith.constant dense<0xFF800000> : vector<256xf32>
    %603 = vector.multi_reduction <maximumf>, %602, %cst_148 [0] : vector<8x256xf32> to vector<256xf32>
    %604 = vector.shape_cast %603 : vector<256xf32> to vector<1x256xf32>
    %605 = arith.maximumf %555, %604 : vector<1x256xf32>
    %c10_i32 = arith.constant 10 : i32
    %c8_i32_149 = arith.constant 8 : i32
    %606 = arith.muli %c10_i32, %c8_i32_149 : i32
    %c0_150 = arith.constant 0 : index
    %c0_151 = arith.constant 0 : index
    %607 = arith.index_cast %606 : i32 to index
    %c0_152 = arith.constant 0 : index
    %608 = vector.load %arg6[%c0_150, %c0_151, %607, %c0_152] : memref<1x1x152x4xf32, #tpu.memory_space<vmem>>, vector<1x1x8x4xf32>
    %609 = vector.shape_cast %608 : vector<1x1x8x4xf32> to vector<8x4xf32>
    %610 = vector.extract_strided_slice %609 {offsets = [0, 0], sizes = [8, 1], strides = [1, 1]} : vector<8x4xf32> to vector<8x1xf32>
    %611 = vector.extract_strided_slice %609 {offsets = [0, 1], sizes = [8, 1], strides = [1, 1]} : vector<8x4xf32> to vector<8x1xf32>
    %612 = vector.extract_strided_slice %609 {offsets = [0, 2], sizes = [8, 1], strides = [1, 1]} : vector<8x4xf32> to vector<8x1xf32>
    %613 = vector.extract_strided_slice %609 {offsets = [0, 3], sizes = [8, 1], strides = [1, 1]} : vector<8x4xf32> to vector<8x1xf32>
    %cst_153 = arith.constant 5.000000e-01 : f32
    %614 = vector.broadcast %cst_153 : f32 to vector<8x1xf32>
    %615 = arith.mulf %612, %614 : vector<8x1xf32>
    %616 = arith.subf %610, %615 : vector<8x1xf32>
    %cst_154 = arith.constant 5.000000e-01 : f32
    %617 = vector.broadcast %cst_154 : f32 to vector<8x1xf32>
    %618 = arith.mulf %613, %617 : vector<8x1xf32>
    %619 = arith.subf %611, %618 : vector<8x1xf32>
    %cst_155 = arith.constant 5.000000e-01 : f32
    %620 = vector.broadcast %cst_155 : f32 to vector<8x1xf32>
    %621 = arith.mulf %612, %620 : vector<8x1xf32>
    %622 = arith.addf %610, %621 : vector<8x1xf32>
    %cst_156 = arith.constant 5.000000e-01 : f32
    %623 = vector.broadcast %cst_156 : f32 to vector<8x1xf32>
    %624 = arith.mulf %613, %623 : vector<8x1xf32>
    %625 = arith.addf %611, %624 : vector<8x1xf32>
    %626 = vector.broadcast %41 : vector<1x256xf32> to vector<8x256xf32>
    %627 = vector.broadcast %622 : vector<8x1xf32> to vector<8x256xf32>
    %628 = arith.minimumf %626, %627 : vector<8x256xf32>
    %629 = vector.broadcast %35 : vector<1x256xf32> to vector<8x256xf32>
    %630 = vector.broadcast %616 : vector<8x1xf32> to vector<8x256xf32>
    %631 = arith.maximumf %629, %630 : vector<8x256xf32>
    %632 = arith.subf %628, %631 : vector<8x256xf32>
    %cst_157 = arith.constant 0.000000e+00 : f32
    %633 = vector.broadcast %cst_157 : f32 to vector<8x256xf32>
    %634 = arith.maximumf %632, %633 : vector<8x256xf32>
    %635 = vector.broadcast %44 : vector<1x256xf32> to vector<8x256xf32>
    %636 = vector.broadcast %625 : vector<8x1xf32> to vector<8x256xf32>
    %637 = arith.minimumf %635, %636 : vector<8x256xf32>
    %638 = vector.broadcast %38 : vector<1x256xf32> to vector<8x256xf32>
    %639 = vector.broadcast %619 : vector<8x1xf32> to vector<8x256xf32>
    %640 = arith.maximumf %638, %639 : vector<8x256xf32>
    %641 = arith.subf %637, %640 : vector<8x256xf32>
    %cst_158 = arith.constant 0.000000e+00 : f32
    %642 = vector.broadcast %cst_158 : f32 to vector<8x256xf32>
    %643 = arith.maximumf %641, %642 : vector<8x256xf32>
    %644 = arith.mulf %634, %643 : vector<8x256xf32>
    %645 = arith.mulf %612, %613 : vector<8x1xf32>
    %646 = vector.broadcast %104 : vector<1x256xf32> to vector<8x256xf32>
    %647 = vector.broadcast %645 : vector<8x1xf32> to vector<8x256xf32>
    %648 = arith.addf %646, %647 : vector<8x256xf32>
    %649 = arith.subf %648, %644 : vector<8x256xf32>
    %cst_159 = arith.constant 5.000000e-01 : f32
    %650 = vector.broadcast %cst_159 : f32 to vector<8x256xf32>
    %651 = arith.mulf %650, %649 : vector<8x256xf32>
    %652 = arith.subf %644, %651 : vector<8x256xf32>
    %cst_160 = arith.constant dense<0xFF800000> : vector<256xf32>
    %653 = vector.multi_reduction <maximumf>, %652, %cst_160 [0] : vector<8x256xf32> to vector<256xf32>
    %654 = vector.shape_cast %653 : vector<256xf32> to vector<1x256xf32>
    %655 = arith.maximumf %605, %654 : vector<1x256xf32>
    %c11_i32 = arith.constant 11 : i32
    %c8_i32_161 = arith.constant 8 : i32
    %656 = arith.muli %c11_i32, %c8_i32_161 : i32
    %c0_162 = arith.constant 0 : index
    %c0_163 = arith.constant 0 : index
    %657 = arith.index_cast %656 : i32 to index
    %c0_164 = arith.constant 0 : index
    %658 = vector.load %arg6[%c0_162, %c0_163, %657, %c0_164] : memref<1x1x152x4xf32, #tpu.memory_space<vmem>>, vector<1x1x8x4xf32>
    %659 = vector.shape_cast %658 : vector<1x1x8x4xf32> to vector<8x4xf32>
    %660 = vector.extract_strided_slice %659 {offsets = [0, 0], sizes = [8, 1], strides = [1, 1]} : vector<8x4xf32> to vector<8x1xf32>
    %661 = vector.extract_strided_slice %659 {offsets = [0, 1], sizes = [8, 1], strides = [1, 1]} : vector<8x4xf32> to vector<8x1xf32>
    %662 = vector.extract_strided_slice %659 {offsets = [0, 2], sizes = [8, 1], strides = [1, 1]} : vector<8x4xf32> to vector<8x1xf32>
    %663 = vector.extract_strided_slice %659 {offsets = [0, 3], sizes = [8, 1], strides = [1, 1]} : vector<8x4xf32> to vector<8x1xf32>
    %cst_165 = arith.constant 5.000000e-01 : f32
    %664 = vector.broadcast %cst_165 : f32 to vector<8x1xf32>
    %665 = arith.mulf %662, %664 : vector<8x1xf32>
    %666 = arith.subf %660, %665 : vector<8x1xf32>
    %cst_166 = arith.constant 5.000000e-01 : f32
    %667 = vector.broadcast %cst_166 : f32 to vector<8x1xf32>
    %668 = arith.mulf %663, %667 : vector<8x1xf32>
    %669 = arith.subf %661, %668 : vector<8x1xf32>
    %cst_167 = arith.constant 5.000000e-01 : f32
    %670 = vector.broadcast %cst_167 : f32 to vector<8x1xf32>
    %671 = arith.mulf %662, %670 : vector<8x1xf32>
    %672 = arith.addf %660, %671 : vector<8x1xf32>
    %cst_168 = arith.constant 5.000000e-01 : f32
    %673 = vector.broadcast %cst_168 : f32 to vector<8x1xf32>
    %674 = arith.mulf %663, %673 : vector<8x1xf32>
    %675 = arith.addf %661, %674 : vector<8x1xf32>
    %676 = vector.broadcast %41 : vector<1x256xf32> to vector<8x256xf32>
    %677 = vector.broadcast %672 : vector<8x1xf32> to vector<8x256xf32>
    %678 = arith.minimumf %676, %677 : vector<8x256xf32>
    %679 = vector.broadcast %35 : vector<1x256xf32> to vector<8x256xf32>
    %680 = vector.broadcast %666 : vector<8x1xf32> to vector<8x256xf32>
    %681 = arith.maximumf %679, %680 : vector<8x256xf32>
    %682 = arith.subf %678, %681 : vector<8x256xf32>
    %cst_169 = arith.constant 0.000000e+00 : f32
    %683 = vector.broadcast %cst_169 : f32 to vector<8x256xf32>
    %684 = arith.maximumf %682, %683 : vector<8x256xf32>
    %685 = vector.broadcast %44 : vector<1x256xf32> to vector<8x256xf32>
    %686 = vector.broadcast %675 : vector<8x1xf32> to vector<8x256xf32>
    %687 = arith.minimumf %685, %686 : vector<8x256xf32>
    %688 = vector.broadcast %38 : vector<1x256xf32> to vector<8x256xf32>
    %689 = vector.broadcast %669 : vector<8x1xf32> to vector<8x256xf32>
    %690 = arith.maximumf %688, %689 : vector<8x256xf32>
    %691 = arith.subf %687, %690 : vector<8x256xf32>
    %cst_170 = arith.constant 0.000000e+00 : f32
    %692 = vector.broadcast %cst_170 : f32 to vector<8x256xf32>
    %693 = arith.maximumf %691, %692 : vector<8x256xf32>
    %694 = arith.mulf %684, %693 : vector<8x256xf32>
    %695 = arith.mulf %662, %663 : vector<8x1xf32>
    %696 = vector.broadcast %104 : vector<1x256xf32> to vector<8x256xf32>
    %697 = vector.broadcast %695 : vector<8x1xf32> to vector<8x256xf32>
    %698 = arith.addf %696, %697 : vector<8x256xf32>
    %699 = arith.subf %698, %694 : vector<8x256xf32>
    %cst_171 = arith.constant 5.000000e-01 : f32
    %700 = vector.broadcast %cst_171 : f32 to vector<8x256xf32>
    %701 = arith.mulf %700, %699 : vector<8x256xf32>
    %702 = arith.subf %694, %701 : vector<8x256xf32>
    %cst_172 = arith.constant dense<0xFF800000> : vector<256xf32>
    %703 = vector.multi_reduction <maximumf>, %702, %cst_172 [0] : vector<8x256xf32> to vector<256xf32>
    %704 = vector.shape_cast %703 : vector<256xf32> to vector<1x256xf32>
    %705 = arith.maximumf %655, %704 : vector<1x256xf32>
    %c12_i32 = arith.constant 12 : i32
    %c8_i32_173 = arith.constant 8 : i32
    %706 = arith.muli %c12_i32, %c8_i32_173 : i32
    %c0_174 = arith.constant 0 : index
    %c0_175 = arith.constant 0 : index
    %707 = arith.index_cast %706 : i32 to index
    %c0_176 = arith.constant 0 : index
    %708 = vector.load %arg6[%c0_174, %c0_175, %707, %c0_176] : memref<1x1x152x4xf32, #tpu.memory_space<vmem>>, vector<1x1x8x4xf32>
    %709 = vector.shape_cast %708 : vector<1x1x8x4xf32> to vector<8x4xf32>
    %710 = vector.extract_strided_slice %709 {offsets = [0, 0], sizes = [8, 1], strides = [1, 1]} : vector<8x4xf32> to vector<8x1xf32>
    %711 = vector.extract_strided_slice %709 {offsets = [0, 1], sizes = [8, 1], strides = [1, 1]} : vector<8x4xf32> to vector<8x1xf32>
    %712 = vector.extract_strided_slice %709 {offsets = [0, 2], sizes = [8, 1], strides = [1, 1]} : vector<8x4xf32> to vector<8x1xf32>
    %713 = vector.extract_strided_slice %709 {offsets = [0, 3], sizes = [8, 1], strides = [1, 1]} : vector<8x4xf32> to vector<8x1xf32>
    %cst_177 = arith.constant 5.000000e-01 : f32
    %714 = vector.broadcast %cst_177 : f32 to vector<8x1xf32>
    %715 = arith.mulf %712, %714 : vector<8x1xf32>
    %716 = arith.subf %710, %715 : vector<8x1xf32>
    %cst_178 = arith.constant 5.000000e-01 : f32
    %717 = vector.broadcast %cst_178 : f32 to vector<8x1xf32>
    %718 = arith.mulf %713, %717 : vector<8x1xf32>
    %719 = arith.subf %711, %718 : vector<8x1xf32>
    %cst_179 = arith.constant 5.000000e-01 : f32
    %720 = vector.broadcast %cst_179 : f32 to vector<8x1xf32>
    %721 = arith.mulf %712, %720 : vector<8x1xf32>
    %722 = arith.addf %710, %721 : vector<8x1xf32>
    %cst_180 = arith.constant 5.000000e-01 : f32
    %723 = vector.broadcast %cst_180 : f32 to vector<8x1xf32>
    %724 = arith.mulf %713, %723 : vector<8x1xf32>
    %725 = arith.addf %711, %724 : vector<8x1xf32>
    %726 = vector.broadcast %41 : vector<1x256xf32> to vector<8x256xf32>
    %727 = vector.broadcast %722 : vector<8x1xf32> to vector<8x256xf32>
    %728 = arith.minimumf %726, %727 : vector<8x256xf32>
    %729 = vector.broadcast %35 : vector<1x256xf32> to vector<8x256xf32>
    %730 = vector.broadcast %716 : vector<8x1xf32> to vector<8x256xf32>
    %731 = arith.maximumf %729, %730 : vector<8x256xf32>
    %732 = arith.subf %728, %731 : vector<8x256xf32>
    %cst_181 = arith.constant 0.000000e+00 : f32
    %733 = vector.broadcast %cst_181 : f32 to vector<8x256xf32>
    %734 = arith.maximumf %732, %733 : vector<8x256xf32>
    %735 = vector.broadcast %44 : vector<1x256xf32> to vector<8x256xf32>
    %736 = vector.broadcast %725 : vector<8x1xf32> to vector<8x256xf32>
    %737 = arith.minimumf %735, %736 : vector<8x256xf32>
    %738 = vector.broadcast %38 : vector<1x256xf32> to vector<8x256xf32>
    %739 = vector.broadcast %719 : vector<8x1xf32> to vector<8x256xf32>
    %740 = arith.maximumf %738, %739 : vector<8x256xf32>
    %741 = arith.subf %737, %740 : vector<8x256xf32>
    %cst_182 = arith.constant 0.000000e+00 : f32
    %742 = vector.broadcast %cst_182 : f32 to vector<8x256xf32>
    %743 = arith.maximumf %741, %742 : vector<8x256xf32>
    %744 = arith.mulf %734, %743 : vector<8x256xf32>
    %745 = arith.mulf %712, %713 : vector<8x1xf32>
    %746 = vector.broadcast %104 : vector<1x256xf32> to vector<8x256xf32>
    %747 = vector.broadcast %745 : vector<8x1xf32> to vector<8x256xf32>
    %748 = arith.addf %746, %747 : vector<8x256xf32>
    %749 = arith.subf %748, %744 : vector<8x256xf32>
    %cst_183 = arith.constant 5.000000e-01 : f32
    %750 = vector.broadcast %cst_183 : f32 to vector<8x256xf32>
    %751 = arith.mulf %750, %749 : vector<8x256xf32>
    %752 = arith.subf %744, %751 : vector<8x256xf32>
    %cst_184 = arith.constant dense<0xFF800000> : vector<256xf32>
    %753 = vector.multi_reduction <maximumf>, %752, %cst_184 [0] : vector<8x256xf32> to vector<256xf32>
    %754 = vector.shape_cast %753 : vector<256xf32> to vector<1x256xf32>
    %755 = arith.maximumf %705, %754 : vector<1x256xf32>
    %c13_i32 = arith.constant 13 : i32
    %c8_i32_185 = arith.constant 8 : i32
    %756 = arith.muli %c13_i32, %c8_i32_185 : i32
    %c0_186 = arith.constant 0 : index
    %c0_187 = arith.constant 0 : index
    %757 = arith.index_cast %756 : i32 to index
    %c0_188 = arith.constant 0 : index
    %758 = vector.load %arg6[%c0_186, %c0_187, %757, %c0_188] : memref<1x1x152x4xf32, #tpu.memory_space<vmem>>, vector<1x1x8x4xf32>
    %759 = vector.shape_cast %758 : vector<1x1x8x4xf32> to vector<8x4xf32>
    %760 = vector.extract_strided_slice %759 {offsets = [0, 0], sizes = [8, 1], strides = [1, 1]} : vector<8x4xf32> to vector<8x1xf32>
    %761 = vector.extract_strided_slice %759 {offsets = [0, 1], sizes = [8, 1], strides = [1, 1]} : vector<8x4xf32> to vector<8x1xf32>
    %762 = vector.extract_strided_slice %759 {offsets = [0, 2], sizes = [8, 1], strides = [1, 1]} : vector<8x4xf32> to vector<8x1xf32>
    %763 = vector.extract_strided_slice %759 {offsets = [0, 3], sizes = [8, 1], strides = [1, 1]} : vector<8x4xf32> to vector<8x1xf32>
    %cst_189 = arith.constant 5.000000e-01 : f32
    %764 = vector.broadcast %cst_189 : f32 to vector<8x1xf32>
    %765 = arith.mulf %762, %764 : vector<8x1xf32>
    %766 = arith.subf %760, %765 : vector<8x1xf32>
    %cst_190 = arith.constant 5.000000e-01 : f32
    %767 = vector.broadcast %cst_190 : f32 to vector<8x1xf32>
    %768 = arith.mulf %763, %767 : vector<8x1xf32>
    %769 = arith.subf %761, %768 : vector<8x1xf32>
    %cst_191 = arith.constant 5.000000e-01 : f32
    %770 = vector.broadcast %cst_191 : f32 to vector<8x1xf32>
    %771 = arith.mulf %762, %770 : vector<8x1xf32>
    %772 = arith.addf %760, %771 : vector<8x1xf32>
    %cst_192 = arith.constant 5.000000e-01 : f32
    %773 = vector.broadcast %cst_192 : f32 to vector<8x1xf32>
    %774 = arith.mulf %763, %773 : vector<8x1xf32>
    %775 = arith.addf %761, %774 : vector<8x1xf32>
    %776 = vector.broadcast %41 : vector<1x256xf32> to vector<8x256xf32>
    %777 = vector.broadcast %772 : vector<8x1xf32> to vector<8x256xf32>
    %778 = arith.minimumf %776, %777 : vector<8x256xf32>
    %779 = vector.broadcast %35 : vector<1x256xf32> to vector<8x256xf32>
    %780 = vector.broadcast %766 : vector<8x1xf32> to vector<8x256xf32>
    %781 = arith.maximumf %779, %780 : vector<8x256xf32>
    %782 = arith.subf %778, %781 : vector<8x256xf32>
    %cst_193 = arith.constant 0.000000e+00 : f32
    %783 = vector.broadcast %cst_193 : f32 to vector<8x256xf32>
    %784 = arith.maximumf %782, %783 : vector<8x256xf32>
    %785 = vector.broadcast %44 : vector<1x256xf32> to vector<8x256xf32>
    %786 = vector.broadcast %775 : vector<8x1xf32> to vector<8x256xf32>
    %787 = arith.minimumf %785, %786 : vector<8x256xf32>
    %788 = vector.broadcast %38 : vector<1x256xf32> to vector<8x256xf32>
    %789 = vector.broadcast %769 : vector<8x1xf32> to vector<8x256xf32>
    %790 = arith.maximumf %788, %789 : vector<8x256xf32>
    %791 = arith.subf %787, %790 : vector<8x256xf32>
    %cst_194 = arith.constant 0.000000e+00 : f32
    %792 = vector.broadcast %cst_194 : f32 to vector<8x256xf32>
    %793 = arith.maximumf %791, %792 : vector<8x256xf32>
    %794 = arith.mulf %784, %793 : vector<8x256xf32>
    %795 = arith.mulf %762, %763 : vector<8x1xf32>
    %796 = vector.broadcast %104 : vector<1x256xf32> to vector<8x256xf32>
    %797 = vector.broadcast %795 : vector<8x1xf32> to vector<8x256xf32>
    %798 = arith.addf %796, %797 : vector<8x256xf32>
    %799 = arith.subf %798, %794 : vector<8x256xf32>
    %cst_195 = arith.constant 5.000000e-01 : f32
    %800 = vector.broadcast %cst_195 : f32 to vector<8x256xf32>
    %801 = arith.mulf %800, %799 : vector<8x256xf32>
    %802 = arith.subf %794, %801 : vector<8x256xf32>
    %cst_196 = arith.constant dense<0xFF800000> : vector<256xf32>
    %803 = vector.multi_reduction <maximumf>, %802, %cst_196 [0] : vector<8x256xf32> to vector<256xf32>
    %804 = vector.shape_cast %803 : vector<256xf32> to vector<1x256xf32>
    %805 = arith.maximumf %755, %804 : vector<1x256xf32>
    %c14_i32 = arith.constant 14 : i32
    %c8_i32_197 = arith.constant 8 : i32
    %806 = arith.muli %c14_i32, %c8_i32_197 : i32
    %c0_198 = arith.constant 0 : index
    %c0_199 = arith.constant 0 : index
    %807 = arith.index_cast %806 : i32 to index
    %c0_200 = arith.constant 0 : index
    %808 = vector.load %arg6[%c0_198, %c0_199, %807, %c0_200] : memref<1x1x152x4xf32, #tpu.memory_space<vmem>>, vector<1x1x8x4xf32>
    %809 = vector.shape_cast %808 : vector<1x1x8x4xf32> to vector<8x4xf32>
    %810 = vector.extract_strided_slice %809 {offsets = [0, 0], sizes = [8, 1], strides = [1, 1]} : vector<8x4xf32> to vector<8x1xf32>
    %811 = vector.extract_strided_slice %809 {offsets = [0, 1], sizes = [8, 1], strides = [1, 1]} : vector<8x4xf32> to vector<8x1xf32>
    %812 = vector.extract_strided_slice %809 {offsets = [0, 2], sizes = [8, 1], strides = [1, 1]} : vector<8x4xf32> to vector<8x1xf32>
    %813 = vector.extract_strided_slice %809 {offsets = [0, 3], sizes = [8, 1], strides = [1, 1]} : vector<8x4xf32> to vector<8x1xf32>
    %cst_201 = arith.constant 5.000000e-01 : f32
    %814 = vector.broadcast %cst_201 : f32 to vector<8x1xf32>
    %815 = arith.mulf %812, %814 : vector<8x1xf32>
    %816 = arith.subf %810, %815 : vector<8x1xf32>
    %cst_202 = arith.constant 5.000000e-01 : f32
    %817 = vector.broadcast %cst_202 : f32 to vector<8x1xf32>
    %818 = arith.mulf %813, %817 : vector<8x1xf32>
    %819 = arith.subf %811, %818 : vector<8x1xf32>
    %cst_203 = arith.constant 5.000000e-01 : f32
    %820 = vector.broadcast %cst_203 : f32 to vector<8x1xf32>
    %821 = arith.mulf %812, %820 : vector<8x1xf32>
    %822 = arith.addf %810, %821 : vector<8x1xf32>
    %cst_204 = arith.constant 5.000000e-01 : f32
    %823 = vector.broadcast %cst_204 : f32 to vector<8x1xf32>
    %824 = arith.mulf %813, %823 : vector<8x1xf32>
    %825 = arith.addf %811, %824 : vector<8x1xf32>
    %826 = vector.broadcast %41 : vector<1x256xf32> to vector<8x256xf32>
    %827 = vector.broadcast %822 : vector<8x1xf32> to vector<8x256xf32>
    %828 = arith.minimumf %826, %827 : vector<8x256xf32>
    %829 = vector.broadcast %35 : vector<1x256xf32> to vector<8x256xf32>
    %830 = vector.broadcast %816 : vector<8x1xf32> to vector<8x256xf32>
    %831 = arith.maximumf %829, %830 : vector<8x256xf32>
    %832 = arith.subf %828, %831 : vector<8x256xf32>
    %cst_205 = arith.constant 0.000000e+00 : f32
    %833 = vector.broadcast %cst_205 : f32 to vector<8x256xf32>
    %834 = arith.maximumf %832, %833 : vector<8x256xf32>
    %835 = vector.broadcast %44 : vector<1x256xf32> to vector<8x256xf32>
    %836 = vector.broadcast %825 : vector<8x1xf32> to vector<8x256xf32>
    %837 = arith.minimumf %835, %836 : vector<8x256xf32>
    %838 = vector.broadcast %38 : vector<1x256xf32> to vector<8x256xf32>
    %839 = vector.broadcast %819 : vector<8x1xf32> to vector<8x256xf32>
    %840 = arith.maximumf %838, %839 : vector<8x256xf32>
    %841 = arith.subf %837, %840 : vector<8x256xf32>
    %cst_206 = arith.constant 0.000000e+00 : f32
    %842 = vector.broadcast %cst_206 : f32 to vector<8x256xf32>
    %843 = arith.maximumf %841, %842 : vector<8x256xf32>
    %844 = arith.mulf %834, %843 : vector<8x256xf32>
    %845 = arith.mulf %812, %813 : vector<8x1xf32>
    %846 = vector.broadcast %104 : vector<1x256xf32> to vector<8x256xf32>
    %847 = vector.broadcast %845 : vector<8x1xf32> to vector<8x256xf32>
    %848 = arith.addf %846, %847 : vector<8x256xf32>
    %849 = arith.subf %848, %844 : vector<8x256xf32>
    %cst_207 = arith.constant 5.000000e-01 : f32
    %850 = vector.broadcast %cst_207 : f32 to vector<8x256xf32>
    %851 = arith.mulf %850, %849 : vector<8x256xf32>
    %852 = arith.subf %844, %851 : vector<8x256xf32>
    %cst_208 = arith.constant dense<0xFF800000> : vector<256xf32>
    %853 = vector.multi_reduction <maximumf>, %852, %cst_208 [0] : vector<8x256xf32> to vector<256xf32>
    %854 = vector.shape_cast %853 : vector<256xf32> to vector<1x256xf32>
    %855 = arith.maximumf %805, %854 : vector<1x256xf32>
    %c15_i32 = arith.constant 15 : i32
    %c8_i32_209 = arith.constant 8 : i32
    %856 = arith.muli %c15_i32, %c8_i32_209 : i32
    %c0_210 = arith.constant 0 : index
    %c0_211 = arith.constant 0 : index
    %857 = arith.index_cast %856 : i32 to index
    %c0_212 = arith.constant 0 : index
    %858 = vector.load %arg6[%c0_210, %c0_211, %857, %c0_212] : memref<1x1x152x4xf32, #tpu.memory_space<vmem>>, vector<1x1x8x4xf32>
    %859 = vector.shape_cast %858 : vector<1x1x8x4xf32> to vector<8x4xf32>
    %860 = vector.extract_strided_slice %859 {offsets = [0, 0], sizes = [8, 1], strides = [1, 1]} : vector<8x4xf32> to vector<8x1xf32>
    %861 = vector.extract_strided_slice %859 {offsets = [0, 1], sizes = [8, 1], strides = [1, 1]} : vector<8x4xf32> to vector<8x1xf32>
    %862 = vector.extract_strided_slice %859 {offsets = [0, 2], sizes = [8, 1], strides = [1, 1]} : vector<8x4xf32> to vector<8x1xf32>
    %863 = vector.extract_strided_slice %859 {offsets = [0, 3], sizes = [8, 1], strides = [1, 1]} : vector<8x4xf32> to vector<8x1xf32>
    %cst_213 = arith.constant 5.000000e-01 : f32
    %864 = vector.broadcast %cst_213 : f32 to vector<8x1xf32>
    %865 = arith.mulf %862, %864 : vector<8x1xf32>
    %866 = arith.subf %860, %865 : vector<8x1xf32>
    %cst_214 = arith.constant 5.000000e-01 : f32
    %867 = vector.broadcast %cst_214 : f32 to vector<8x1xf32>
    %868 = arith.mulf %863, %867 : vector<8x1xf32>
    %869 = arith.subf %861, %868 : vector<8x1xf32>
    %cst_215 = arith.constant 5.000000e-01 : f32
    %870 = vector.broadcast %cst_215 : f32 to vector<8x1xf32>
    %871 = arith.mulf %862, %870 : vector<8x1xf32>
    %872 = arith.addf %860, %871 : vector<8x1xf32>
    %cst_216 = arith.constant 5.000000e-01 : f32
    %873 = vector.broadcast %cst_216 : f32 to vector<8x1xf32>
    %874 = arith.mulf %863, %873 : vector<8x1xf32>
    %875 = arith.addf %861, %874 : vector<8x1xf32>
    %876 = vector.broadcast %41 : vector<1x256xf32> to vector<8x256xf32>
    %877 = vector.broadcast %872 : vector<8x1xf32> to vector<8x256xf32>
    %878 = arith.minimumf %876, %877 : vector<8x256xf32>
    %879 = vector.broadcast %35 : vector<1x256xf32> to vector<8x256xf32>
    %880 = vector.broadcast %866 : vector<8x1xf32> to vector<8x256xf32>
    %881 = arith.maximumf %879, %880 : vector<8x256xf32>
    %882 = arith.subf %878, %881 : vector<8x256xf32>
    %cst_217 = arith.constant 0.000000e+00 : f32
    %883 = vector.broadcast %cst_217 : f32 to vector<8x256xf32>
    %884 = arith.maximumf %882, %883 : vector<8x256xf32>
    %885 = vector.broadcast %44 : vector<1x256xf32> to vector<8x256xf32>
    %886 = vector.broadcast %875 : vector<8x1xf32> to vector<8x256xf32>
    %887 = arith.minimumf %885, %886 : vector<8x256xf32>
    %888 = vector.broadcast %38 : vector<1x256xf32> to vector<8x256xf32>
    %889 = vector.broadcast %869 : vector<8x1xf32> to vector<8x256xf32>
    %890 = arith.maximumf %888, %889 : vector<8x256xf32>
    %891 = arith.subf %887, %890 : vector<8x256xf32>
    %cst_218 = arith.constant 0.000000e+00 : f32
    %892 = vector.broadcast %cst_218 : f32 to vector<8x256xf32>
    %893 = arith.maximumf %891, %892 : vector<8x256xf32>
    %894 = arith.mulf %884, %893 : vector<8x256xf32>
    %895 = arith.mulf %862, %863 : vector<8x1xf32>
    %896 = vector.broadcast %104 : vector<1x256xf32> to vector<8x256xf32>
    %897 = vector.broadcast %895 : vector<8x1xf32> to vector<8x256xf32>
    %898 = arith.addf %896, %897 : vector<8x256xf32>
    %899 = arith.subf %898, %894 : vector<8x256xf32>
    %cst_219 = arith.constant 5.000000e-01 : f32
    %900 = vector.broadcast %cst_219 : f32 to vector<8x256xf32>
    %901 = arith.mulf %900, %899 : vector<8x256xf32>
    %902 = arith.subf %894, %901 : vector<8x256xf32>
    %cst_220 = arith.constant dense<0xFF800000> : vector<256xf32>
    %903 = vector.multi_reduction <maximumf>, %902, %cst_220 [0] : vector<8x256xf32> to vector<256xf32>
    %904 = vector.shape_cast %903 : vector<256xf32> to vector<1x256xf32>
    %905 = arith.maximumf %855, %904 : vector<1x256xf32>
    %c16_i32 = arith.constant 16 : i32
    %c8_i32_221 = arith.constant 8 : i32
    %906 = arith.muli %c16_i32, %c8_i32_221 : i32
    %c0_222 = arith.constant 0 : index
    %c0_223 = arith.constant 0 : index
    %907 = arith.index_cast %906 : i32 to index
    %c0_224 = arith.constant 0 : index
    %908 = vector.load %arg6[%c0_222, %c0_223, %907, %c0_224] : memref<1x1x152x4xf32, #tpu.memory_space<vmem>>, vector<1x1x8x4xf32>
    %909 = vector.shape_cast %908 : vector<1x1x8x4xf32> to vector<8x4xf32>
    %910 = vector.extract_strided_slice %909 {offsets = [0, 0], sizes = [8, 1], strides = [1, 1]} : vector<8x4xf32> to vector<8x1xf32>
    %911 = vector.extract_strided_slice %909 {offsets = [0, 1], sizes = [8, 1], strides = [1, 1]} : vector<8x4xf32> to vector<8x1xf32>
    %912 = vector.extract_strided_slice %909 {offsets = [0, 2], sizes = [8, 1], strides = [1, 1]} : vector<8x4xf32> to vector<8x1xf32>
    %913 = vector.extract_strided_slice %909 {offsets = [0, 3], sizes = [8, 1], strides = [1, 1]} : vector<8x4xf32> to vector<8x1xf32>
    %cst_225 = arith.constant 5.000000e-01 : f32
    %914 = vector.broadcast %cst_225 : f32 to vector<8x1xf32>
    %915 = arith.mulf %912, %914 : vector<8x1xf32>
    %916 = arith.subf %910, %915 : vector<8x1xf32>
    %cst_226 = arith.constant 5.000000e-01 : f32
    %917 = vector.broadcast %cst_226 : f32 to vector<8x1xf32>
    %918 = arith.mulf %913, %917 : vector<8x1xf32>
    %919 = arith.subf %911, %918 : vector<8x1xf32>
    %cst_227 = arith.constant 5.000000e-01 : f32
    %920 = vector.broadcast %cst_227 : f32 to vector<8x1xf32>
    %921 = arith.mulf %912, %920 : vector<8x1xf32>
    %922 = arith.addf %910, %921 : vector<8x1xf32>
    %cst_228 = arith.constant 5.000000e-01 : f32
    %923 = vector.broadcast %cst_228 : f32 to vector<8x1xf32>
    %924 = arith.mulf %913, %923 : vector<8x1xf32>
    %925 = arith.addf %911, %924 : vector<8x1xf32>
    %926 = vector.broadcast %41 : vector<1x256xf32> to vector<8x256xf32>
    %927 = vector.broadcast %922 : vector<8x1xf32> to vector<8x256xf32>
    %928 = arith.minimumf %926, %927 : vector<8x256xf32>
    %929 = vector.broadcast %35 : vector<1x256xf32> to vector<8x256xf32>
    %930 = vector.broadcast %916 : vector<8x1xf32> to vector<8x256xf32>
    %931 = arith.maximumf %929, %930 : vector<8x256xf32>
    %932 = arith.subf %928, %931 : vector<8x256xf32>
    %cst_229 = arith.constant 0.000000e+00 : f32
    %933 = vector.broadcast %cst_229 : f32 to vector<8x256xf32>
    %934 = arith.maximumf %932, %933 : vector<8x256xf32>
    %935 = vector.broadcast %44 : vector<1x256xf32> to vector<8x256xf32>
    %936 = vector.broadcast %925 : vector<8x1xf32> to vector<8x256xf32>
    %937 = arith.minimumf %935, %936 : vector<8x256xf32>
    %938 = vector.broadcast %38 : vector<1x256xf32> to vector<8x256xf32>
    %939 = vector.broadcast %919 : vector<8x1xf32> to vector<8x256xf32>
    %940 = arith.maximumf %938, %939 : vector<8x256xf32>
    %941 = arith.subf %937, %940 : vector<8x256xf32>
    %cst_230 = arith.constant 0.000000e+00 : f32
    %942 = vector.broadcast %cst_230 : f32 to vector<8x256xf32>
    %943 = arith.maximumf %941, %942 : vector<8x256xf32>
    %944 = arith.mulf %934, %943 : vector<8x256xf32>
    %945 = arith.mulf %912, %913 : vector<8x1xf32>
    %946 = vector.broadcast %104 : vector<1x256xf32> to vector<8x256xf32>
    %947 = vector.broadcast %945 : vector<8x1xf32> to vector<8x256xf32>
    %948 = arith.addf %946, %947 : vector<8x256xf32>
    %949 = arith.subf %948, %944 : vector<8x256xf32>
    %cst_231 = arith.constant 5.000000e-01 : f32
    %950 = vector.broadcast %cst_231 : f32 to vector<8x256xf32>
    %951 = arith.mulf %950, %949 : vector<8x256xf32>
    %952 = arith.subf %944, %951 : vector<8x256xf32>
    %cst_232 = arith.constant dense<0xFF800000> : vector<256xf32>
    %953 = vector.multi_reduction <maximumf>, %952, %cst_232 [0] : vector<8x256xf32> to vector<256xf32>
    %954 = vector.shape_cast %953 : vector<256xf32> to vector<1x256xf32>
    %955 = arith.maximumf %905, %954 : vector<1x256xf32>
    %c17_i32 = arith.constant 17 : i32
    %c8_i32_233 = arith.constant 8 : i32
    %956 = arith.muli %c17_i32, %c8_i32_233 : i32
    %c0_234 = arith.constant 0 : index
    %c0_235 = arith.constant 0 : index
    %957 = arith.index_cast %956 : i32 to index
    %c0_236 = arith.constant 0 : index
    %958 = vector.load %arg6[%c0_234, %c0_235, %957, %c0_236] : memref<1x1x152x4xf32, #tpu.memory_space<vmem>>, vector<1x1x8x4xf32>
    %959 = vector.shape_cast %958 : vector<1x1x8x4xf32> to vector<8x4xf32>
    %960 = vector.extract_strided_slice %959 {offsets = [0, 0], sizes = [8, 1], strides = [1, 1]} : vector<8x4xf32> to vector<8x1xf32>
    %961 = vector.extract_strided_slice %959 {offsets = [0, 1], sizes = [8, 1], strides = [1, 1]} : vector<8x4xf32> to vector<8x1xf32>
    %962 = vector.extract_strided_slice %959 {offsets = [0, 2], sizes = [8, 1], strides = [1, 1]} : vector<8x4xf32> to vector<8x1xf32>
    %963 = vector.extract_strided_slice %959 {offsets = [0, 3], sizes = [8, 1], strides = [1, 1]} : vector<8x4xf32> to vector<8x1xf32>
    %cst_237 = arith.constant 5.000000e-01 : f32
    %964 = vector.broadcast %cst_237 : f32 to vector<8x1xf32>
    %965 = arith.mulf %962, %964 : vector<8x1xf32>
    %966 = arith.subf %960, %965 : vector<8x1xf32>
    %cst_238 = arith.constant 5.000000e-01 : f32
    %967 = vector.broadcast %cst_238 : f32 to vector<8x1xf32>
    %968 = arith.mulf %963, %967 : vector<8x1xf32>
    %969 = arith.subf %961, %968 : vector<8x1xf32>
    %cst_239 = arith.constant 5.000000e-01 : f32
    %970 = vector.broadcast %cst_239 : f32 to vector<8x1xf32>
    %971 = arith.mulf %962, %970 : vector<8x1xf32>
    %972 = arith.addf %960, %971 : vector<8x1xf32>
    %cst_240 = arith.constant 5.000000e-01 : f32
    %973 = vector.broadcast %cst_240 : f32 to vector<8x1xf32>
    %974 = arith.mulf %963, %973 : vector<8x1xf32>
    %975 = arith.addf %961, %974 : vector<8x1xf32>
    %976 = vector.broadcast %41 : vector<1x256xf32> to vector<8x256xf32>
    %977 = vector.broadcast %972 : vector<8x1xf32> to vector<8x256xf32>
    %978 = arith.minimumf %976, %977 : vector<8x256xf32>
    %979 = vector.broadcast %35 : vector<1x256xf32> to vector<8x256xf32>
    %980 = vector.broadcast %966 : vector<8x1xf32> to vector<8x256xf32>
    %981 = arith.maximumf %979, %980 : vector<8x256xf32>
    %982 = arith.subf %978, %981 : vector<8x256xf32>
    %cst_241 = arith.constant 0.000000e+00 : f32
    %983 = vector.broadcast %cst_241 : f32 to vector<8x256xf32>
    %984 = arith.maximumf %982, %983 : vector<8x256xf32>
    %985 = vector.broadcast %44 : vector<1x256xf32> to vector<8x256xf32>
    %986 = vector.broadcast %975 : vector<8x1xf32> to vector<8x256xf32>
    %987 = arith.minimumf %985, %986 : vector<8x256xf32>
    %988 = vector.broadcast %38 : vector<1x256xf32> to vector<8x256xf32>
    %989 = vector.broadcast %969 : vector<8x1xf32> to vector<8x256xf32>
    %990 = arith.maximumf %988, %989 : vector<8x256xf32>
    %991 = arith.subf %987, %990 : vector<8x256xf32>
    %cst_242 = arith.constant 0.000000e+00 : f32
    %992 = vector.broadcast %cst_242 : f32 to vector<8x256xf32>
    %993 = arith.maximumf %991, %992 : vector<8x256xf32>
    %994 = arith.mulf %984, %993 : vector<8x256xf32>
    %995 = arith.mulf %962, %963 : vector<8x1xf32>
    %996 = vector.broadcast %104 : vector<1x256xf32> to vector<8x256xf32>
    %997 = vector.broadcast %995 : vector<8x1xf32> to vector<8x256xf32>
    %998 = arith.addf %996, %997 : vector<8x256xf32>
    %999 = arith.subf %998, %994 : vector<8x256xf32>
    %cst_243 = arith.constant 5.000000e-01 : f32
    %1000 = vector.broadcast %cst_243 : f32 to vector<8x256xf32>
    %1001 = arith.mulf %1000, %999 : vector<8x256xf32>
    %1002 = arith.subf %994, %1001 : vector<8x256xf32>
    %cst_244 = arith.constant dense<0xFF800000> : vector<256xf32>
    %1003 = vector.multi_reduction <maximumf>, %1002, %cst_244 [0] : vector<8x256xf32> to vector<256xf32>
    %1004 = vector.shape_cast %1003 : vector<256xf32> to vector<1x256xf32>
    %1005 = arith.maximumf %955, %1004 : vector<1x256xf32>
    %c18_i32 = arith.constant 18 : i32
    %c8_i32_245 = arith.constant 8 : i32
    %1006 = arith.muli %c18_i32, %c8_i32_245 : i32
    %c0_246 = arith.constant 0 : index
    %c0_247 = arith.constant 0 : index
    %1007 = arith.index_cast %1006 : i32 to index
    %c0_248 = arith.constant 0 : index
    %1008 = vector.load %arg6[%c0_246, %c0_247, %1007, %c0_248] : memref<1x1x152x4xf32, #tpu.memory_space<vmem>>, vector<1x1x8x4xf32>
    %1009 = vector.shape_cast %1008 : vector<1x1x8x4xf32> to vector<8x4xf32>
    %1010 = vector.extract_strided_slice %1009 {offsets = [0, 0], sizes = [8, 1], strides = [1, 1]} : vector<8x4xf32> to vector<8x1xf32>
    %1011 = vector.extract_strided_slice %1009 {offsets = [0, 1], sizes = [8, 1], strides = [1, 1]} : vector<8x4xf32> to vector<8x1xf32>
    %1012 = vector.extract_strided_slice %1009 {offsets = [0, 2], sizes = [8, 1], strides = [1, 1]} : vector<8x4xf32> to vector<8x1xf32>
    %1013 = vector.extract_strided_slice %1009 {offsets = [0, 3], sizes = [8, 1], strides = [1, 1]} : vector<8x4xf32> to vector<8x1xf32>
    %cst_249 = arith.constant 5.000000e-01 : f32
    %1014 = vector.broadcast %cst_249 : f32 to vector<8x1xf32>
    %1015 = arith.mulf %1012, %1014 : vector<8x1xf32>
    %1016 = arith.subf %1010, %1015 : vector<8x1xf32>
    %cst_250 = arith.constant 5.000000e-01 : f32
    %1017 = vector.broadcast %cst_250 : f32 to vector<8x1xf32>
    %1018 = arith.mulf %1013, %1017 : vector<8x1xf32>
    %1019 = arith.subf %1011, %1018 : vector<8x1xf32>
    %cst_251 = arith.constant 5.000000e-01 : f32
    %1020 = vector.broadcast %cst_251 : f32 to vector<8x1xf32>
    %1021 = arith.mulf %1012, %1020 : vector<8x1xf32>
    %1022 = arith.addf %1010, %1021 : vector<8x1xf32>
    %cst_252 = arith.constant 5.000000e-01 : f32
    %1023 = vector.broadcast %cst_252 : f32 to vector<8x1xf32>
    %1024 = arith.mulf %1013, %1023 : vector<8x1xf32>
    %1025 = arith.addf %1011, %1024 : vector<8x1xf32>
    %1026 = vector.broadcast %41 : vector<1x256xf32> to vector<8x256xf32>
    %1027 = vector.broadcast %1022 : vector<8x1xf32> to vector<8x256xf32>
    %1028 = arith.minimumf %1026, %1027 : vector<8x256xf32>
    %1029 = vector.broadcast %35 : vector<1x256xf32> to vector<8x256xf32>
    %1030 = vector.broadcast %1016 : vector<8x1xf32> to vector<8x256xf32>
    %1031 = arith.maximumf %1029, %1030 : vector<8x256xf32>
    %1032 = arith.subf %1028, %1031 : vector<8x256xf32>
    %cst_253 = arith.constant 0.000000e+00 : f32
    %1033 = vector.broadcast %cst_253 : f32 to vector<8x256xf32>
    %1034 = arith.maximumf %1032, %1033 : vector<8x256xf32>
    %1035 = vector.broadcast %44 : vector<1x256xf32> to vector<8x256xf32>
    %1036 = vector.broadcast %1025 : vector<8x1xf32> to vector<8x256xf32>
    %1037 = arith.minimumf %1035, %1036 : vector<8x256xf32>
    %1038 = vector.broadcast %38 : vector<1x256xf32> to vector<8x256xf32>
    %1039 = vector.broadcast %1019 : vector<8x1xf32> to vector<8x256xf32>
    %1040 = arith.maximumf %1038, %1039 : vector<8x256xf32>
    %1041 = arith.subf %1037, %1040 : vector<8x256xf32>
    %cst_254 = arith.constant 0.000000e+00 : f32
    %1042 = vector.broadcast %cst_254 : f32 to vector<8x256xf32>
    %1043 = arith.maximumf %1041, %1042 : vector<8x256xf32>
    %1044 = arith.mulf %1034, %1043 : vector<8x256xf32>
    %1045 = arith.mulf %1012, %1013 : vector<8x1xf32>
    %1046 = vector.broadcast %104 : vector<1x256xf32> to vector<8x256xf32>
    %1047 = vector.broadcast %1045 : vector<8x1xf32> to vector<8x256xf32>
    %1048 = arith.addf %1046, %1047 : vector<8x256xf32>
    %1049 = arith.subf %1048, %1044 : vector<8x256xf32>
    %cst_255 = arith.constant 5.000000e-01 : f32
    %1050 = vector.broadcast %cst_255 : f32 to vector<8x256xf32>
    %1051 = arith.mulf %1050, %1049 : vector<8x256xf32>
    %1052 = arith.subf %1044, %1051 : vector<8x256xf32>
    %cst_256 = arith.constant dense<0xFF800000> : vector<256xf32>
    %1053 = vector.multi_reduction <maximumf>, %1052, %cst_256 [0] : vector<8x256xf32> to vector<256xf32>
    %1054 = vector.shape_cast %1053 : vector<256xf32> to vector<1x256xf32>
    %1055 = arith.maximumf %1005, %1054 : vector<1x256xf32>
    %c19_i32 = arith.constant 19 : i32
    %cst_257 = arith.constant 1.000000e+00 : f32
    %1056 = vector.broadcast %cst_257 : f32 to vector<1x256xf32>
    %1057 = arith.subf %1056, %25 : vector<1x256xf32>
    %cst_258 = arith.constant 0.000000e+00 : f32
    %1058 = vector.broadcast %cst_258 : f32 to vector<1x256xf32>
    %1059 = arith.cmpf olt, %1055, %1058 : vector<1x256xf32>
    %1060 = arith.extui %1059 : vector<1x256xi1> to vector<1x256xi32>
    %1061 = arith.sitofp %1060 : vector<1x256xi32> to vector<1x256xf32>
    %1062 = arith.mulf %1057, %1061 : vector<1x256xf32>
    %1063 = math.absf %15 : vector<1x256xf32>
    %cst_259 = arith.constant 0.000000e+00 : f32
    %1064 = vector.broadcast %cst_259 : f32 to vector<1x256xf32>
    %1065 = arith.subf %1064, %1063 : vector<1x256xf32>
    %1066 = math.exp %1065 : vector<1x256xf32>
    %cst_260 = arith.constant 0.000000e+00 : f32
    %1067 = vector.broadcast %cst_260 : f32 to vector<1x256xf32>
    %1068 = arith.maximumf %15, %1067 : vector<1x256xf32>
    %1069 = arith.mulf %15, %25 : vector<1x256xf32>
    %1070 = arith.subf %1068, %1069 : vector<1x256xf32>
    %cst_261 = arith.constant 1.000000e+00 : f32
    %1071 = vector.broadcast %cst_261 : f32 to vector<1x256xf32>
    %1072 = arith.addf %1071, %1066 : vector<1x256xf32>
    %1073 = math.log %1072 : vector<1x256xf32>
    %1074 = arith.addf %1070, %1073 : vector<1x256xf32>
    %cst_262 = arith.constant 1.000000e+00 : f32
    %1075 = vector.broadcast %cst_262 : f32 to vector<1x256xf32>
    %1076 = arith.addf %1075, %1066 : vector<1x256xf32>
    %cst_263 = arith.constant 1.000000e+00 : f32
    %1077 = vector.broadcast %cst_263 : f32 to vector<1x256xf32>
    %1078 = arith.divf %1077, %1076 : vector<1x256xf32>
    %cst_264 = arith.constant 0.000000e+00 : f32
    %1079 = vector.broadcast %cst_264 : f32 to vector<1x256xf32>
    %1080 = arith.cmpf oge, %15, %1079 : vector<1x256xf32>
    %1081 = arith.mulf %1066, %1078 : vector<1x256xf32>
    %1082 = arith.select %1080, %1078, %1081 : vector<1x256xi1>, vector<1x256xf32>
    %1083 = arith.subf %25, %1082 : vector<1x256xf32>
    %1084 = math.absf %1083 : vector<1x256xf32>
    %1085 = arith.addf %25, %1062 : vector<1x256xf32>
    %1086 = arith.mulf %1074, %1084 : vector<1x256xf32>
    %1087 = arith.mulf %1086, %1084 : vector<1x256xf32>
    %1088 = arith.mulf %1085, %1087 : vector<1x256xf32>
    %1089 = arith.mulf %1088, %26 : vector<1x256xf32>
    %cst_265 = arith.constant 0.000000e+00 : f32
    %1090 = vector.broadcast %cst_265 : f32 to vector<20x256xf32>
    %1091 = arith.maximumf %16, %1090 : vector<20x256xf32>
    %1092 = arith.mulf %16, %27 : vector<20x256xf32>
    %1093 = arith.subf %1091, %1092 : vector<20x256xf32>
    %1094 = math.absf %16 : vector<20x256xf32>
    %cst_266 = arith.constant 0.000000e+00 : f32
    %1095 = vector.broadcast %cst_266 : f32 to vector<20x256xf32>
    %1096 = arith.subf %1095, %1094 : vector<20x256xf32>
    %1097 = math.exp %1096 : vector<20x256xf32>
    %cst_267 = arith.constant 1.000000e+00 : f32
    %1098 = vector.broadcast %cst_267 : f32 to vector<20x256xf32>
    %1099 = arith.addf %1098, %1097 : vector<20x256xf32>
    %1100 = math.log %1099 : vector<20x256xf32>
    %1101 = arith.addf %1093, %1100 : vector<20x256xf32>
    %1102 = arith.mulf %25, %26 : vector<1x256xf32>
    %cst_268 = arith.constant dense<0.000000e+00> : vector<256xf32>
    %1103 = vector.multi_reduction <add>, %1101, %cst_268 [0] : vector<20x256xf32> to vector<256xf32>
    %1104 = vector.shape_cast %1103 : vector<256xf32> to vector<1x256xf32>
    %1105 = arith.mulf %1102, %1104 : vector<1x256xf32>
    %cst_269 = arith.constant 0.000000e+00 : f32
    %1106 = vector.broadcast %cst_269 : f32 to vector<5x256xf32>
    %c0_270 = arith.constant 0 : index
    %c0_271 = arith.constant 0 : index
    %1107 = vector.load %arg8[%c0_270, %c0_271] : memref<8x256xf32, #tpu.memory_space<vmem>>, vector<8x256xf32>
    %1108 = tpu.concatenate %103, %1089, %1105, %1106 in 0 : vector<1x256xf32>, vector<1x256xf32>, vector<1x256xf32>, vector<5x256xf32> -> vector<8x256xf32>
    %1109 = arith.addf %1107, %1108 : vector<8x256xf32>
    %c0_272 = arith.constant 0 : index
    %c0_273 = arith.constant 0 : index
    %1110 = vector.load %arg8[%c0_272, %c0_273] : memref<8x256xf32, #tpu.memory_space<vmem>>, vector<8x256xf32>
    tpu.vector_store %arg8[%c0_272, %c0_273], %1109 {strides = array<i32>} : memref<8x256xf32, #tpu.memory_space<vmem>>, vector<8x256xf32>,
    %c2_i32_274 = arith.constant 2 : i32
    %1111 = arith.cmpi eq, %arg1, %c2_i32_274 : i32
    %1112 = arith.extui %1111 : i1 to i32
    %c0_i32_275 = arith.constant 0 : i32
    %1113 = arith.cmpi ne, %1112, %c0_i32_275 : i32
    scf.if %1113 {
      %c0_276 = arith.constant 0 : index
      %c0_277 = arith.constant 0 : index
      %1114 = vector.load %arg8[%c0_276, %c0_277] : memref<8x256xf32, #tpu.memory_space<vmem>>, vector<3x256xf32>
      %c0_278 = arith.constant 0 : index
      %c0_279 = arith.constant 0 : index
      %c0_280 = arith.constant 0 : index
      %1115 = vector.load %arg7[%c0_278, %c0_279, %c0_280] : memref<1x3x256xf32, #tpu.memory_space<vmem>>, vector<1x3x256xf32>
      %1116 = vector.shape_cast %1115 : vector<1x3x256xf32> to vector<3x256xf32>
      %1117 = vector.shape_cast %1114 : vector<3x256xf32> to vector<1x3x256xf32>
      tpu.vector_store %arg7[%c0_278, %c0_279, %c0_280], %1117 {strides = array<i32>} : memref<1x3x256xf32, #tpu.memory_space<vmem>>, vector<1x3x256xf32>,
    } else {
    }
    return
  }
  func.func @transform_0(%arg0: i32, %arg1: i32, %arg2: memref<3xi32, #tpu.memory_space<smem>>) -> (i32, i32, i32) {
    %c0_i32 = arith.constant 0 : i32
    %c0_i32_0 = arith.constant 0 : i32
    return %arg0, %c0_i32, %arg1 : i32, i32, i32
  }
  func.func @transform_1(%arg0: i32, %arg1: i32, %arg2: memref<3xi32, #tpu.memory_space<smem>>) -> (i32, i32, i32) {
    %c0_i32 = arith.constant 0 : i32
    %c0_i32_0 = arith.constant 0 : i32
    return %arg0, %c0_i32, %arg1 : i32, i32, i32
  }
  func.func @transform_2(%arg0: i32, %arg1: i32, %arg2: memref<3xi32, #tpu.memory_space<smem>>) -> (i32, i32, i32) {
    %c0_i32 = arith.constant 0 : i32
    %c0_i32_0 = arith.constant 0 : i32
    return %arg0, %c0_i32, %arg1 : i32, i32, i32
  }
  func.func @transform_3(%arg0: i32, %arg1: i32, %arg2: memref<3xi32, #tpu.memory_space<smem>>) -> (i32, i32, i32, i32) {
    %0 = arith.index_cast %arg1 : i32 to index
    %1 = memref.load %arg2[%0] : memref<3xi32, #tpu.memory_space<smem>>
    %c0_i32 = arith.constant 0 : i32
    %c0_i32_0 = arith.constant 0 : i32
    %c0_i32_1 = arith.constant 0 : i32
    return %arg0, %1, %c0_i32, %c0_i32_0 : i32, i32, i32, i32
  }
  func.func @transform_4(%arg0: i32, %arg1: i32, %arg2: memref<3xi32, #tpu.memory_space<smem>>) -> (i32, i32, i32) {
    %c0_i32 = arith.constant 0 : i32
    %c0_i32_0 = arith.constant 0 : i32
    %c0_i32_1 = arith.constant 0 : i32
    return %arg0, %c0_i32, %c0_i32_0 : i32, i32, i32
  }
}

</mosaic_0001>

<bundles_post_ra>
// kernel: tpu_custom_call.1
= control target key start
LH: loop header
LB: loop body
LE: loop exit
PB: predicated region body
PF: predicated region fallthrough
CT: control target
= control target key end

     0   :  { %s4234_s0 = inlined_call_operand.vmem [shape: s32[3], index: 0, kind: input, shape index: {}]   ;;  %s4235_s1 = inlined_call_operand.vmem [shape: f32[2,25,768], index: 1, kind: input, shape index: {}]   ;;  %s4236_s2 = inlined_call_operand.vmem [shape: f32[2,4,768], index: 2, kind: input, shape index: {}]   ;;  %s4237_s3 = inlined_call_operand.vmem [shape: f32[2,26,768], index: 3, kind: input, shape index: {}]   ;;  %s4238_s4 = inlined_call_operand.vmem [shape: f32[2,3,152,4], index: 4, kind: input, shape index: {}]   ;;  %s4239_s5 = inlined_call_operand.vmem [shape: f32[2,3,256], index: 5, kind: output, shape index: {}]  }
   0x1   :  { %4299 = sst [smem:[#allocation52_spill]] %s4235_s1  ;;  %s10_s20 = sshll.u32 %s4234_s0, 4  ;;  %s11_s20 = int_to_ptr.vmem [resolvable:$true] %s10_s20 }
   0x2   :  { %4300 = sst [smem:[#allocation53_spill]] %s4237_s3  ;;  %s2658_s21 = scalar_lea.vmem %s11_s20, 16 }
   0x3   :  { %p2659_p0 = scmp.ne.s32.totalorder %s11_s20, %s2658_s21  ;;  %p2663_p1 = scmp.lt.s32.totalorder %s11_s20, %s11_s20 }
   0x4   :  { %p2664_p2 = scmp.lt.s32.totalorder %s2658_s21, %s2658_s21 }
   0x6   :  { %p2665_p3 = por %p2664_p2, %p2663_p1 }
   0x8   :  { %p2666_p4 = pnand %p2665_p3, %p2659_p0 }
   0xa   :  { %2669 = shalt.err (!%p2666_p4)  }
   0xb   :  { %s2728_s22 = smov [#allocation4]  }
   0xc   :  { %13 = dma.vmem_to_smem %s11_s20, 16, %s2728_s22, [#allocation3] }
   0xd   :  { %2698 = dma.done.wait [#allocation3], 16 }
   0xe   :  { %2699 = vsyncadd [#allocation3], 4294967280 }
   0xf   :  { %15 = sfence }
  0x10   :  { %s2769_s23 = smov 0   ;;  %s2771_s24 = smov 0  }
  0x11   :  { %s2773_s25 = smov 0   ;;  %s2775_s0 = smov 0  }
  0x12   :  { %s2777_s26 = smov 0   ;;  %s2779_s27 = smov 0  }
  0x13   :  { %s2781_s28 = smov 0  }
  0x14 LB: > { %s30_s29 = sadd.s32 1, %s2718_s26  ;;  %s33_s30 = sadd.s32 1, %s2722_s27  ;;  %s2726_s28 = sphi %s2781_s28, %s21_s28   ;;  %s2722_s27 = sphi %s2779_s27, %s4506_s27   ;;  %s2718_s26 = sphi %s2777_s26, %s4505_s26   ;;  %s2714_s0 = sphi %s2775_s0, %s4504_s0   ;;  %s2710_s25 = sphi %s2773_s25, %s4503_s25   ;;  %s2706_s24 = sphi %s2771_s24, %s4502_s24   ;;  %s2702_s23 = sphi %s2769_s23, %s4501_s23  }
  0x15   : > { %p31_p5 = scmp.ge.s32.totalorder %s30_s29, 3  ;;  %p49_p6 = scmp.ne.s32.totalorder %s2706_s24, %s2702_s23 }
  0x16   : > { %p50_p7 = scmp.eq.s32.totalorder %s2726_s28, 0  ;;  %s42_s10 = sadd.s32 1, %s2706_s24 }
  0x17   : > { %s4508_s29 = smov (%p31_p5, %s30_s29), 0  ;;  %s4510_s30 = smov (!%p31_p5, %s33_s30), %s2722_s27 }
  0x18   : > { %p2812_p8 = por %p50_p7, %p49_p6  ;;  %p35_p9 = scmp.ge.s32.totalorder %s4510_s30, 2 }
  0x19   : > { %s38_s7 = ssub.s32 %s2718_s26, %s4508_s29  ;;  %p2456_p11 = scmp.ge.s32.totalorder %s2726_s28, 6 }
  0x1a   : > { %s4512_s30 = smov (%p35_p9, %s4510_s30), 0 }
  0x1b   : > { %4302 = sst [smem:[#allocation8_spill]] %s4512_s30  ;;  %s37_s8 = ssub.s32 %s2722_s27, %s4512_s30 }
  0x1c   : > { %s39_s9 = sor.u32 %s38_s7, %s37_s8  ;;  %187 = sbr.rel (%p2456_p11) target bundleno = 61 (0x3d), region = 16 }
  0x1d   : > { %p40_p10 = scmp.eq.s32.totalorder %s39_s9, 0 }
  0x1f   : > { %s2824_s11 = scalar_select %p40_p10, %s2706_s24, %s42_s10  }
  0x21   : > { %190 = sbr.rel (!%p2812_p8) target bundleno = 47 (0x2f), region = 20  ;;  %s192_s12 = sand.u32 (%p2812_p8), 1, %s2706_s24  }
  0x22   : > { %s2458_s13 = sshll.u32 (%p2812_p8), %s2718_s26, 1  ;;  %s2457_s14 = sshll.u32 (%p2812_p8), %s192_s12, 6 }
  0x23   : > { %s2482_s15 = smul.u32 (%p2812_p8), 24, %s2722_s27  ;;  %s4303_s1 = sld [smem:[#allocation52_spill]] (%p2812_p8) }
  0x24   : > { %s194_s21 = scalar_lea.vmem (%p2812_p8), [#allocation5], %s2457_s14 }
  0x25   : > { %s197_s16 = sadd.s32 (%p2812_p8), %s2482_s15, %s2458_s13 }
  0x26   : > { %s2459_s17 = sshll.u32 %s197_s16, 3 }
  0x29   : > { %s199_s20 = scalar_lea.vmem %s4303_s1, %s2459_s17 }
  0x2a   : > { %v212_v0 = vld [vmem:[%s199_s20] sm:$0xff]  ;;  %v214_v1 = vld [vmem:[%s199_s20 + $0x8] sm:$0xff]  ;;  %v216_v2 = vld [vmem:[%s199_s20 + $0x30] sm:$0xff] }
  0x2b   : > { %213 = vst [vmem:[%s194_s21] sm:$0xff] %v212_v0  ;;  %215 = vst [vmem:[%s194_s21 + $0x8] sm:$0xff] %v214_v1  ;;  %v218_v3 = vld [vmem:[%s199_s20 + $0x38] sm:$0xff]  ;;  %v220_v4 = vld [vmem:[%s199_s20 + $0x60] sm:$0xff] }
  0x2c   : > { %217 = vst [vmem:[%s194_s21 + $0x10] sm:$0xff] %v216_v2  ;;  %v222_v5 = vld [vmem:[%s199_s20 + $0x68] sm:$0xff]  ;;  %219 = vst [vmem:[%s194_s21 + $0x18] sm:$0xff] %v218_v3  ;;  %v224_v6 = vld [vmem:[%s199_s20 + $0x90] sm:$0xff] }
  0x2d   : > { %221 = vst [vmem:[%s194_s21 + $0x20] sm:$0xff] %v220_v4  ;;  %223 = vst [vmem:[%s194_s21 + $0x28] sm:$0xff] %v222_v5  ;;  %v226_v7 = vld [vmem:[%s199_s20 + $0x98] sm:$0xff] }
  0x2e   : > { %225 = vst [vmem:[%s194_s21 + $0x30] sm:$0xff] %v224_v6  ;;  %227 = vst [vmem:[%s194_s21 + $0x38] sm:$0xff] %v226_v7 }
  0x2f PF: > { %246 = sbr.rel (!%p2812_p8) target bundleno = 61 (0x3d), region = 47  ;;  %s248_s22 = sand.u32 (%p2812_p8), 1, %s2706_s24  }
  0x30   : > { %s2461_s7 = sshll.u32 (%p2812_p8), %s2718_s26, 1  ;;  %s2460_s8 = sshll.u32 (%p2812_p8), %s248_s22, 6 }
  0x31   : > { %s2483_s9 = smul.u32 (%p2812_p8), 24, %s2722_s27  ;;  %s4304_s3 = sld [smem:[#allocation53_spill]] (%p2812_p8) }
  0x32   : > { %s250_s16 = scalar_lea.vmem (%p2812_p8), [#allocation6], %s2460_s8 }
  0x33   : > { %s253_s10 = sadd.s32 (%p2812_p8), %s2483_s9, %s2461_s7 }
  0x34   : > { %s2462_s12 = sshll.u32 %s253_s10, 3 }
  0x37   : > { %s255_s15 = scalar_lea.vmem %s4304_s3, %s2462_s12 }
  0x38   : > { %v268_v8 = vld [vmem:[%s255_s15] sm:$0xff]  ;;  %v270_v9 = vld [vmem:[%s255_s15 + $0x8] sm:$0xff]  ;;  %v272_v10 = vld [vmem:[%s255_s15 + $0x30] sm:$0xff] }
  0x39   : > { %269 = vst [vmem:[%s250_s16] sm:$0xff] %v268_v8  ;;  %271 = vst [vmem:[%s250_s16 + $0x8] sm:$0xff] %v270_v9  ;;  %v274_v11 = vld [vmem:[%s255_s15 + $0x38] sm:$0xff]  ;;  %v276_v12 = vld [vmem:[%s255_s15 + $0x60] sm:$0xff] }
  0x3a   : > { %273 = vst [vmem:[%s250_s16 + $0x10] sm:$0xff] %v272_v10  ;;  %v278_v13 = vld [vmem:[%s255_s15 + $0x68] sm:$0xff]  ;;  %275 = vst [vmem:[%s250_s16 + $0x18] sm:$0xff] %v274_v11  ;;  %v280_v14 = vld [vmem:[%s255_s15 + $0x90] sm:$0xff] }
  0x3b   : > { %277 = vst [vmem:[%s250_s16 + $0x20] sm:$0xff] %v276_v12  ;;  %279 = vst [vmem:[%s250_s16 + $0x28] sm:$0xff] %v278_v13  ;;  %v282_v15 = vld [vmem:[%s255_s15 + $0x98] sm:$0xff] }
  0x3c   : > { %281 = vst [vmem:[%s250_s16 + $0x30] sm:$0xff] %v280_v14  ;;  %283 = vst [vmem:[%s250_s16 + $0x38] sm:$0xff] %v282_v15 }
  0x3d PF: > { %p2463_p12 = scmp.ge.s32.totalorder %s2726_s28, 1  ;;  %p302_p13 = scmp.lt.s32.totalorder %s2726_s28, 7 }
  0x3f   : > { %p303_p0 = pnand %p2463_p12, %p302_p13 }
  0x41   : > { %306 = sbr.rel (%p303_p0) target bundleno = 991 (0x3df), region = 74 }
  0x46   : > { %s309_s6 = sand.u32 1, %s2702_s23   ;;  %s2466_s17 = sshll.u32 %s2710_s25, 1 }
  0x47   : > { %s2464_s18 = sshll.u32 %s309_s6, 6  ;;  %p366_p1 = scmp.lt.s32.totalorder %s2714_s0, 1 }
  0x48   : > { %p368_p2 = scmp.lt.s32.totalorder %s2466_s17, 5  ;;  %s376_s19 = sld [smem:[#allocation4 + %s2710_s25]] }
  0x49   : > { %s4514_s0 = smov (!%p366_p1, %s2714_s0), 1  ;;  %p2471_p4 = scmp.ne.s32.totalorder %s2710_s25, 0 }
  0x4a   : > { %s2484_s20 = smul.u32 6, %s4514_s0  ;;  %s2481_s21 = sshll.u32 %s4514_s0, 3 }
  0x4b   : > { %s4516_s17 = smov (!%p368_p2, %s2466_s17), 5  ;;  %s2853_s8 = scalar_lea.vmem %s4239_s5, %s2481_s21 }
  0x4c   : > { %s371_s9 = sadd.s32 %s2484_s20, %s4516_s17  ;;  %s2486_s14 = smul.u32 57, %s4514_s0 }
  0x4d   : > { %s2467_s10 = sshll.u32 %s371_s9, 2  ;;  %s2865_s21 = scalar_lea.vmem [#allocation5], %s2464_s18 }
  0x4e   : > { %s2858_s23 = scalar_lea.vmem %s4236_s2, %s2467_s10  ;;  %p379_p3 = scmp.lt.s32.totalorder %s376_s19, 2 }
  0x4f   : > { %s2867_s17 = scalar_lea.vmem [#allocation6], %s2464_s18 }
  0x50   : > { %s4518_s19 = smov (!%p379_p3, %s376_s19), 2 }
  0x51   : > { %s2485_s15 = smul.u32 19, %s4518_s19 }
  0x52   : > { %395 = sbr.rel (%p2471_p4) target bundleno = 89 (0x59), region = 86 }
  0x53   : > { %s383_s16 = sadd.s32 %s2486_s14, %s2485_s15 }
  0x54   : > { %s2468_s6 = sshll.u32 %s383_s16, 3 }
  0x55   : > { %s2863_s30 = scalar_lea.vmem %s4238_s4, %s2468_s6 }
  0x57   : > { %v2729_v16 = vmov 0.0  }
  0x58   : > { %396 = vst [vmem:[#allocation2] sm:$0xff] %v2729_v16  ;;  %397 = vst [vmem:[#allocation2 + $0x8] sm:$0xff] %v2729_v16 }
  0x59 PF: > { %v2871_v17 = vld [vmem:[%s2863_s30] sm:$0xff]  ;;  %v2874_v18 = vld [vmem:[%s2863_s30 + $0x8] sm:$0xff]  ;;  %s2730_s1 = smov 127   ;;  %v4241_v20 = vmov 2   ;;  %s2732_s3 = smov 126   ;;  %v2883_v21 = vld [vmem:[%s2863_s30 + $0x18] sm:$0xff] }
  0x5a   : > { %v536_v19 = vmul.f32 0.5, %v2871_v17  ;;  %747 = vrot.lane.b32.xlu1 %v2874_v18, %s2730_s1  ;;  %2580 = vset.pattern.permute.xlu0 %v4241_v20  ;;  %v703_v22 = vmul.f32 0.5, %v2874_v18  ;;  %v2891_v23 = vld [vmem:[%s2863_s30 + $0x10] sm:$0xff]  ;;  %v2894_v24 = vld [vmem:[%s2863_s30 + $0x28] sm:$0xff]  ;;  %v2901_v26 = vld [vmem:[%s2863_s30 + $0x38] sm:$0xff]  ;;  %v855_v27 = vmul.f32 0.5, %v2883_v21 }
  0x5b   : > { %2551 = vset.pattern.permute.xlu1 %v4241_v20  ;;  %v779_v25 = vmul.f32 0.5, %v2891_v23  ;;  %v2910_v28 = vld [vmem:[%s2863_s30 + $0x20] sm:$0xff]  ;;  %v1007_v30 = vmul.f32 0.5, %v2894_v24  ;;  %v2919_v31 = vld [vmem:[%s2863_s30 + $0x30] sm:$0xff]  ;;  %v1159_v33 = vmul.f32 0.5, %v2901_v26  ;;  %v2934_v36 = vld [vmem:[%s2863_s30 + $0x48] sm:$0xff] }
  0x5c   : > { %538 = vrot.lane.b32.xlu0 %v536_v19, %s2732_s3  ;;  %v931_v29 = vmul.f32 0.5, %v2910_v28  ;;  %v1083_v32 = vmul.f32 0.5, %v2919_v31  ;;  %v2928_v34 = vld [vmem:[%s2863_s30 + $0x40] sm:$0xff]  ;;  %v1311_v37 = vmul.f32 0.5, %v2934_v36  ;;  %v2940_v38 = vld [vmem:[%s2863_s30 + $0x50] sm:$0xff]  ;;  %v2946_v40 = vld [vmem:[%s2863_s30 + $0x58] sm:$0xff] }
  0x5d   : > { %v1235_v35 = vmul.f32 0.5, %v2928_v34  ;;  %v1387_v39 = vmul.f32 0.5, %v2940_v38  ;;  %v1463_v41 = vmul.f32 0.5, %v2946_v40  ;;  %v2952_v42 = vld [vmem:[%s2863_s30 + $0x60] sm:$0xff]  ;;  %v2962_v44 = vld [vmem:[%s2863_s30 + $0x68] sm:$0xff]  ;;  %v2967_v45 = vld [vmem:[%s2863_s30 + $0x70] sm:$0xff] }
  0x5e   : > { %899 = vrot.lane.b32.xlu1 %v2883_v21, %s2730_s1  ;;  %v1539_v43 = vmul.f32 0.5, %v2952_v42  ;;  %v2972_v46 = vld [vmem:[%s2863_s30 + $0x78] sm:$0xff]  ;;  %v2977_v47 = vld [vmem:[%s2863_s30 + $0x80] sm:$0xff]  ;;  %v2982_v48 = vld [vmem:[%s2863_s30 + $0x90] sm:$0xff]  ;;  %v4245_v8 = vmov 0   ;;  %v4243_v11 = vmov 1  }
  0x5f   : > { %vm2138_vm0 = vcmask 1046528   ;;  %vm2233_vm3 = vcmask 1042432   ;;  %vm2255_vm4 = vcmask 1043456   ;;  %vm2295_vm7 = vcmask 1040384   ;;  %p2478_p5 = scmp.ne.s32.totalorder %s2710_s25, 2 }
  0x60   : > { %654 = vrot.lane.b32.xlu0 %v2871_v17, %s2730_s1  ;;  %vm2298_vm8 = vcmask 1041408  }
  0x62   : > { %1051 = vrot.lane.b32.xlu1 %v2894_v24, %s2730_s1 }
  0x64   : > { %705 = vrot.lane.b32.xlu0 %v703_v22, %s2732_s3 }
  0x66   : > { %1203 = vrot.lane.b32.xlu1 %v2901_v26, %s2730_s1 }
  0x68   : > { %781 = vrot.lane.b32.xlu0 %v779_v25, %s2732_s3 }
  0x6c   : > { %823 = vrot.lane.b32.xlu0 %v2891_v23, %s2730_s1 }
  0x70   : > { %857 = vrot.lane.b32.xlu0 %v855_v27, %s2732_s3 }
  0x74   : > { %933 = vrot.lane.b32.xlu0 %v931_v29, %s2732_s3 }
  0x78   : > { %975 = vrot.lane.b32.xlu0 %v2910_v28, %s2730_s1 }
  0x7c   : > { %1009 = vrot.lane.b32.xlu0 %v1007_v30, %s2732_s3 }
  0x80   : > { %1085 = vrot.lane.b32.xlu0 %v1083_v32, %s2732_s3 }
  0x84   : > { %1127 = vrot.lane.b32.xlu0 %v2919_v31, %s2730_s1 }
  0x88   : > { %1161 = vrot.lane.b32.xlu0 %v1159_v33, %s2732_s3 }
  0x8c   : > { %1237 = vrot.lane.b32.xlu0 %v1235_v35, %s2732_s3 }
  0x90   : > { %1279 = vrot.lane.b32.xlu0 %v2928_v34, %s2730_s1 }
  0x94   : > { %1313 = vrot.lane.b32.xlu0 %v1311_v37, %s2732_s3 }
  0x98   : > { %1389 = vrot.lane.b32.xlu0 %v1387_v39, %s2732_s3 }
  0x9c   : > { %1431 = vrot.lane.b32.xlu0 %v2940_v38, %s2730_s1 }
  0xa0   : > { %1465 = vrot.lane.b32.xlu0 %v1463_v41, %s2732_s3 }
  0xa4   : > { %1541 = vrot.lane.b32.xlu0 %v1539_v43, %s2732_s3 }
  0xa8   : > { %1507 = vrot.lane.b32.xlu0 %v2946_v40, %s2730_s1 }
  0xac   : > { %1583 = vrot.lane.b32.xlu0 %v2952_v42, %s2730_s1 }
  0xb0   : > { %1659 = vrot.lane.b32.xlu0 %v2962_v44, %s2730_s1 }
  0xb4   : > { %1735 = vrot.lane.b32.xlu0 %v2967_v45, %s2730_s1 }
  0xb8   : > { %1811 = vrot.lane.b32.xlu0 %v2972_v46, %s2730_s1 }
  0xbc   : > { %1887 = vrot.lane.b32.xlu0 %v2977_v47, %s2730_s1 }
  0xc0   : > { %2039 = vrot.lane.b32.xlu0 %v2982_v48, %s2730_s1 }
  0xcc   : > { %v748_v51 = vpop.permute.xlu1 %747 }
  0xcd   : > { %v750_v53 = vmul.f32 %v748_v51, %v2874_v18 }
  0xce   : > { %v539_v49 = vpop.permute.xlu0 %538 }
  0xcf   : > { %v541_v7 = vsub.f32 %v2871_v17, %v539_v49  ;;  %v542_v10 = vadd.f32 %v539_v49, %v2871_v17 }
  0xd0   : > { %v900_v57 = vpop.permute.xlu1 %899 }
  0xd1   : > { %v902_v59 = vmul.f32 %v900_v57, %v2883_v21 }
  0xd2   : > { %v655_v50 = vpop.permute.xlu0 %654 }
  0xd3   : > { %v657_v52 = vmul.f32 %v655_v50, %v2871_v17 }
  0xd4   : > { %v1052_v63 = vpop.permute.xlu1 %1051 }
  0xd5   : > { %679 = vperm.xlu1 %2551, %v657_v52   ;;  %v1054_v1 = vmul.f32 %v1052_v63, %v2894_v24 }
  0xd6   : > { %v2988_v54 = vpop.permute.xlu0 %705 }
  0xd7   : > { %v709_v14 = vadd.f32 %v2988_v54, %v2874_v18  ;;  %v3047_v39 = vsub.f32 %v2874_v18, %v2988_v54 }
  0xd8   : > { %v1204_v52 = vpop.permute.xlu1 %1203 }
  0xd9   : > { %753 = vperm.xlu1 %2551, %v750_v53   ;;  %v1206_v57 = vmul.f32 %v1204_v52, %v2901_v26 }
  0xda   : > { %v782_v55 = vpop.permute.xlu0 %781 }
  0xdb   : > { %v785_v19 = vadd.f32 %v782_v55, %v2891_v23  ;;  %v784_v29 = vsub.f32 %v2891_v23, %v782_v55 }
  0xde   : > { %v824_v56 = vpop.permute.xlu0 %823 }
  0xdf   : > { %v826_v58 = vmul.f32 %v824_v56, %v2891_v23 }
  0xe1   : > { %829 = vperm.xlu1 %2551, %v826_v58  }
  0xe2   : > { %v2992_v60 = vpop.permute.xlu0 %857 }
  0xe3   : > { %v861_v32 = vadd.f32 %v2992_v60, %v2883_v21  ;;  %v3055_v43 = vsub.f32 %v2883_v21, %v2992_v60 }
  0xe5   : > { %905 = vperm.xlu1 %2551, %v902_v59  }
  0xe6   : > { %v2994_v61 = vpop.permute.xlu0 %933 }
  0xe7   : > { %v937_v23 = vadd.f32 %v2994_v61, %v2910_v28  ;;  %v936_v41 = vsub.f32 %v2910_v28, %v2994_v61 }
  0xea   : > { %v976_v62 = vpop.permute.xlu0 %975 }
  0xeb   : > { %v978_v0 = vmul.f32 %v976_v62, %v2910_v28 }
  0xed   : > { %981 = vperm.xlu1 %2551, %v978_v0  }
  0xee   : > { %v2998_v2 = vpop.permute.xlu0 %1009 }
  0xef   : > { %v1013_v49 = vadd.f32 %v2998_v2, %v2894_v24  ;;  %v3063_v18 = vsub.f32 %v2894_v24, %v2998_v2 }
  0xf1   : > { %1057 = vperm.xlu1 %2551, %v1054_v1   ;;  %4306 = vst [vmem:[#allocation10_spill] sm:$0xff] %v3063_v18 }
  0xf2   : > { %v3000_v3 = vpop.permute.xlu0 %1085 }
  0xf3   : > { %v1088_v21 = vsub.f32 %v2919_v31, %v3000_v3  ;;  %v1089_v28 = vadd.f32 %v3000_v3, %v2919_v31 }
  0xf6   : > { %v1128_v4 = vpop.permute.xlu0 %1127 }
  0xf7   : > { %v1130_v5 = vmul.f32 %v1128_v4, %v2919_v31 }
  0xf9   : > { %1133 = vperm.xlu1 %2551, %v1130_v5  }
  0xfa   : > { %v3003_v6 = vpop.permute.xlu0 %1161 }
  0xfb   : > { %v3074_v50 = vsub.f32 %v2901_v26, %v3003_v6  ;;  %v1165_v31 = vadd.f32 %v3003_v6, %v2901_v26  ;;  %v406_v6 = vld [vmem:[%s2858_s23] sm:$0xff] }
  0xfd   : > { %2552 = vset.pattern.permute.xlu1 %v4245_v8  ;;  %4307 = vst [vmem:[#allocation11_spill] sm:$0xff] %v3074_v50 }
  0xfe   : > { %590 = vperm.xlu1 %2552, %v541_v7   ;;  %v3007_v9 = vpop.permute.xlu0 %1237 }
  0xff   : > { %v1240_v24 = vsub.f32 %v2928_v34, %v3007_v9  ;;  %v1241_v58 = vadd.f32 %v3007_v9, %v2928_v34 }
 0x102   : > { %2553 = vset.pattern.permute.xlu1 %v4243_v11  ;;  %v3011_v12 = vpop.permute.xlu0 %1279 }
 0x103   : > { %618 = vperm.xlu1 %2553, %v542_v10   ;;  %v1282_v26 = vmul.f32 %v3011_v12, %v2928_v34 }
 0x106   : > { %v3013_v13 = vpop.permute.xlu0 %1313 }
 0x107   : > { %642 = vperm.xlu1 %2553, %v541_v7   ;;  %v3082_v51 = vsub.f32 %v2934_v36, %v3013_v13  ;;  %v1317_v63 = vadd.f32 %v3013_v13, %v2934_v36  ;;  %v427_v7 = vmul.f32 0.5, %v406_v6  ;;  %v516_v13 = vlaneseq }
 0x109   : > { %4308 = vst [vmem:[#allocation12_spill] sm:$0xff] %v3082_v51  ;;  %v429_v12 = vrot.slane %v427_v7, 6 }
 0x10a   : > { %v3017_v15 = vpop.permute.xlu0 %1389 }
 0x10b   : > { %2554 = vset.pattern.permute.xlu1 %v4245_v8  ;;  %v3088_v53 = vsub.f32 %v2940_v38, %v3017_v15 }
 0x10c   : > { %712 = vperm.xlu1 %2554, %v709_v14  }
 0x10e   : > { %v3020_v16 = vpop.permute.xlu0 %1431 }
 0x110   : > { %2555 = vset.pattern.permute.xlu1 %v4243_v11 }
 0x111   : > { %729 = vperm.xlu1 %2555, %v709_v14  }
 0x112   : > { %v3023_v17 = vpop.permute.xlu0 %1465 }
 0x113   : > { %v3094_v54 = vsub.f32 %v2946_v40, %v3023_v17 }
 0x115   : > { %2556 = vset.pattern.permute.xlu1 %v4245_v8 }
 0x116   : > { %788 = vperm.xlu1 %2556, %v785_v19   ;;  %v3027_v22 = vpop.permute.xlu0 %1541 }
 0x11a   : > { %2557 = vset.pattern.permute.xlu1 %v4243_v11  ;;  %v1508_v25 = vpop.permute.xlu0 %1507 }
 0x11b   : > { %v1510_v27 = vmul.f32 %v1508_v25, %v2946_v40  ;;  %805 = vperm.xlu1 %2557, %v785_v19   ;;  %v430_v19 = vrot.slane %v429_v12, 4 }
 0x11d   : > { %1513 = vperm.xlu0 %2580, %v1510_v27   ;;  %v517_v27 = vshrl.u32 %v516_v13, 7 }
 0x11e   : > { %v3032_v30 = vpop.permute.xlu0 %1583 }
 0x11f   : > { %811 = vperm.xlu1 %2557, %v784_v29  }
 0x122   : > { %v3036_v33 = vpop.permute.xlu0 %1659 }
 0x123   : > { %4305 = vst [vmem:[#allocation9_spill] sm:$0xff] %v3036_v33  ;;  %2558 = vset.pattern.permute.xlu1 %v4245_v8 }
 0x124   : > { %864 = vperm.xlu1 %2558, %v861_v32  }
 0x126   : > { %v1736_v35 = vpop.permute.xlu0 %1735 }
 0x127   : > { %v1738_v37 = vmul.f32 %v1736_v35, %v2967_v45  ;;  %v3150_v35 = vadd.f32 %v430_v19, %v406_v6 }
 0x128   : > { %2559 = vset.pattern.permute.xlu1 %v4243_v11 }
 0x129   : > { %881 = vperm.xlu1 %2559, %v861_v32   ;;  %1741 = vperm.xlu0 %2580, %v1738_v37   ;;  %v3148_v32 = vsub.f32 %v406_v6, %v430_v19  ;;  %4318 = vst [vmem:[#allocation22_spill] sm:$0xff] %v3150_v35  ;;  %v601_v37 = vsub.s32 1, %v517_v27  ;;  %v661_v19 = vsub.s32 2, %v517_v27 }
 0x12a   : > { %v3135_v5 = vpop.permute.xlu0 %1811 }
 0x12b   : > { %4314 = vst [vmem:[#allocation18_spill] sm:$0xff] %v3135_v5  ;;  %4317 = vst [vmem:[#allocation21_spill] sm:$0xff] %v3148_v32 }
 0x12d   : > { %2560 = vset.pattern.permute.xlu1 %v4245_v8  ;;  %2593 = vset.pattern.permute.xlu0 %v4245_v8 }
 0x12e   : > { %940 = vperm.xlu1 %2560, %v937_v23   ;;  %564 = vperm.xlu0 %2593, %v542_v10   ;;  %v3140_v10 = vpop.permute.xlu0 %1887 }
 0x12f   : > { %4315 = vst [vmem:[#allocation19_spill] sm:$0xff] %v3140_v10 }
 0x132   : > { %2561 = vset.pattern.permute.xlu1 %v4243_v11  ;;  %719 = vperm.xlu0 %2593, %v3047_v39   ;;  %v3144_v25 = vpop.permute.xlu0 %2039 }
 0x133   : > { %957 = vperm.xlu1 %2561, %v937_v23   ;;  %4316 = vst [vmem:[#allocation20_spill] sm:$0xff] %v3144_v25  ;;  %v605_v23 = vsub.s32 5, %v517_v27 }
 0x136   : > { %795 = vperm.xlu0 %2593, %v784_v29  }
 0x137   : > { %963 = vperm.xlu1 %2561, %v936_v41  }
 0x13a   : > { %871 = vperm.xlu0 %2593, %v3055_v43  }
 0x13b   : > { %2562 = vset.pattern.permute.xlu1 %v4245_v8 }
 0x13c   : > { %1016 = vperm.xlu1 %2562, %v1013_v49  }
 0x13e   : > { %947 = vperm.xlu0 %2593, %v936_v41   ;;  %v3152_v41 = vsub.s32 0, %v517_v27 }
 0x140   : > { %2563 = vset.pattern.permute.xlu1 %v4243_v11  ;;  %4319 = vst [vmem:[#allocation23_spill] sm:$0xff] %v3152_v41 }
 0x141   : > { %1033 = vperm.xlu1 %2563, %v1013_v49   ;;  %v3154_v49 = vsub.s32 4, %v517_v27 }
 0x142   : > { %1023 = vperm.xlu0 %2593, %v3063_v18  }
 0x143   : > { %4320 = vst [vmem:[#allocation24_spill] sm:$0xff] %v3154_v49 }
 0x145   : > { %2564 = vset.pattern.permute.xlu1 %v4245_v8 }
 0x146   : > { %1092 = vperm.xlu1 %2564, %v1089_v28   ;;  %1099 = vperm.xlu0 %2593, %v1088_v21  }
 0x14a   : > { %2565 = vset.pattern.permute.xlu1 %v4243_v11  ;;  %1175 = vperm.xlu0 %2593, %v3074_v50  }
 0x14b   : > { %1109 = vperm.xlu1 %2565, %v1089_v28   ;;  %v630_v28 = vrot.slane %v3148_v32, %v605_v23 }
 0x14d   : > { %v3170_v12 = vrot.slane %v630_v28, %v601_v37 }
 0x14e   : > { %1251 = vperm.xlu0 %2593, %v1240_v24  }
 0x14f   : > { %1115 = vperm.xlu1 %2565, %v1088_v21   ;;  %v626_v21 = vrot.slane %v3148_v32, %v601_v37 }
 0x150   : > { %v3096_v55 = vpop.permute.xlu1 %679 }
 0x151   : > { %v3168_v7 = vrot.slane %v626_v21, %v601_v37 }
 0x152   : > { %1327 = vperm.xlu0 %2593, %v3082_v51  }
 0x153   : > { %2566 = vset.pattern.permute.xlu1 %v4245_v8 }
 0x154   : > { %1168 = vperm.xlu1 %2566, %v1165_v31   ;;  %v3100_v56 = vpop.permute.xlu1 %753 }
 0x155   : > { %4309 = vst [vmem:[#allocation13_spill] sm:$0xff] %v3100_v56 }
 0x156   : > { %1403 = vperm.xlu0 %2593, %v3088_v53  }
 0x158   : > { %2567 = vset.pattern.permute.xlu1 %v4243_v11 }
 0x159   : > { %1185 = vperm.xlu1 %2567, %v1165_v31   ;;  %v2475_v31 = vrot.slane %v406_v6, 9 }
 0x15a   : > { %1479 = vperm.xlu0 %2593, %v3094_v54  }
 0x15b   : > { %v534_v13 = vmul.f32 %v2475_v31, %v406_v6 }
 0x15c   : > { %v3107_v59 = vpop.permute.xlu1 %829 }
 0x15d   : > { %2568 = vset.pattern.permute.xlu1 %v4241_v20  ;;  %v662_v28 = vrot.slane %v534_v13, %v661_v19 }
 0x15e   : > { %1209 = vperm.xlu1 %2568, %v1206_v57   ;;  %v602_v57 = vrot.slane %v3150_v35, %v601_v37 }
 0x160   : > { %v3110_v60 = vpop.permute.xlu1 %905 }
 0x161   : > { %4310 = vst [vmem:[#allocation14_spill] sm:$0xff] %v3110_v60 }
 0x162   : > { %2569 = vset.pattern.permute.xlu1 %v4245_v8 }
 0x163   : > { %1244 = vperm.xlu1 %2569, %v1241_v58  }
 0x167   : > { %2570 = vset.pattern.permute.xlu1 %v4243_v11 }
 0x168   : > { %1261 = vperm.xlu1 %2570, %v1241_v58   ;;  %v3113_v61 = vpop.permute.xlu1 %981  ;;  %v606_v58 = vrot.slane %v3150_v35, %v605_v23  ;;  %v547_v23 = vrot.slane %v3150_v35, %v3152_v41 }
 0x16c   : > { %1267 = vperm.xlu1 %2570, %v1240_v24   ;;  %v3117_v62 = vpop.permute.xlu1 %1057 }
 0x16d   : > { %4311 = vst [vmem:[#allocation15_spill] sm:$0xff] %v3117_v62 }
 0x170   : > { %2571 = vset.pattern.permute.xlu1 %v4241_v20 }
 0x171   : > { %1285 = vperm.xlu1 %2571, %v1282_v26   ;;  %v573_v26 = vrot.slane %v3148_v32, %v3152_v41 }
 0x173   : > { %v3185_v21 = vrot.slane %v573_v26, %v3152_v41 }
 0x174   : > { %v3122_v0 = vpop.permute.xlu1 %1133 }
 0x175   : > { %2572 = vset.pattern.permute.xlu1 %v4245_v8  ;;  %v3174_v8 = vrot.slane %v606_v58, %v601_v37 }
 0x176   : > { %1320 = vperm.xlu1 %2572, %v1317_v63  }
 0x179   : > { %v3125_v1 = vpop.permute.xlu1 %590 }
 0x17a   : > { %2573 = vset.pattern.permute.xlu1 %v4243_v11  ;;  %v3172_v11 = vrot.slane %v602_v57, %v601_v37  ;;  %v593_v26 = vmax.f32 %v3185_v21, %v3125_v1 }
 0x17b   : > { %1337 = vperm.xlu1 %2573, %v1317_v63   ;;  %v577_v63 = vrot.slane %v3148_v32, %v3154_v49 }
 0x17d   : > { %v3188_v6 = vrot.slane %v577_v63, %v3152_v41 }
 0x17e   : > { %v619_v34 = vpop.permute.xlu1 %618 }
 0x17f   : > { %1355 = vrot.lane.b32.xlu1 %v2934_v36, %s2730_s1  ;;  %v621_v57 = vmin.f32 %v3172_v11, %v619_v34  ;;  %v622_v58 = vmin.f32 %v3174_v8, %v619_v34  ;;  %v594_v63 = vmax.f32 %v3188_v6, %v3125_v1 }
 0x180   : > { %2574 = vset.pattern.permute.xlu1 %v4241_v20  ;;  %v665_v20 = vsub.s32 6, %v517_v27 }
 0x182   : > { %v643_v2 = vpop.permute.xlu1 %642  ;;  %v666_v31 = vrot.slane %v534_v13, %v665_v20 }
 0x183   : > { %v645_v27 = vmax.f32 %v3168_v7, %v643_v2  ;;  %v646_v37 = vmax.f32 %v3170_v12, %v643_v2 }
 0x185   : > { %v647_v20 = vsub.f32 %v621_v57, %v645_v27  ;;  %v648_v13 = vsub.f32 %v622_v58, %v646_v37 }
 0x187   : > { %v3131_v3 = vpop.permute.xlu1 %712  ;;  %v649_v60 = vmax.f32 %v647_v20, 0.0  ;;  %v650_v56 = vmax.f32 %v648_v13, 0.0 }
 0x188   : > { %4312 = vst [vmem:[#allocation16_spill] sm:$0xff] %v3131_v3 }
 0x18c   : > { %v3133_v4 = vpop.permute.xlu1 %729 }
 0x18d   : > { %4313 = vst [vmem:[#allocation17_spill] sm:$0xff] %v3133_v4  ;;  %v551_v4 = vrot.slane %v3150_v35, %v3154_v49  ;;  %v3195_v49 = vrot.slane %v547_v23, %v3152_v41  ;;  %v3208_v23 = vrot.slane %v662_v28, %v661_v19 }
 0x18f   : > { %v3198_v35 = vrot.slane %v551_v4, %v3152_v41  ;;  %4324 = vst [vmem:[#allocation28_spill] sm:$0xff] %v3208_v23  ;;  %v682_v28 = vadd.f32 %v3096_v55, %v3208_v23 }
 0x191   : > { %v3138_v9 = vpop.permute.xlu1 %788 }
 0x196   : > { %v3142_v14 = vpop.permute.xlu1 %805 }
 0x197   : > { %v808_v57 = vmin.f32 %v3172_v11, %v3142_v14 }
 0x198   : > { %v3158_v24 = vpop.permute.xlu0 %1513 }
 0x19a   : > { %v3146_v29 = vpop.permute.xlu1 %811 }
 0x19b   : > { %v814_v27 = vmax.f32 %v3168_v7, %v3146_v29  ;;  %v815_v37 = vmax.f32 %v3170_v12, %v3146_v29  ;;  %v792_v29 = vmin.f32 %v3198_v35, %v3138_v9 }
 0x19d   : > { %v816_v13 = vsub.f32 %v808_v57, %v814_v27 }
 0x19f   : > { %v3160_v52 = vpop.permute.xlu1 %864  ;;  %v818_v57 = vmax.f32 %v816_v13, 0.0 }
 0x1a0   : > { %4321 = vst [vmem:[#allocation25_spill] sm:$0xff] %v3160_v52  ;;  %v3210_v52 = vrot.slane %v666_v31, %v661_v19 }
 0x1a2   : > { %4325 = vst [vmem:[#allocation29_spill] sm:$0xff] %v3210_v52 }
 0x1a4   : > { %v3180_v62 = vpop.permute.xlu1 %881  ;;  %v3182_v32 = vpop.permute.xlu0 %1741 }
 0x1a5   : > { %4322 = vst [vmem:[#allocation26_spill] sm:$0xff] %v3180_v62  ;;  %4323 = vst [vmem:[#allocation27_spill] sm:$0xff] %v3182_v32 }
 0x1a9   : > { %v3204_v32 = vpop.permute.xlu1 %940  ;;  %v565_v2 = vpop.permute.xlu0 %564 }
 0x1aa   : > { %v567_v62 = vmin.f32 %v3195_v49, %v565_v2  ;;  %v568_v34 = vmin.f32 %v3198_v35, %v565_v2 }
 0x1ac   : > { %v595_v4 = vsub.f32 %v567_v62, %v593_v26  ;;  %v596_v41 = vsub.f32 %v568_v34, %v594_v63  ;;  %v683_v62 = vadd.f32 %v3096_v55, %v3210_v52  ;;  %v791_v26 = vmin.f32 %v3195_v49, %v3138_v9 }
 0x1ad   : > { %v3212_v3 = vpop.permute.xlu0 %719 }
 0x1ae   : > { %4326 = vst [vmem:[#allocation30_spill] sm:$0xff] %v3212_v3  ;;  %v597_v1 = vmax.f32 %v595_v4, 0.0  ;;  %v598_v10 = vmax.f32 %v596_v41, 0.0  ;;  %v958_v25 = vpop.permute.xlu1 %957  ;;  %v809_v41 = vmin.f32 %v3174_v8, %v3142_v14  ;;  %v832_v14 = vadd.f32 %v3107_v59, %v3208_v23 }
 0x1af   : > { %v833_v4 = vadd.f32 %v3107_v59, %v3210_v52  ;;  %v960_v59 = vmin.f32 %v3172_v11, %v958_v25 }
 0x1b0   : > { %v651_v19 = vmul.f32 %v649_v60, %v597_v1  ;;  %v652_v31 = vmul.f32 %v650_v56, %v598_v10  ;;  %v817_v55 = vsub.f32 %v809_v41, %v815_v37 }
 0x1b1   : > { %v796_v58 = vpop.permute.xlu0 %795 }
 0x1b2   : > { %v684_v63 = vsub.f32 %v682_v28, %v651_v19  ;;  %v685_v2 = vsub.f32 %v683_v62, %v652_v31  ;;  %v964_v20 = vpop.permute.xlu1 %963  ;;  %v798_v56 = vmax.f32 %v3185_v21, %v796_v58  ;;  %v799_v60 = vmax.f32 %v3188_v6, %v796_v58 }
 0x1b3   : > { %v966_v27 = vmax.f32 %v3168_v7, %v964_v20  ;;  %v967_v37 = vmax.f32 %v3170_v12, %v964_v20  ;;  %v819_v41 = vmax.f32 %v817_v55, 0.0 }
 0x1b4   : > { %v686_v10 = vmul.f32 0.5, %v684_v63  ;;  %v687_v34 = vmul.f32 0.5, %v685_v2  ;;  %v800_v1 = vsub.f32 %v791_v26, %v798_v56  ;;  %v801_v3 = vsub.f32 %v792_v29, %v799_v60 }
 0x1b5   : > { %v3236_v9 = vpop.permute.xlu0 %871  ;;  %v961_v26 = vmin.f32 %v3174_v8, %v958_v25 }
 0x1b6   : > { %4327 = vst [vmem:[#allocation31_spill] sm:$0xff] %v3236_v9  ;;  %v688_v28 = vsub.f32 %v651_v19, %v686_v10  ;;  %v689_v62 = vsub.f32 %v652_v31, %v687_v34  ;;  %v802_v58 = vmax.f32 %v800_v1, 0.0  ;;  %v803_v63 = vmax.f32 %v801_v3, 0.0 }
 0x1b7   : > { %v3240_v2 = vpop.permute.xlu1 %1016  ;;  %v943_v19 = vmin.f32 %v3195_v49, %v3204_v32  ;;  %v944_v31 = vmin.f32 %v3198_v35, %v3204_v32  ;;  %v968_v3 = vsub.f32 %v960_v59, %v966_v27  ;;  %v969_v60 = vsub.f32 %v961_v26, %v967_v37 }
 0x1b8   : > { %4328 = vst [vmem:[#allocation32_spill] sm:$0xff] %v3240_v2  ;;  %v690_v5 = vrot.slane %v688_v28, 4  ;;  %v696_v51 = vrot.slane %v689_v62, 4  ;;  %v820_v29 = vmul.f32 %v818_v57, %v802_v58  ;;  %v821_v20 = vmul.f32 %v819_v41, %v803_v63 }
 0x1b9   : > { %v948_v13 = vpop.permute.xlu0 %947  ;;  %v984_v27 = vadd.f32 %v3113_v61, %v3208_v23  ;;  %v985_v37 = vadd.f32 %v3113_v61, %v3210_v52 }
 0x1ba   : > { %v691_v55 = vmax.f32 %v688_v28, %v690_v5  ;;  %v697_v56 = vmax.f32 %v689_v62, %v696_v51  ;;  %v834_v10 = vsub.f32 %v832_v14, %v820_v29  ;;  %v835_v34 = vsub.f32 %v833_v4, %v821_v20 }
 0x1bb   : > { %v950_v1 = vmax.f32 %v3185_v21, %v948_v13  ;;  %v951_v2 = vmax.f32 %v3188_v6, %v948_v13  ;;  %v970_v5 = vmax.f32 %v968_v3, 0.0  ;;  %v971_v51 = vmax.f32 %v969_v60, 0.0 }
 0x1bc   : > { %v692_v25 = vrot.slane %v691_v55, 2  ;;  %v698_v9 = vrot.slane %v697_v56, 2  ;;  %v3250_v50 = vpop.permute.xlu1 %1033  ;;  %v836_v18 = vmul.f32 0.5, %v834_v10  ;;  %v837_v33 = vmul.f32 0.5, %v835_v34 }
 0x1bd   : > { %4329 = vst [vmem:[#allocation33_spill] sm:$0xff] %v3250_v50  ;;  %v952_v32 = vsub.f32 %v943_v19, %v950_v1  ;;  %v953_v57 = vsub.f32 %v944_v31, %v951_v2  ;;  %v3252_v41 = vpop.permute.xlu0 %1023 }
 0x1be   : > { %v838_v28 = vsub.f32 %v820_v29, %v836_v18  ;;  %v839_v62 = vsub.f32 %v821_v20, %v837_v33  ;;  %v693_v58 = vmax.f32 %v691_v55, %v692_v25  ;;  %v699_v63 = vmax.f32 %v697_v56, %v698_v9 }
 0x1bf   : > { %v954_v14 = vmax.f32 %v952_v32, 0.0  ;;  %v955_v4 = vmax.f32 %v953_v57, 0.0 }
 0x1c0   : > { %v840_v59 = vrot.slane %v838_v28, 4  ;;  %v846_v26 = vrot.slane %v839_v62, 4  ;;  %v694_v29 = vrot.slane %v693_v58, 1  ;;  %v700_v20 = vrot.slane %v699_v63, 1 }
 0x1c1   : > { %v972_v19 = vmul.f32 %v970_v5, %v954_v14  ;;  %v973_v2 = vmul.f32 %v971_v51, %v955_v4  ;;  %v1093_v31 = vpop.permute.xlu1 %1092  ;;  %v1100_v33 = vpop.permute.xlu0 %1099 }
 0x1c2   : > { %v841_v13 = vmax.f32 %v838_v28, %v840_v59  ;;  %v847_v3 = vmax.f32 %v839_v62, %v846_v26  ;;  %v1095_v61 = vmin.f32 %v3195_v49, %v1093_v31  ;;  %v1096_v9 = vmin.f32 %v3198_v35, %v1093_v31 }
 0x1c3   : > { %v986_v60 = vsub.f32 %v984_v27, %v972_v19  ;;  %v987_v18 = vsub.f32 %v985_v37, %v973_v2  ;;  %v1102_v55 = vmax.f32 %v3185_v21, %v1100_v33  ;;  %v1103_v56 = vmax.f32 %v3188_v6, %v1100_v33 }
 0x1c4   : > { %v842_v10 = vrot.slane %v841_v13, 2  ;;  %v848_v34 = vrot.slane %v847_v3, 2  ;;  %v3262_v4 = vmax.f32 %v693_v58, %v694_v29  ;;  %v3264_v27 = vmax.f32 %v699_v63, %v700_v20 }
 0x1c5   : > { %v988_v1 = vmul.f32 0.5, %v986_v60  ;;  %v989_v32 = vmul.f32 0.5, %v987_v18  ;;  %v1104_v37 = vsub.f32 %v1095_v61, %v1102_v55  ;;  %v1105_v59 = vsub.f32 %v1096_v9, %v1103_v56  ;;  %v1176_v50 = vpop.permute.xlu0 %1175 }
 0x1c6   : > { %v1110_v25 = vpop.permute.xlu1 %1109  ;;  %v843_v57 = vmax.f32 %v841_v13, %v842_v10  ;;  %v849_v5 = vmax.f32 %v847_v3, %v848_v34  ;;  %v1178_v10 = vmax.f32 %v3185_v21, %v1176_v50  ;;  %v1179_v34 = vmax.f32 %v3188_v6, %v1176_v50 }
 0x1c7   : > { %v990_v51 = vsub.f32 %v972_v19, %v988_v1  ;;  %v991_v28 = vsub.f32 %v973_v2, %v989_v32  ;;  %v1112_v13 = vmin.f32 %v3172_v11, %v1110_v25  ;;  %v1113_v19 = vmin.f32 %v3174_v8, %v1110_v25 }
 0x1c8   : > { %v844_v62 = vrot.slane %v843_v57, 1  ;;  %v850_v14 = vrot.slane %v849_v5, 1  ;;  %v1106_v61 = vmax.f32 %v1104_v37, 0.0  ;;  %v1107_v9 = vmax.f32 %v1105_v59, 0.0 }
 0x1c9   : > { %v992_v18 = vrot.slane %v990_v51, 4  ;;  %v998_v33 = vrot.slane %v991_v28, 4 }
 0x1ca   : > { %v1116_v26 = vpop.permute.xlu1 %1115  ;;  %v3266_v60 = vmax.f32 %v843_v57, %v844_v62  ;;  %v3268_v31 = vmax.f32 %v849_v5, %v850_v14  ;;  %v1136_v62 = vadd.f32 %v3122_v0, %v3208_v23  ;;  %v1137_v14 = vadd.f32 %v3122_v0, %v3210_v52 }
 0x1cb   : > { %v1118_v2 = vmax.f32 %v3168_v7, %v1116_v26  ;;  %v1119_v58 = vmax.f32 %v3170_v12, %v1116_v26  ;;  %v993_v1 = vmax.f32 %v990_v51, %v992_v18  ;;  %v999_v32 = vmax.f32 %v991_v28, %v998_v33 }
 0x1cc   : > { %v776_v63 = vmax.f32 %v3262_v4, %v3266_v60  ;;  %v777_v3 = vmax.f32 %v3264_v27, %v3268_v31 }
 0x1cd   : > { %v1120_v29 = vsub.f32 %v1112_v13, %v1118_v2  ;;  %v1121_v20 = vsub.f32 %v1113_v19, %v1119_v58  ;;  %v994_v28 = vrot.slane %v993_v1, 2  ;;  %v1000_v37 = vrot.slane %v999_v32, 2 }
 0x1cf   : > { %v1169_v55 = vpop.permute.xlu1 %1168  ;;  %v1122_v56 = vmax.f32 %v1120_v29, 0.0  ;;  %v1123_v25 = vmax.f32 %v1121_v20, 0.0  ;;  %v995_v33 = vmax.f32 %v993_v1, %v994_v28  ;;  %v1001_v13 = vmax.f32 %v999_v32, %v1000_v37 }
 0x1d0   : > { %v1171_v57 = vmin.f32 %v3195_v49, %v1169_v55  ;;  %v1172_v5 = vmin.f32 %v3198_v35, %v1169_v55 }
 0x1d1   : > { %v1124_v4 = vmul.f32 %v1122_v56, %v1106_v61  ;;  %v1125_v27 = vmul.f32 %v1123_v25, %v1107_v9  ;;  %v996_v20 = vrot.slane %v995_v33, 1 }
 0x1d2   : > { %v3286_v50 = vsub.f32 %v1171_v57, %v1178_v10  ;;  %v3288_v51 = vsub.f32 %v1172_v5, %v1179_v34  ;;  %v1002_v10 = vrot.slane %v1001_v13, 1 }
 0x1d3   : > { %v1138_v59 = vsub.f32 %v1136_v62, %v1124_v4  ;;  %v1139_v26 = vsub.f32 %v1137_v14, %v1125_v27  ;;  %v997_v25 = vmax.f32 %v995_v33, %v996_v20  ;;  %v1252_v14 = vpop.permute.xlu0 %1251 }
 0x1d4   : > { %4330 = vst [vmem:[#allocation34_spill] sm:$0xff] %v3286_v50  ;;  %4331 = vst [vmem:[#allocation35_spill] sm:$0xff] %v3288_v51  ;;  %v3290_v60 = vpop.permute.xlu1 %1185  ;;  %v1003_v57 = vmax.f32 %v1001_v13, %v1002_v10  ;;  %v1254_v28 = vmax.f32 %v3185_v21, %v1252_v14  ;;  %v1255_v37 = vmax.f32 %v3188_v6, %v1252_v14 }
 0x1d5   : > { %4332 = vst [vmem:[#allocation36_spill] sm:$0xff] %v3290_v60  ;;  %v1140_v31 = vmul.f32 0.5, %v1138_v59  ;;  %v1141_v18 = vmul.f32 0.5, %v1139_v26  ;;  %v852_v26 = vmax.f32 %v776_v63, %v997_v25 }
 0x1d7   : > { %v1142_v19 = vsub.f32 %v1124_v4, %v1140_v31  ;;  %v1143_v2 = vsub.f32 %v1125_v27, %v1141_v18  ;;  %v853_v31 = vmax.f32 %v777_v3, %v1003_v57 }
 0x1d9   : > { %v3292_v58 = vpop.permute.xlu1 %1209  ;;  %v1144_v0 = vrot.slane %v1142_v19, 4  ;;  %v1150_v29 = vrot.slane %v1143_v2, 4 }
 0x1db   : > { %v1145_v34 = vmax.f32 %v1142_v19, %v1144_v0  ;;  %v1151_v61 = vmax.f32 %v1143_v2, %v1150_v29 }
 0x1dd   : > { %v1146_v9 = vrot.slane %v1145_v34, 2  ;;  %v1152_v55 = vrot.slane %v1151_v61, 2 }
 0x1de   : > { %v1245_v56 = vpop.permute.xlu1 %1244 }
 0x1df   : > { %v1147_v5 = vmax.f32 %v1145_v34, %v1146_v9  ;;  %v1153_v62 = vmax.f32 %v1151_v61, %v1152_v55  ;;  %v1247_v4 = vmin.f32 %v3195_v49, %v1245_v56  ;;  %v1248_v27 = vmin.f32 %v3198_v35, %v1245_v56 }
 0x1e1   : > { %v1148_v1 = vrot.slane %v1147_v5, 1  ;;  %v1154_v32 = vrot.slane %v1153_v62, 1  ;;  %v1256_v2 = vsub.f32 %v1247_v4, %v1254_v28  ;;  %v1257_v0 = vsub.f32 %v1248_v27, %v1255_v37 }
 0x1e3   : > { %v1262_v59 = vpop.permute.xlu1 %1261  ;;  %v1149_v18 = vmax.f32 %v1147_v5, %v1148_v1  ;;  %v1155_v19 = vmax.f32 %v1153_v62, %v1154_v32  ;;  %v1258_v56 = vmax.f32 %v1256_v2, 0.0  ;;  %v1259_v63 = vmax.f32 %v1257_v0, 0.0 }
 0x1e4   : > { %v1264_v20 = vmin.f32 %v3172_v11, %v1262_v59  ;;  %v1265_v10 = vmin.f32 %v3174_v8, %v1262_v59 }
 0x1e5   : > { %v928_v33 = vmax.f32 %v852_v26, %v1149_v18  ;;  %v929_v13 = vmax.f32 %v853_v31, %v1155_v19 }
 0x1e7   : > { %v1268_v29 = vpop.permute.xlu1 %1267 }
 0x1e8   : > { %v1270_v34 = vmax.f32 %v3168_v7, %v1268_v29  ;;  %v1271_v61 = vmax.f32 %v3170_v12, %v1268_v29 }
 0x1ea   : > { %v1272_v9 = vsub.f32 %v1264_v20, %v1270_v34  ;;  %v1273_v55 = vsub.f32 %v1265_v10, %v1271_v61 }
 0x1ec   : > { %v1274_v3 = vmax.f32 %v1272_v9, 0.0  ;;  %v1275_v25 = vmax.f32 %v1273_v55, 0.0  ;;  %v1286_v57 = vpop.permute.xlu1 %1285  ;;  %v1393_v55 = vadd.f32 %v3017_v15, %v2940_v38  ;;  %v4336_v15 = vmov 2  }
 0x1ed   : > { %v1288_v5 = vadd.f32 %v1286_v57, %v3208_v23  ;;  %v1289_v62 = vadd.f32 %v1286_v57, %v3210_v52  ;;  %v4334_v57 = vmov 0  }
 0x1ee   : > { %v1276_v14 = vmul.f32 %v1274_v3, %v1258_v56  ;;  %v1277_v1 = vmul.f32 %v1275_v25, %v1259_v63 }
 0x1f0   : > { %v1290_v32 = vsub.f32 %v1288_v5, %v1276_v14  ;;  %v1291_v4 = vsub.f32 %v1289_v62, %v1277_v1 }
 0x1f1   : > { %v3304_v27 = vpop.permute.xlu1 %1320 }
 0x1f2   : > { %v1292_v28 = vmul.f32 0.5, %v1290_v32  ;;  %v1293_v37 = vmul.f32 0.5, %v1291_v4 }
 0x1f4   : > { %v1294_v59 = vsub.f32 %v1276_v14, %v1292_v28  ;;  %v1295_v26 = vsub.f32 %v1277_v1, %v1293_v37  ;;  %v4335_v14 = vmov 1   ;;  %v1469_v1 = vadd.f32 %v3023_v17, %v2946_v40 }
 0x1f5   : > { %v1843_v40 = vmul.f32 0.5, %v2977_v47  ;;  %v1586_v47 = vmul.f32 %v3032_v30, %v2952_v42 }
 0x1f6   : > { %v1296_v31 = vrot.slane %v1294_v59, 4  ;;  %v1302_v18 = vrot.slane %v1295_v26, 4  ;;  %v3306_v19 = vpop.permute.xlu1 %1337 }
 0x1f7   : > { %4333 = vst [vmem:[#allocation37_spill] sm:$0xff] %v3306_v19 }
 0x1f8   : > { %v1297_v2 = vmax.f32 %v1294_v59, %v1296_v31  ;;  %v1303_v0 = vmax.f32 %v1295_v26, %v1302_v18 }
 0x1fa   : > { %v1298_v29 = vrot.slane %v1297_v2, 2  ;;  %v1304_v20 = vrot.slane %v1303_v0, 2  ;;  %v1356_v10 = vpop.permute.xlu1 %1355 }
 0x1fb   : > { %v1358_v34 = vmul.f32 %v1356_v10, %v2934_v36  ;;  %v1434_v36 = vmul.f32 %v3020_v16, %v2940_v38  ;;  %v1767_v38 = vmul.f32 0.5, %v2972_v46  ;;  %v3333_v16 = vld [vmem:[%s2863_s30 + $0x88] sm:$0xff]  ;;  %v1544_v46 = vsub.f32 %v2952_v42, %v3027_v22 }
 0x1fc   : > { %v1299_v61 = vmax.f32 %v1297_v2, %v1298_v29  ;;  %v1305_v9 = vmax.f32 %v1303_v0, %v1304_v20  ;;  %v1919_v17 = vmul.f32 0.5, %v3333_v16 }
 0x1fd   : > { %1361 = vperm.xlu1 %2574, %v1358_v34  }
 0x1fe   : > { %v1300_v56 = vrot.slane %v1299_v61, 1  ;;  %v1306_v63 = vrot.slane %v1305_v9, 1 }
 0x200   : > { %v1301_v3 = vmax.f32 %v1299_v61, %v1300_v56  ;;  %v1307_v25 = vmax.f32 %v1305_v9, %v1306_v63 }
 0x201   : > { %2575 = vset.pattern.permute.xlu1 %v4334_v57 }
 0x202   : > { %v3312_v5 = vmax.f32 %v928_v33, %v1301_v3  ;;  %v3314_v62 = vmax.f32 %v929_v13, %v1307_v25  ;;  %1396 = vperm.xlu1 %2575, %v1393_v55   ;;  %v1615_v33 = vmul.f32 0.5, %v2962_v44  ;;  %v1995_v44 = vmul.f32 0.5, %v2982_v48 }
 0x206   : > { %2576 = vset.pattern.permute.xlu1 %v4335_v14 }
 0x207   : > { %1413 = vperm.xlu1 %2576, %v1393_v55  }
 0x20b   : > { %1419 = vperm.xlu1 %2576, %v3088_v53   ;;  %v1691_v53 = vmul.f32 0.5, %v2967_v45  ;;  %v3345_v45 = vadd.f32 %v3027_v22, %v2952_v42 }
 0x20f   : > { %2577 = vset.pattern.permute.xlu1 %v4336_v15 }
 0x210   : > { %1437 = vperm.xlu1 %2577, %v1434_v36  }
 0x214   : > { %2578 = vset.pattern.permute.xlu1 %v4334_v57 }
 0x215   : > { %1472 = vperm.xlu1 %2578, %v1469_v1  }
 0x219   : > { %2579 = vset.pattern.permute.xlu1 %v4335_v14 }
 0x21a   : > { %1489 = vperm.xlu1 %2579, %v1469_v1  }
 0x21e   : > { %1617 = vrot.lane.b32.xlu1 %v1615_v33, %s2732_s3 }
 0x222   : > { %1693 = vrot.lane.b32.xlu1 %v1691_v53, %s2732_s3 }
 0x226   : > { %1769 = vrot.lane.b32.xlu1 %v1767_v38, %s2732_s3 }
 0x22a   : > { %1845 = vrot.lane.b32.xlu1 %v1843_v40, %s2732_s3 }
 0x22e   : > { %1921 = vrot.lane.b32.xlu1 %v1919_v17, %s2732_s3 }
 0x232   : > { %1997 = vrot.lane.b32.xlu1 %v1995_v44, %s2732_s3 }
 0x236   : > { %1963 = vrot.lane.b32.xlu1 %v3333_v16, %s2730_s1 }
 0x23a   : > { %1495 = vperm.xlu1 %2579, %v3094_v54   ;;  %v3358_v54 = vpop.permute.xlu0 %1327 }
 0x23e   : > { %2581 = vset.pattern.permute.xlu1 %v4334_v57  ;;  %v1404_v22 = vpop.permute.xlu0 %1403 }
 0x23f   : > { %1548 = vperm.xlu1 %2581, %v3345_v45   ;;  %v1406_v28 = vmax.f32 %v3185_v21, %v1404_v22  ;;  %v1407_v37 = vmax.f32 %v3188_v6, %v1404_v22 }
 0x243   : > { %1555 = vperm.xlu1 %2581, %v1544_v46  }
 0x247   : > { %2582 = vset.pattern.permute.xlu1 %v4335_v14 }
 0x248   : > { %1571 = vperm.xlu1 %2582, %v1544_v46  }
 0x24c   : > { %2583 = vset.pattern.permute.xlu1 %v4336_v15 }
 0x24d   : > { %1589 = vperm.xlu1 %2583, %v1586_v47  }
 0x251   : > { %2584 = vset.pattern.permute.xlu1 %v4334_v57 }
 0x278   : > { %v3356_v48 = vpop.permute.xlu1 %1361 }
 0x27d   : > { %v1397_v13 = vpop.permute.xlu1 %1396 }
 0x27e   : > { %v1399_v32 = vmin.f32 %v3195_v49, %v1397_v13  ;;  %v1400_v4 = vmin.f32 %v3198_v35, %v1397_v13 }
 0x280   : > { %v1408_v30 = vsub.f32 %v1399_v32, %v1406_v28  ;;  %v1409_v59 = vsub.f32 %v1400_v4, %v1407_v37  ;;  %v3373_v37 = vld [vmem:[%s2863_s30 + $0x68] sm:$0xff] }
 0x282   : > { %v1414_v42 = vpop.permute.xlu1 %1413  ;;  %v1410_v10 = vmax.f32 %v1408_v30, 0.0  ;;  %v1411_v34 = vmax.f32 %v1409_v59, 0.0 }
 0x283   : > { %v1416_v31 = vmin.f32 %v3172_v11, %v1414_v42  ;;  %v1417_v18 = vmin.f32 %v3174_v8, %v1414_v42 }
 0x286   : > { %v1420_v26 = vpop.permute.xlu1 %1419 }
 0x287   : > { %v1422_v2 = vmax.f32 %v3168_v7, %v1420_v26  ;;  %v1423_v0 = vmax.f32 %v3170_v12, %v1420_v26 }
 0x289   : > { %v1424_v29 = vsub.f32 %v1416_v31, %v1422_v2  ;;  %v1425_v20 = vsub.f32 %v1417_v18, %v1423_v0 }
 0x28b   : > { %v1426_v61 = vmax.f32 %v1424_v29, 0.0  ;;  %v1427_v9 = vmax.f32 %v1425_v20, 0.0  ;;  %v1438_v55 = vpop.permute.xlu1 %1437 }
 0x28c   : > { %v1440_v56 = vadd.f32 %v1438_v55, %v3208_v23  ;;  %v1441_v63 = vadd.f32 %v1438_v55, %v3210_v52  ;;  %v3393_v55 = vld [vmem:[%s2863_s30 + $0x78] sm:$0xff] }
 0x28d   : > { %v1428_v3 = vmul.f32 %v1426_v61, %v1410_v10  ;;  %v1429_v25 = vmul.f32 %v1427_v9, %v1411_v34  ;;  %v2643_v61 = vld [vmem:[%s2863_s30 + $0x70] sm:$0xff] }
 0x28f   : > { %v1442_v36 = vsub.f32 %v1440_v56, %v1428_v3  ;;  %v1443_v1 = vsub.f32 %v1441_v63, %v1429_v25 }
 0x290   : > { %v1473_v33 = vpop.permute.xlu1 %1472 }
 0x291   : > { %v1444_v53 = vmul.f32 0.5, %v1442_v36  ;;  %v1445_v38 = vmul.f32 0.5, %v1443_v1 }
 0x293   : > { %v1446_v40 = vsub.f32 %v1428_v3, %v1444_v53  ;;  %v1447_v17 = vsub.f32 %v1429_v25, %v1445_v38  ;;  %v3398_v3 = vld [vmem:[%s2863_s30 + $0x80] sm:$0xff]  ;;  %v1480_v38 = vpop.permute.xlu0 %1479 }
 0x295   : > { %v1448_v44 = vrot.slane %v1446_v40, 4  ;;  %v1454_v46 = vrot.slane %v1447_v17, 4  ;;  %v3370_v47 = vpop.permute.xlu1 %1489 }
 0x297   : > { %v1449_v13 = vmax.f32 %v1446_v40, %v1448_v44  ;;  %v1455_v22 = vmax.f32 %v1447_v17, %v1454_v46  ;;  %v3410_v40 = vld [vmem:[%s2863_s30 + $0x90] sm:$0xff]  ;;  %v1475_v44 = vmin.f32 %v3195_v49, %v1473_v33  ;;  %v1476_v46 = vmin.f32 %v3198_v35, %v1473_v33 }
 0x298   : > { %v1492_v33 = vmin.f32 %v3172_v11, %v3370_v47 }
 0x299   : > { %v1450_v32 = vrot.slane %v1449_v13, 2  ;;  %v1456_v4 = vrot.slane %v1455_v22, 2  ;;  %v1618_v28 = vpop.permute.xlu1 %1617 }
 0x29a   : > { %v3376_v42 = vsub.f32 %v3373_v37, %v1618_v28  ;;  %v1621_v30 = vadd.f32 %v3373_v37, %v1618_v28 }
 0x29b   : > { %v1451_v59 = vmax.f32 %v1449_v13, %v1450_v32  ;;  %v1457_v26 = vmax.f32 %v1455_v22, %v1456_v4  ;;  %v1482_v13 = vmax.f32 %v3185_v21, %v1480_v38  ;;  %v1483_v22 = vmax.f32 %v3188_v6, %v1480_v38 }
 0x29c   : > { %1631 = vperm.xlu1 %2584, %v3376_v42   ;;  %1624 = vperm.xlu0 %2593, %v1621_v30  }
 0x29d   : > { %v1452_v31 = vrot.slane %v1451_v59, 1  ;;  %v1458_v18 = vrot.slane %v1457_v26, 1  ;;  %v1694_v2 = vpop.permute.xlu1 %1693  ;;  %v1484_v28 = vsub.f32 %v1475_v44, %v1482_v13  ;;  %v4337_v13 = vld [vmem:[#allocation9_spill] sm:$0xff] }
 0x29e   : > { %v3390_v9 = vadd.f32 %v2643_v61, %v1694_v2  ;;  %v1696_v36 = vsub.f32 %v2643_v61, %v1694_v2  ;;  %v1516_v61 = vadd.f32 %v3158_v24, %v3208_v23 }
 0x29f   : > { %v3380_v0 = vmax.f32 %v1451_v59, %v1452_v31  ;;  %v3382_v29 = vmax.f32 %v1457_v26, %v1458_v18  ;;  %v1493_v26 = vmin.f32 %v3174_v8, %v3370_v47 }
 0x2a0   : > { %2585 = vset.pattern.permute.xlu1 %v4335_v14 }
 0x2a1   : > { %v1080_v20 = vmax.f32 %v3312_v5, %v3380_v0  ;;  %v1081_v10 = vmax.f32 %v3314_v62, %v3382_v29  ;;  %v1770_v34 = vpop.permute.xlu1 %1769  ;;  %1641 = vperm.xlu1 %2585, %v1621_v30   ;;  %v1485_v30 = vsub.f32 %v1476_v46, %v1483_v22  ;;  %v1662_v22 = vmul.f32 %v3373_v37, %v4337_v13  ;;  %v4342_v13 = vld [vmem:[#allocation12_spill] sm:$0xff]  ;;  %v4345_v5 = vld [vmem:[#allocation18_spill] sm:$0xff] }
 0x2a2   : > { %v1773_v56 = vadd.f32 %v3393_v55, %v1770_v34  ;;  %v3425_v4 = vsub.f32 %v3393_v55, %v1770_v34  ;;  %v1814_v62 = vmul.f32 %v3393_v55, %v4345_v5  ;;  %v4346_v29 = vld [vmem:[#allocation20_spill] sm:$0xff] }
 0x2a3   : > { %v1487_v38 = vmax.f32 %v1485_v30, 0.0 }
 0x2a4   : > { %1776 = vperm.xlu0 %2593, %v1773_v56  }
 0x2a5   : > { %v1846_v63 = vpop.permute.xlu1 %1845  ;;  %2586 = vset.pattern.permute.xlu1 %v4334_v57 }
 0x2a6   : > { %v3401_v25 = vsub.f32 %v3398_v3, %v1846_v63  ;;  %1700 = vperm.xlu1 %2586, %v3390_v9  }
 0x2a8   : > { %1859 = vperm.xlu0 %2593, %v3401_v25  }
 0x2a9   : > { %v3405_v1 = vpop.permute.xlu1 %1921 }
 0x2aa   : > { %1707 = vperm.xlu1 %2586, %v1696_v36  }
 0x2ad   : > { %v3407_v53 = vpop.permute.xlu1 %1997 }
 0x2ae   : > { %v3414_v17 = vadd.f32 %v3410_v40, %v3407_v53  ;;  %2587 = vset.pattern.permute.xlu1 %v4335_v14  ;;  %v2000_v0 = vsub.f32 %v3410_v40, %v3407_v53  ;;  %v4349_v53 = vld [vmem:[#allocation31_spill] sm:$0xff] }
 0x2af   : > { %1723 = vperm.xlu1 %2587, %v1696_v36   ;;  %v1486_v36 = vmax.f32 %v1484_v28, 0.0 }
 0x2b0   : > { %2004 = vperm.xlu0 %2593, %v3414_v17  }
 0x2b1   : > { %v3422_v32 = vpop.permute.xlu1 %1963 }
 0x2b2   : > { %v1966_v55 = vmul.f32 %v3422_v32, %v3333_v16 }
 0x2b3   : > { %2588 = vset.pattern.permute.xlu1 %v4334_v57 }
 0x2b4   : > { %1783 = vperm.xlu1 %2588, %v3425_v4   ;;  %2597 = vset.pattern.permute.xlu0 %v4335_v14 }
 0x2b5   : > { %v1496_v59 = vpop.permute.xlu1 %1495  ;;  %735 = vperm.xlu0 %2597, %v3047_v39   ;;  %v1517_v39 = vadd.f32 %v3158_v24, %v3210_v52 }
 0x2b6   : > { %v1498_v31 = vmax.f32 %v3168_v7, %v1496_v59  ;;  %v1499_v18 = vmax.f32 %v3170_v12, %v1496_v59 }
 0x2b8   : > { %v1500_v2 = vsub.f32 %v1492_v33, %v1498_v31  ;;  %v1501_v34 = vsub.f32 %v1493_v26, %v1499_v18  ;;  %2589 = vset.pattern.permute.xlu1 %v4335_v14  ;;  %v4338_v26 = vld [vmem:[#allocation10_spill] sm:$0xff] }
 0x2b9   : > { %1793 = vperm.xlu1 %2589, %v1773_v56   ;;  %887 = vperm.xlu0 %2597, %v3055_v43  }
 0x2ba   : > { %v1502_v47 = vmax.f32 %v1500_v2, 0.0  ;;  %v1503_v44 = vmax.f32 %v1501_v34, 0.0  ;;  %v1549_v46 = vpop.permute.xlu1 %1548  ;;  %v1849_v34 = vadd.f32 %v3398_v3, %v1846_v63 }
 0x2bb   : > { %v1551_v31 = vmin.f32 %v3195_v49, %v1549_v46  ;;  %v1552_v24 = vmin.f32 %v3198_v35, %v1549_v46 }
 0x2bc   : > { %v1504_v59 = vmul.f32 %v1502_v47, %v1486_v36  ;;  %v1505_v33 = vmul.f32 %v1503_v44, %v1487_v38  ;;  %v4339_v36 = vld [vmem:[#allocation11_spill] sm:$0xff] }
 0x2bd   : > { %2590 = vset.pattern.permute.xlu1 %v4336_v15  ;;  %1039 = vperm.xlu0 %2597, %v4338_v26  }
 0x2be   : > { %v1518_v56 = vsub.f32 %v1516_v61, %v1504_v59  ;;  %v1519_v43 = vsub.f32 %v1517_v39, %v1505_v33  ;;  %1665 = vperm.xlu1 %2590, %v1662_v22   ;;  %v1556_v28 = vpop.permute.xlu1 %1555 }
 0x2bf   : > { %v1558_v30 = vmax.f32 %v3185_v21, %v1556_v28  ;;  %v1559_v18 = vmax.f32 %v3188_v6, %v1556_v28 }
 0x2c0   : > { %v1520_v2 = vmul.f32 0.5, %v1518_v56  ;;  %v1521_v37 = vmul.f32 0.5, %v1519_v43 }
 0x2c1   : > { %1191 = vperm.xlu0 %2597, %v4339_v36   ;;  %v3453_v38 = vsub.f32 %v1551_v31, %v1558_v30  ;;  %v3455_v47 = vsub.f32 %v1552_v24, %v1559_v18  ;;  %v1925_v30 = vadd.f32 %v3405_v1, %v3333_v16 }
 0x2c2   : > { %v1522_v44 = vsub.f32 %v1504_v59, %v1520_v2  ;;  %v1523_v46 = vsub.f32 %v1505_v33, %v1521_v37  ;;  %2591 = vset.pattern.permute.xlu1 %v4334_v57 }
 0x2c3   : > { %4340 = vst [vmem:[#allocation9_spill] sm:$0xff] %v3453_v38  ;;  %4341 = vst [vmem:[#allocation10_spill] sm:$0xff] %v3455_v47  ;;  %1852 = vperm.xlu1 %2591, %v1849_v34  }
 0x2c4   : > { %v1524_v61 = vrot.slane %v1522_v44, 4  ;;  %v1530_v39 = vrot.slane %v1523_v46, 4 }
 0x2c5   : > { %1343 = vperm.xlu0 %2597, %v4342_v13   ;;  %v1026_v13 = vmax.f32 %v3185_v21, %v3252_v41 }
 0x2c6   : > { %v1525_v22 = vmax.f32 %v1522_v44, %v1524_v61  ;;  %v1531_v26 = vmax.f32 %v1523_v46, %v1530_v39  ;;  %v4354_v61 = vld [vmem:[#allocation15_spill] sm:$0xff] }
 0x2c7   : > { %2592 = vset.pattern.permute.xlu1 %v4335_v14  ;;  %v3531_v39 = vadd.f32 %v4354_v61, %v3208_v23 }
 0x2c8   : > { %v1526_v63 = vrot.slane %v1525_v22, 2  ;;  %v1532_v56 = vrot.slane %v1531_v26, 2  ;;  %1869 = vperm.xlu1 %2592, %v1849_v34   ;;  %v4353_v34 = vld [vmem:[#allocation25_spill] sm:$0xff] }
 0x2c9   : > { %1565 = vperm.xlu0 %2597, %v3345_v45   ;;  %v867_v36 = vmin.f32 %v3195_v49, %v4353_v34  ;;  %v868_v44 = vmin.f32 %v3198_v35, %v4353_v34  ;;  %4355 = vst [vmem:[#allocation18_spill] sm:$0xff] %v3531_v39  ;;  %v4367_v34 = vld [vmem:[#allocation33_spill] sm:$0xff] }
 0x2ca   : > { %v1527_v31 = vmax.f32 %v1525_v22, %v1526_v63  ;;  %v1533_v24 = vmax.f32 %v1531_v26, %v1532_v56  ;;  %v1027_v22 = vmax.f32 %v3188_v6, %v3252_v41  ;;  %v3537_v26 = vpop.permute.xlu1 %1571  ;;  %v1323_v41 = vmin.f32 %v3195_v49, %v3304_v27 }
 0x2cb   : > { %4356 = vst [vmem:[#allocation20_spill] sm:$0xff] %v3537_v26 }
 0x2cc   : > { %v1528_v59 = vrot.slane %v1527_v31, 1  ;;  %v1534_v33 = vrot.slane %v1533_v24, 1  ;;  %1875 = vperm.xlu1 %2592, %v3401_v25   ;;  %v4348_v25 = vld [vmem:[#allocation30_spill] sm:$0xff] }
 0x2cd   : > { %1647 = vperm.xlu0 %2597, %v3376_v42   ;;  %v1924_v42 = vsub.f32 %v3333_v16, %v3405_v1  ;;  %v722_v1 = vmax.f32 %v3185_v21, %v4348_v25 }
 0x2ce   : > { %v1529_v43 = vmax.f32 %v1527_v31, %v1528_v59  ;;  %v1535_v28 = vmax.f32 %v1533_v24, %v1534_v33  ;;  %v4357_v59 = vld [vmem:[#allocation32_spill] sm:$0xff] }
 0x2cf   : > { %v1019_v33 = vmin.f32 %v3195_v49, %v4357_v59 }
 0x2d0   : > { %v3468_v18 = vmax.f32 %v1080_v20, %v1529_v43  ;;  %v3473_v45 = vmax.f32 %v1081_v10, %v1535_v28  ;;  %2594 = vset.pattern.permute.xlu1 %v4334_v57  ;;  %v2042_v20 = vmul.f32 %v3410_v40, %v4346_v29  ;;  %v4347_v10 = vld [vmem:[#allocation19_spill] sm:$0xff]  ;;  %v875_v40 = vmax.f32 %v3188_v6, %v4349_v53  ;;  %v405_v29 = vld [vmem:[%s2865_s21 + $0x38] sm:$0x1] }
 0x2d1   : > { %1928 = vperm.xlu1 %2594, %v1925_v30   ;;  %1717 = vperm.xlu0 %2597, %v3390_v9   ;;  %v1890_v9 = vmul.f32 %v3398_v3, %v4347_v10  ;;  %v4350_v3 = vld [vmem:[#allocation13_spill] sm:$0xff]  ;;  %v1020_v43 = vmin.f32 %v3198_v35, %v4357_v59  ;;  %v1330_v28 = vmax.f32 %v3185_v21, %v3358_v54  ;;  %v403_v10 = vld [vmem:[%s2865_s21 + $0x28] sm:$0xff] }
 0x2d2   : > { %4343 = vst [vmem:[#allocation11_spill] sm:$0xff] %v3468_v18  ;;  %4344 = vst [vmem:[#allocation12_spill] sm:$0xff] %v3473_v45  ;;  %v3511_v16 = vadd.f32 %v4350_v3, %v3210_v52  ;;  %v3545_v24 = vsub.f32 %v868_v44, %v875_v40  ;;  %v3590_v40 = vld [vmem:[%s2867_s17] sm:$0xff]  ;;  %v4380_v45 = vld [vmem:[#allocation22_spill] sm:$0xff] }
 0x2d3   : > { %4364 = vst [vmem:[#allocation13_spill] sm:$0xff] %v3590_v40  ;;  %v402_v44 = vld [vmem:[%s2865_s21 + $0x20] sm:$0xff]  ;;  %v3664_v38 = vrot.slane %v3590_v40, 1 }
 0x2d4   : > { %v4381_v18 = vld [vmem:[#allocation21_spill] sm:$0xff] }
 0x2d5   : > { %1935 = vperm.xlu1 %2594, %v1924_v42   ;;  %1799 = vperm.xlu0 %2597, %v3425_v4   ;;  %v4352_v4 = vld [vmem:[#allocation16_spill] sm:$0xff]  ;;  %4374 = vst [vmem:[#allocation33_spill] sm:$0xff] %v3664_v38 }
 0x2d6   : > { %v715_v2 = vmin.f32 %v3195_v49, %v4352_v4  ;;  %v716_v37 = vmin.f32 %v3198_v35, %v4352_v4  ;;  %v400_v4 = vld [vmem:[%s2865_s21 + $0x10] sm:$0xff] }
 0x2d8   : > { %v3539_v63 = vsub.f32 %v715_v2, %v722_v1  ;;  %v3576_v1 = vld [vmem:[%s2865_s21] sm:$0xff]  ;;  %v3628_v2 = vadd.f32 %v3292_v58, %v3210_v52 }
 0x2d9   : > { %2595 = vset.pattern.permute.xlu1 %v4335_v14  ;;  %1945 = vperm.xlu0 %2597, %v1925_v30   ;;  %v3557_v30 = vadd.f32 %v4354_v61, %v3210_v52 }
 0x2da   : > { %1951 = vperm.xlu1 %2595, %v1924_v42   ;;  %v4359_v42 = vld [vmem:[#allocation17_spill] sm:$0xff] }
 0x2db   : > { %4358 = vst [vmem:[#allocation19_spill] sm:$0xff] %v3557_v30  ;;  %4371 = vst [vmem:[#allocation17_spill] sm:$0xff] %v3628_v2  ;;  %v446_v2 = vmin.f32 %v4381_v18, %v4380_v45 }
 0x2dd   : > { %2027 = vperm.xlu0 %2597, %v2000_v0  }
 0x2de   : > { %2596 = vset.pattern.permute.xlu1 %v4336_v15 }
 0x2df   : > { %1817 = vperm.xlu1 %2596, %v1814_v62   ;;  %v1324_v62 = vmin.f32 %v3198_v35, %v3304_v27  ;;  %v2175_v27 = vand.u32 2147483647, %v400_v4 }
 0x2e1   : > { %2601 = vset.pattern.permute.xlu0 %v4336_v15 }
 0x2e2   : > { %2045 = vperm.xlu0 %2601, %v2042_v20   ;;  %v4360_v20 = vld [vmem:[#allocation26_spill] sm:$0xff] }
 0x2e3   : > { %2598 = vset.pattern.permute.xlu1 %v4334_v57  ;;  %v723_v57 = vmax.f32 %v3188_v6, %v4348_v25  ;;  %v3573_v25 = vpop.permute.xlu1 %1589 }
 0x2e4   : > { %2011 = vperm.xlu1 %2598, %v2000_v0   ;;  %v1331_v0 = vmax.f32 %v3188_v6, %v3358_v54  ;;  %v4361_v54 = vld [vmem:[#allocation27_spill] sm:$0xff] }
 0x2e5   : > { %v3541_v56 = vsub.f32 %v716_v37, %v723_v57  ;;  %v3582_v57 = vadd.f32 %v4361_v54, %v3208_v23  ;;  %v3598_v37 = vsub.f32 %v1323_v41, %v1330_v28  ;;  %v434_v41 = vmul.f32 0.5, %v3590_v40 }
 0x2e6   : > { %v3604_v61 = vsub.f32 %v1324_v62, %v1331_v0  ;;  %v401_v0 = vld [vmem:[%s2865_s21 + $0x18] sm:$0xff]  ;;  %v3644_v62 = vadd.f32 %v3356_v48, %v3208_v23 }
 0x2e7   : > { %4362 = vst [vmem:[#allocation30_spill] sm:$0xff] %v3582_v57  ;;  %4366 = vst [vmem:[#allocation16_spill] sm:$0xff] %v3598_v37  ;;  %v438_v5 = vrot.slane %v434_v41, 2  ;;  %v2176_v57 = vand.u32 2147483647, %v401_v0  ;;  %v3668_v41 = vadd.f32 %v3573_v25, %v3208_v23 }
 0x2e8   : > { %2599 = vset.pattern.permute.xlu1 %v4335_v14  ;;  %v874_v14 = vmax.f32 %v3185_v21, %v4349_v53  ;;  %v3586_v53 = vadd.f32 %v4361_v54, %v3210_v52  ;;  %4368 = vst [vmem:[#allocation25_spill] sm:$0xff] %v3604_v61  ;;  %4372 = vst [vmem:[#allocation26_spill] sm:$0xff] %v3644_v62  ;;  %v2178_v37 = vand.u32 2147483647, %v403_v10 }
 0x2e9   : > { %2021 = vperm.xlu1 %2599, %v3414_v17   ;;  %v4351_v17 = vld [vmem:[#allocation14_spill] sm:$0xff]  ;;  %4375 = vst [vmem:[#allocation38_spill] sm:$0xff] %v3668_v41 }
 0x2ea   : > { %v3515_v32 = vadd.f32 %v4351_v17, %v3208_v23  ;;  %v3527_v46 = vadd.f32 %v4351_v17, %v3210_v52  ;;  %v3543_v31 = vsub.f32 %v867_v36, %v874_v14  ;;  %4363 = vst [vmem:[#allocation31_spill] sm:$0xff] %v3586_v53  ;;  %v404_v14 = vld [vmem:[%s2865_s21 + $0x30] sm:$0x1]  ;;  %v3650_v36 = vadd.f32 %v3356_v48, %v3210_v52 }
 0x2eb   : > { %v2179_v19 = vand.u32 2147483647, %v404_v14  ;;  %v2180_v48 = vand.u32 2147483647, %v405_v29  ;;  %v3672_v29 = vadd.f32 %v3573_v25, %v3210_v52 }
 0x2ec   : > { %4373 = vst [vmem:[#allocation27_spill] sm:$0xff] %v3650_v36  ;;  %v442_v36 = vsub.f32 %v3590_v40, %v438_v5 }
 0x2ed   : > { %2600 = vset.pattern.permute.xlu1 %v4336_v15  ;;  %v3507_v15 = vadd.f32 %v4350_v3, %v3208_v23  ;;  %v3593_v3 = vld [vmem:[%s2867_s17 + $0x8] sm:$0xff]  ;;  %4376 = vst [vmem:[#allocation39_spill] sm:$0xff] %v3672_v29 }
 0x2ee   : > { %1893 = vperm.xlu1 %2600, %v1890_v9   ;;  %v3569_v9 = vsub.f32 %v1019_v33, %v1026_v13  ;;  %4365 = vst [vmem:[#allocation14_spill] sm:$0xff] %v3593_v3  ;;  %v3607_v13 = vld [vmem:[%s2865_s21 + $0x8] sm:$0xff]  ;;  %v435_v28 = vmul.f32 0.5, %v3593_v3  ;;  %v3624_v33 = vadd.f32 %v3292_v58, %v3208_v23  ;;  %v2181_v58 = vsub.f32 0.0, %v2175_v27 }
 0x2ef   : > { %4369 = vst [vmem:[#allocation15_spill] sm:$0xff] %v3607_v13  ;;  %v2081_v54 = vand.u32 2147483647, %v3607_v13  ;;  %v3683_v27 = vmul.f32 %v3664_v38, %v3590_v40 }
 0x2f0   : > { %4370 = vst [vmem:[#allocation32_spill] sm:$0xff] %v3624_v33  ;;  %v439_v53 = vrot.slane %v435_v28, 2  ;;  %v2187_v29 = vmul.f32 1.442695, %v2181_v58  ;;  %v447_v58 = vmax.f32 %v4381_v18, %v4380_v45 }
 0x2f1   : > { %v2083_v62 = vsub.f32 0.0, %v2081_v54  ;;  %v2182_v54 = vsub.f32 0.0, %v2176_v57  ;;  %4378 = vst [vmem:[#allocation41_spill] sm:$0xff] %v3683_v27  ;;  %v2185_v57 = vsub.f32 0.0, %v2179_v19 }
 0x2f2   : > { %1969 = vperm.xlu1 %2600, %v1966_v55   ;;  %v3571_v55 = vsub.f32 %v1020_v43, %v1027_v22  ;;  %v2080_v22 = vand.u32 2147483647, %v3576_v1  ;;  %v443_v4 = vsub.f32 %v3593_v3, %v439_v53  ;;  %v445_v0 = vadd.f32 %v439_v53, %v3593_v3 }
 0x2f3   : > { %v3679_v53 = vrot.slane %v3593_v3, 1  ;;  %v2189_v52 = vmul.f32 1.442695, %v2182_v54  ;;  %v2195_v50 = vmul.f32 1.442695, %v2185_v57 }
 0x2f4   : > { %v2082_v17 = vsub.f32 0.0, %v2080_v22  ;;  %v2177_v22 = vand.u32 2147483647, %v402_v44  ;;  %v444_v44 = vadd.f32 %v438_v5, %v3590_v40  ;;  %v2184_v5 = vsub.f32 0.0, %v2178_v37 }
 0x2f5   : > { %4377 = vst [vmem:[#allocation40_spill] sm:$0xff] %v3679_v53  ;;  %v449_v23 = vmin.f32 %v443_v4, %v445_v0  ;;  %v451_v25 = vmax.f32 %v443_v4, %v445_v0  ;;  %v3687_v37 = vmul.f32 %v3679_v53, %v3593_v3  ;;  %v452_v53 = vsub.f32 %v447_v58, %v446_v2 }
 0x2f6   : > { %v2084_v28 = vmul.f32 1.442695, %v2082_v17  ;;  %v2183_v10 = vsub.f32 0.0, %v2177_v22  ;;  %v2086_v17 = vmul.f32 1.442695, %v2083_v62  ;;  %v2186_v22 = vsub.f32 0.0, %v2180_v48 }
 0x2f7   : > { %v448_v41 = vmin.f32 %v442_v36, %v444_v44  ;;  %v450_v26 = vmax.f32 %v442_v36, %v444_v44  ;;  %4379 = vst [vmem:[#allocation42_spill] sm:$0xff] %v3687_v37  ;;  %v459_v38 = vsub.f32 %v451_v25, %v449_v23  ;;  %v423_v36 = vmul.f32 0.00024414063, %v3683_v27 }
 0x2f8   : > { %2602 = vpow2.f32 %v2084_v28  ;;  %v2191_v62 = vmul.f32 1.442695, %v2183_v10  ;;  %v2193_v51 = vmul.f32 1.442695, %v2184_v5  ;;  %v424_v27 = vmul.f32 0.00024414063, %v3687_v37 }
 0x2f9   : > { %v458_v33 = vsub.f32 %v450_v26, %v448_v41  ;;  %v470_v0 = vcombine.low %v450_v26, %v451_v25  ;;  %v475_v54 = vcombine.low %v448_v41, %v449_v23  ;;  %2604 = vpow2.f32 %v2086_v17 }
 0x2fa   : > { %v463_v39 = vrot.slane %v459_v38, 1  ;;  %2606 = vpow2.f32 %v2187_v29  ;;  %v425_v45 = vsub.f32 2.0, %v423_v36  ;;  %v2472_v17 = vrot.slane %v452_v53, 9 }
 0x2fb   : > { %v462_v30 = vrot.slane %v458_v33, 1  ;;  %2608 = vpow2.f32 %v2189_v52  ;;  %v472_v23 = vmin.f32 %v447_v58, %v470_v0  ;;  %v477_v41 = vmax.f32 %v446_v2, %v475_v54 }
 0x2fc   : > { %2610 = vpow2.f32 %v2191_v62  ;;  %v493_v5 = vmax.f32 %v447_v58, %v470_v0  ;;  %v494_v57 = vmin.f32 %v446_v2, %v475_v54  ;;  %v426_v25 = vsub.f32 2.0, %v424_v27 }
 0x2fd   : > { %2612 = vpow2.f32 %v2193_v51  ;;  %v466_v37 = vmul.f32 %v462_v30, %v458_v33  ;;  %v467_v60 = vmul.f32 %v463_v39, %v459_v38  ;;  %v508_v52 = vrot.slane %v425_v45, 6 }
 0x2fe   : > { %2614 = vpow2.f32 %v2195_v50  ;;  %v3719_v2 = vsub.f32 %v472_v23, %v477_v41  ;;  %v457_v39 = vmul.f32 %v2472_v17, %v452_v53  ;;  %v3725_v30 = vsub.f32 %v493_v5, %v494_v57 }
 0x2ff   : > { %v487_v58 = vcombine.low %v466_v37, %v467_v60  ;;  %v3740_v54 = vmul.f32 %v508_v52, %v3590_v40  ;;  %v4384_v60 = vmin.f32 %v3172_v11, %v4359_v42  ;;  %v4390_v62 = vmax.f32 %v3539_v63, 0.0 }
 0x300   : > { %v4290_v41 = vmax.f32 %v3719_v2, 0.0  ;;  %v4291_v57 = vmax.f32 %v3725_v30, 0.0 }
 0x301   : > { %4383 = vst [vmem:[#allocation21_spill] sm:$0xff] %v3740_v54 }
 0x305   : > { %v3727_v33 = vpop.eup %2602 }
 0x306   : > { %v3758_v52 = vpop.eup %2604 }
 0x307   : > { %4386 = vst [vmem:[#allocation43_spill] sm:$0xff] %v3758_v52 }
 0x317   : > { %v3612_v43 = vpop.permute.xlu1 %1631  ;;  %v1625_v61 = vpop.permute.xlu0 %1624 }
 0x318   : > { %v1634_v19 = vmax.f32 %v3185_v21, %v3612_v43  ;;  %v1627_v48 = vmin.f32 %v3195_v49, %v1625_v61  ;;  %v1635_v28 = vmax.f32 %v3188_v6, %v3612_v43  ;;  %v1628_v4 = vmin.f32 %v3198_v35, %v1625_v61 }
 0x319   : > { %v2197_v61 = vmul.f32 1.442695, %v2186_v22 }
 0x31a   : > { %v3705_v18 = vsub.f32 %v1627_v48, %v1634_v19  ;;  %v3707_v43 = vsub.f32 %v1628_v4, %v1635_v28  ;;  %v3731_v28 = vrot.slane %v426_v25, 6 }
 0x31b   : > { %2616 = vpow2.f32 %v2197_v61  ;;  %v4385_v61 = vmin.f32 %v3174_v8, %v4359_v42 }
 0x31c   : > { %v3652_v59 = vpop.permute.xlu1 %1641  ;;  %4382 = vst [vmem:[#allocation22_spill] sm:$0xff] %v3731_v28 }
 0x31f   : > { %v3674_v14 = vpop.permute.xlu0 %1776 }
 0x321   : > { %v3676_v47 = vpop.permute.xlu1 %1700 }
 0x322   : > { %v1703_v4 = vmin.f32 %v3195_v49, %v3676_v47  ;;  %v1704_v45 = vmin.f32 %v3198_v35, %v3676_v47 }
 0x323   : > { %v3700_v44 = vpop.permute.xlu0 %1859 }
 0x325   : > { %v3702_v10 = vpop.permute.xlu1 %1707 }
 0x326   : > { %v1710_v0 = vmax.f32 %v3185_v21, %v3702_v10  ;;  %v1711_v53 = vmax.f32 %v3188_v6, %v3702_v10 }
 0x328   : > { %v3768_v22 = vsub.f32 %v1704_v45, %v1711_v53  ;;  %v4395_v45 = vmin.f32 %v3174_v8, %v4360_v20 }
 0x32a   : > { %v3712_v19 = vpop.permute.xlu1 %1723 }
 0x32b   : > { %v3709_v26 = vpop.permute.xlu0 %2004 }
 0x32f   : > { %v3753_v10 = vpop.permute.xlu1 %1783 }
 0x330   : > { %v736_v38 = vpop.permute.xlu0 %735 }
 0x331   : > { %v738_v27 = vmax.f32 %v3168_v7, %v736_v38  ;;  %v739_v36 = vmax.f32 %v3170_v12, %v736_v38 }
 0x333   : > { %v740_v37 = vsub.f32 %v4384_v60, %v738_v27  ;;  %v741_v23 = vsub.f32 %v4385_v61, %v739_v36  ;;  %v3762_v36 = vadd.f32 %v487_v58, %v457_v39  ;;  %v3764_v60 = vpop.eup %2606  ;;  %v3766_v61 = vsub.f32 %v1703_v4, %v1710_v0 }
 0x334   : > { %v888_v5 = vpop.permute.xlu0 %887  ;;  %4388 = vst [vmem:[#allocation45_spill] sm:$0xff] %v3764_v60  ;;  %v3772_v25 = vpop.eup %2608  ;;  %v3780_v39 = vrot.slane %v4290_v41, 9  ;;  %v4394_v0 = vmin.f32 %v3172_v11, %v4360_v20 }
 0x335   : > { %v742_v38 = vmax.f32 %v740_v37, 0.0  ;;  %v743_v27 = vmax.f32 %v741_v23, 0.0  ;;  %4387 = vst [vmem:[#allocation44_spill] sm:$0xff] %v3762_v36  ;;  %v890_v29 = vmax.f32 %v3168_v7, %v888_v5  ;;  %v891_v47 = vmax.f32 %v3170_v12, %v888_v5  ;;  %4389 = vst [vmem:[#allocation46_spill] sm:$0xff] %v3772_v25  ;;  %v3783_v4 = vpop.eup %2610 }
 0x336   : > { %v4391_v37 = vmax.f32 %v3541_v56, 0.0  ;;  %4392 = vst [vmem:[#allocation47_spill] sm:$0xff] %v3780_v39  ;;  %4393 = vst [vmem:[#allocation48_spill] sm:$0xff] %v3783_v4  ;;  %v3793_v56 = vrot.slane %v4291_v57, 9 }
 0x337   : > { %v744_v48 = vmul.f32 %v742_v38, %v4390_v62  ;;  %v892_v53 = vsub.f32 %v4394_v0, %v890_v29  ;;  %v893_v63 = vsub.f32 %v4395_v45, %v891_v47  ;;  %v3796_v38 = vpop.eup %2612  ;;  %v3806_v45 = vpop.permute.xlu1 %1793 }
 0x338   : > { %v745_v23 = vmul.f32 %v743_v27, %v4391_v37  ;;  %v1040_v62 = vpop.permute.xlu0 %1039  ;;  %4396 = vst [vmem:[#allocation49_spill] sm:$0xff] %v3796_v38  ;;  %v3802_v0 = vpop.eup %2614 }
 0x339   : > { %v758_v27 = vsub.f32 %v3507_v15, %v744_v48  ;;  %v1042_v58 = vmax.f32 %v3168_v7, %v1040_v62  ;;  %v1043_v29 = vmax.f32 %v3170_v12, %v1040_v62  ;;  %4397 = vst [vmem:[#allocation50_spill] sm:$0xff] %v3802_v0  ;;  %v894_v41 = vmax.f32 %v892_v53, 0.0  ;;  %v3808_v57 = vpop.eup %2616 }
 0x33a   : > { %v759_v37 = vsub.f32 %v3511_v16, %v745_v23  ;;  %v895_v5 = vmax.f32 %v893_v63, 0.0  ;;  %4398 = vst [vmem:[#allocation51_spill] sm:$0xff] %v3808_v57  ;;  %v4399_v16 = vmin.f32 %v3172_v11, %v4367_v34  ;;  %v4400_v62 = vmin.f32 %v3174_v8, %v4367_v34 }
 0x33b   : > { %v760_v42 = vmul.f32 0.5, %v758_v27  ;;  %v4401_v53 = vmax.f32 %v3543_v31, 0.0  ;;  %v4402_v27 = vmax.f32 %v3545_v24, 0.0  ;;  %v4403_v31 = vmax.f32 %v3569_v9, 0.0 }
 0x33c   : > { %v761_v15 = vmul.f32 0.5, %v759_v37  ;;  %v1044_v17 = vsub.f32 %v4399_v16, %v1042_v58  ;;  %v1045_v50 = vsub.f32 %v4400_v62, %v1043_v29  ;;  %v1192_v51 = vpop.permute.xlu0 %1191  ;;  %v4404_v24 = vmax.f32 %v3571_v55, 0.0 }
 0x33d   : > { %v896_v63 = vmul.f32 %v894_v41, %v4401_v53  ;;  %v897_v37 = vmul.f32 %v895_v5, %v4402_v27  ;;  %v762_v54 = vsub.f32 %v744_v48, %v760_v42  ;;  %v1194_v62 = vmax.f32 %v3168_v7, %v1192_v51  ;;  %v4408_v27 = vld [vmem:[#allocation18_spill] sm:$0xff] }
 0x33e   : > { %v763_v28 = vsub.f32 %v745_v23, %v761_v15  ;;  %v1046_v58 = vmax.f32 %v1044_v17, 0.0  ;;  %v1047_v16 = vmax.f32 %v1045_v50, 0.0  ;;  %v1195_v20 = vmax.f32 %v3170_v12, %v1192_v51  ;;  %v3832_v17 = vpop.permute.xlu1 %1665 }
 0x33f   : > { %v910_v34 = vsub.f32 %v3515_v32, %v896_v63  ;;  %v911_v29 = vsub.f32 %v3527_v46, %v897_v37  ;;  %v764_v47 = vrot.slane %v762_v54, 4  ;;  %v4405_v32 = vld [vmem:[#allocation36_spill] sm:$0xff] }
 0x340   : > { %v770_v57 = vrot.slane %v763_v28, 4  ;;  %v1048_v41 = vmul.f32 %v1046_v58, %v4403_v31  ;;  %v1049_v5 = vmul.f32 %v1047_v16, %v4404_v24  ;;  %v4406_v50 = vmin.f32 %v3172_v11, %v4405_v32  ;;  %v4409_v58 = vld [vmem:[#allocation19_spill] sm:$0xff] }
 0x341   : > { %v912_v48 = vmul.f32 0.5, %v910_v34  ;;  %v913_v42 = vmul.f32 0.5, %v911_v29  ;;  %v4407_v23 = vmin.f32 %v3174_v8, %v4405_v32  ;;  %v765_v15 = vmax.f32 %v762_v54, %v764_v47 }
 0x342   : > { %v1196_v46 = vsub.f32 %v4406_v50, %v1194_v62  ;;  %v771_v53 = vmax.f32 %v763_v28, %v770_v57  ;;  %v1062_v9 = vsub.f32 %v4408_v27, %v1048_v41  ;;  %v1063_v31 = vsub.f32 %v4409_v58, %v1049_v5  ;;  %v4410_v50 = vld [vmem:[#allocation34_spill] sm:$0xff] }
 0x343   : > { %v1197_v51 = vsub.f32 %v4407_v23, %v1195_v20  ;;  %v914_v55 = vsub.f32 %v896_v63, %v912_v48  ;;  %v915_v16 = vsub.f32 %v897_v37, %v913_v42  ;;  %v766_v24 = vrot.slane %v765_v15, 2  ;;  %v4412_v20 = vld [vmem:[#allocation35_spill] sm:$0xff]  ;;  %v4414_v48 = vld [vmem:[#allocation32_spill] sm:$0xff] }
 0x344   : > { %v1198_v34 = vmax.f32 %v1196_v46, 0.0  ;;  %v772_v0 = vrot.slane %v771_v53, 2  ;;  %v1064_v38 = vmul.f32 0.5, %v1062_v9  ;;  %v1065_v4 = vmul.f32 0.5, %v1063_v31  ;;  %v4415_v46 = vld [vmem:[#allocation17_spill] sm:$0xff]  ;;  %v3848_v9 = vpop.permute.xlu1 %1852 }
 0x345   : > { %v1199_v29 = vmax.f32 %v1197_v51, 0.0  ;;  %v916_v25 = vrot.slane %v914_v55, 4  ;;  %v922_v62 = vrot.slane %v915_v16, 4  ;;  %v4411_v60 = vmax.f32 %v4410_v50, 0.0 }
 0x346   : > { %v4413_v54 = vmax.f32 %v4412_v20, 0.0  ;;  %v767_v57 = vmax.f32 %v765_v15, %v766_v24  ;;  %v773_v47 = vmax.f32 %v771_v53, %v772_v0  ;;  %v1066_v23 = vsub.f32 %v1048_v41, %v1064_v38  ;;  %v1344_v15 = vpop.permute.xlu0 %1343 }
 0x347   : > { %v1200_v32 = vmul.f32 %v1198_v34, %v4411_v60  ;;  %v1067_v27 = vsub.f32 %v1049_v5, %v1065_v4  ;;  %v917_v63 = vmax.f32 %v914_v55, %v916_v25  ;;  %v923_v37 = vmax.f32 %v915_v16, %v922_v62  ;;  %v4416_v16 = vld [vmem:[#allocation11_spill] sm:$0xff]  ;;  %v4417_v62 = vld [vmem:[#allocation12_spill] sm:$0xff] }
 0x348   : > { %v1201_v28 = vmul.f32 %v1199_v29, %v4413_v54  ;;  %v768_v58 = vrot.slane %v767_v57, 1  ;;  %v774_v31 = vrot.slane %v773_v47, 1  ;;  %v1068_v36 = vrot.slane %v1066_v23, 4 }
 0x349   : > { %v1214_v42 = vsub.f32 %v4414_v48, %v1200_v32  ;;  %v1074_v50 = vrot.slane %v1067_v27, 4  ;;  %v918_v60 = vrot.slane %v917_v63, 2  ;;  %v924_v34 = vrot.slane %v923_v37, 2 }
 0x34a   : > { %v1215_v51 = vsub.f32 %v4415_v46, %v1201_v28  ;;  %v769_v0 = vmax.f32 %v767_v57, %v768_v58  ;;  %v775_v38 = vmax.f32 %v773_v47, %v774_v31  ;;  %v1069_v4 = vmax.f32 %v1066_v23, %v1068_v36 }
 0x34b   : > { %v1216_v20 = vmul.f32 0.5, %v1214_v42  ;;  %v1075_v25 = vmax.f32 %v1067_v27, %v1074_v50  ;;  %v919_v41 = vmax.f32 %v917_v63, %v918_v60  ;;  %v925_v5 = vmax.f32 %v923_v37, %v924_v34  ;;  %v1566_v37 = vpop.permute.xlu0 %1565 }
 0x34c   : > { %v1217_v29 = vmul.f32 0.5, %v1215_v51  ;;  %v1232_v24 = vmax.f32 %v4416_v16, %v769_v0  ;;  %v1233_v54 = vmax.f32 %v4417_v62, %v775_v38  ;;  %v1070_v48 = vrot.slane %v1069_v4, 2  ;;  %v3852_v51 = vpop.permute.xlu1 %1869 }
 0x34d   : > { %v1218_v53 = vsub.f32 %v1200_v32, %v1216_v20  ;;  %v1076_v46 = vrot.slane %v1075_v25, 2  ;;  %v920_v52 = vrot.slane %v919_v41, 1  ;;  %v926_v3 = vrot.slane %v925_v5, 1 }
 0x34e   : > { %v1219_v55 = vsub.f32 %v1201_v28, %v1217_v29  ;;  %v1726_v36 = vmax.f32 %v3168_v7, %v3712_v19  ;;  %v1727_v57 = vmax.f32 %v3170_v12, %v3712_v19  ;;  %v1071_v32 = vmax.f32 %v1069_v4, %v1070_v48 }
 0x34f   : > { %v1220_v13 = vrot.slane %v1218_v53, 4  ;;  %v1077_v28 = vmax.f32 %v1075_v25, %v1076_v46  ;;  %v921_v47 = vmax.f32 %v919_v41, %v920_v52  ;;  %v927_v23 = vmax.f32 %v925_v5, %v926_v3 }
 0x350   : > { %v1226_v42 = vrot.slane %v1219_v55, 4  ;;  %v4418_v58 = vmax.f32 %v3185_v21, %v3753_v10  ;;  %v4419_v31 = vmin.f32 %v3195_v49, %v3674_v14  ;;  %v4420_v60 = vmax.f32 %v3188_v6, %v3753_v10  ;;  %v3880_v16 = vpop.permute.xlu1 %1875 }
 0x351   : > { %v1221_v27 = vmax.f32 %v1218_v53, %v1220_v13  ;;  %v4421_v34 = vmin.f32 %v3198_v35, %v3674_v14  ;;  %v1072_v3 = vrot.slane %v1071_v32, 1  ;;  %v1078_v13 = vrot.slane %v1077_v28, 1 }
 0x352   : > { %v1227_v63 = vmax.f32 %v1219_v55, %v1226_v42  ;;  %v3864_v50 = vsub.f32 %v4419_v31, %v4418_v58  ;;  %v1308_v52 = vmax.f32 %v1232_v24, %v921_v47  ;;  %v1309_v29 = vmax.f32 %v1233_v54, %v927_v23  ;;  %v4422_v47 = vld [vmem:[#allocation37_spill] sm:$0xff]  ;;  %v4444_v58 = vld [vmem:[#allocation38_spill] sm:$0xff] }
 0x353   : > { %v3872_v20 = vsub.f32 %v4421_v34, %v4420_v60  ;;  %v1222_v0 = vrot.slane %v1221_v27, 2  ;;  %v1073_v41 = vmax.f32 %v1071_v32, %v1072_v3  ;;  %v1079_v5 = vmax.f32 %v1077_v28, %v1078_v13 }
 0x354   : > { %v1228_v38 = vrot.slane %v1227_v63, 2  ;;  %v1346_v14 = vmax.f32 %v3168_v7, %v1344_v15  ;;  %v1347_v55 = vmax.f32 %v3170_v12, %v1344_v15  ;;  %v4423_v32 = vmin.f32 %v3172_v11, %v4422_v47 }
 0x355   : > { %v1223_v10 = vmax.f32 %v1221_v27, %v1222_v0  ;;  %v1384_v54 = vmax.f32 %v1308_v52, %v1073_v41  ;;  %v1385_v48 = vmax.f32 %v1309_v29, %v1079_v5  ;;  %v4424_v23 = vmin.f32 %v3174_v8, %v4422_v47 }
 0x356   : > { %v1229_v53 = vmax.f32 %v1227_v63, %v1228_v38  ;;  %v1348_v28 = vsub.f32 %v4423_v32, %v1346_v14  ;;  %v1648_v63 = vpop.permute.xlu0 %1647  ;;  %v1568_v31 = vmin.f32 %v3172_v11, %v1566_v37  ;;  %v1569_v60 = vmin.f32 %v3174_v8, %v1566_v37  ;;  %v4425_v38 = vld [vmem:[#allocation20_spill] sm:$0xff] }
 0x357   : > { %v1224_v46 = vrot.slane %v1223_v10, 1  ;;  %v1349_v27 = vsub.f32 %v4424_v23, %v1347_v55  ;;  %v1855_v29 = vmin.f32 %v3195_v49, %v3848_v9  ;;  %v1856_v0 = vmin.f32 %v3198_v35, %v3848_v9  ;;  %v3914_v23 = vpop.permute.xlu1 %1928  ;;  %v4432_v9 = vld [vmem:[#allocation28_spill] sm:$0xff] }
 0x358   : > { %v1230_v42 = vrot.slane %v1229_v53, 1  ;;  %v1350_v13 = vmax.f32 %v1348_v28, 0.0  ;;  %v4426_v41 = vmax.f32 %v3168_v7, %v4425_v38  ;;  %v4427_v14 = vmax.f32 %v3170_v12, %v4425_v38 }
 0x359   : > { %v1225_v34 = vmax.f32 %v1223_v10, %v1224_v46  ;;  %v1351_v52 = vmax.f32 %v1349_v27, 0.0  ;;  %v4428_v10 = vld [vmem:[#allocation16_spill] sm:$0xff]  ;;  %v1668_v27 = vadd.f32 %v3832_v17, %v4432_v9  ;;  %v4448_v19 = vmax.f32 %v3766_v61, 0.0 }
 0x35a   : > { %v1231_v3 = vmax.f32 %v1229_v53, %v1230_v42  ;;  %v1576_v5 = vsub.f32 %v1568_v31, %v4426_v41  ;;  %v1577_v55 = vsub.f32 %v1569_v60, %v4427_v14  ;;  %v4429_v53 = vmax.f32 %v4428_v10, 0.0  ;;  %v4430_v42 = vld [vmem:[#allocation25_spill] sm:$0xff]  ;;  %v1718_v10 = vpop.permute.xlu0 %1717 }
 0x35b   : > { %v3906_v47 = vmax.f32 %v1384_v54, %v1225_v34  ;;  %v4431_v32 = vmax.f32 %v4430_v42, 0.0  ;;  %v4433_v31 = vld [vmem:[#allocation29_spill] sm:$0xff]  ;;  %v4434_v54 = vld [vmem:[#allocation26_spill] sm:$0xff]  ;;  %v1650_v14 = vmax.f32 %v3168_v7, %v1648_v63  ;;  %v4437_v42 = vmax.f32 %v3188_v6, %v3700_v44 }
 0x35c   : > { %v3908_v37 = vmax.f32 %v1385_v48, %v1231_v3  ;;  %v1352_v46 = vmul.f32 %v1350_v13, %v4429_v53  ;;  %v1669_v41 = vadd.f32 %v3832_v17, %v4433_v31  ;;  %v1578_v38 = vmax.f32 %v1576_v5, 0.0  ;;  %v4435_v48 = vld [vmem:[#allocation27_spill] sm:$0xff]  ;;  %v4438_v5 = vld [vmem:[#allocation9_spill] sm:$0xff] }
 0x35d   : > { %v1353_v28 = vmul.f32 %v1351_v52, %v4431_v32  ;;  %v1579_v60 = vmax.f32 %v1577_v55, 0.0  ;;  %v1651_v13 = vmax.f32 %v3170_v12, %v1648_v63  ;;  %v4436_v52 = vmax.f32 %v3185_v21, %v3700_v44 }
 0x35e   : > { %v1366_v34 = vsub.f32 %v4434_v54, %v1352_v46  ;;  %v3932_v17 = vsub.f32 %v1856_v0, %v4437_v42  ;;  %v4439_v55 = vmax.f32 %v4438_v5, 0.0  ;;  %v4440_v54 = vld [vmem:[#allocation10_spill] sm:$0xff]  ;;  %v4442_v63 = vmin.f32 %v3172_v11, %v3652_v59  ;;  %v4445_v0 = vld [vmem:[#allocation39_spill] sm:$0xff] }
 0x35f   : > { %v1367_v3 = vsub.f32 %v4435_v48, %v1353_v28  ;;  %v3927_v53 = vsub.f32 %v1855_v29, %v4436_v52  ;;  %v4441_v48 = vmax.f32 %v4440_v54, 0.0  ;;  %v4443_v29 = vmin.f32 %v3174_v8, %v3652_v59  ;;  %v3948_v54 = vpop.permute.xlu1 %1935 }
 0x360   : > { %v1580_v32 = vmul.f32 %v1578_v38, %v4439_v55  ;;  %v1368_v4 = vmul.f32 0.5, %v1366_v34  ;;  %v1652_v24 = vsub.f32 %v4442_v63, %v1650_v14  ;;  %v1720_v5 = vmin.f32 %v3172_v11, %v1718_v10 }
 0x361   : > { %v1581_v25 = vmul.f32 %v1579_v60, %v4441_v48  ;;  %v1369_v62 = vmul.f32 0.5, %v1367_v3  ;;  %v1653_v52 = vsub.f32 %v4443_v29, %v1651_v13  ;;  %v1721_v38 = vmin.f32 %v3174_v8, %v1718_v10 }
 0x362   : > { %v1594_v44 = vsub.f32 %v4444_v58, %v1580_v32  ;;  %v1370_v55 = vsub.f32 %v1352_v46, %v1368_v4  ;;  %v1654_v34 = vmax.f32 %v1652_v24, 0.0  ;;  %v1728_v59 = vsub.f32 %v1720_v5, %v1726_v36 }
 0x363   : > { %v1595_v42 = vsub.f32 %v4445_v0, %v1581_v25  ;;  %v1371_v60 = vsub.f32 %v1353_v28, %v1369_v62  ;;  %v1655_v3 = vmax.f32 %v1653_v52, 0.0  ;;  %v1729_v58 = vsub.f32 %v1721_v38, %v1727_v57 }
 0x364   : > { %v1596_v48 = vmul.f32 0.5, %v1594_v44  ;;  %v1372_v13 = vrot.slane %v1370_v55, 4  ;;  %v4446_v10 = vmax.f32 %v3705_v18, 0.0  ;;  %v4447_v24 = vmax.f32 %v3707_v43, 0.0 }
 0x365   : > { %v1597_v14 = vmul.f32 0.5, %v1595_v42  ;;  %v1378_v63 = vrot.slane %v1371_v60, 4  ;;  %v1730_v29 = vmax.f32 %v1728_v59, 0.0  ;;  %v1731_v52 = vmax.f32 %v1729_v58, 0.0 }
 0x366   : > { %v1656_v4 = vmul.f32 %v1654_v34, %v4446_v10  ;;  %v1657_v62 = vmul.f32 %v1655_v3, %v4447_v24  ;;  %v1598_v46 = vsub.f32 %v1580_v32, %v1596_v48  ;;  %v1373_v44 = vmax.f32 %v1370_v55, %v1372_v13  ;;  %v3964_v32 = vpop.permute.xlu1 %1951  ;;  %v4450_v55 = vld [vmem:[#allocation30_spill] sm:$0xff] }
 0x367   : > { %v1599_v28 = vsub.f32 %v1581_v25, %v1597_v14  ;;  %v1379_v0 = vmax.f32 %v1371_v60, %v1378_v63  ;;  %v1732_v57 = vmul.f32 %v1730_v29, %v4448_v19  ;;  %v4449_v38 = vmax.f32 %v3768_v22, 0.0  ;;  %v1800_v19 = vpop.permute.xlu0 %1799 }
 0x368   : > { %v1670_v42 = vsub.f32 %v1668_v27, %v1656_v4  ;;  %v1671_v36 = vsub.f32 %v1669_v41, %v1657_v62  ;;  %v1600_v5 = vrot.slane %v1598_v46, 4  ;;  %v1374_v34 = vrot.slane %v1373_v44, 2  ;;  %v4451_v27 = vld [vmem:[#allocation31_spill] sm:$0xff] }
 0x369   : > { %v1606_v15 = vrot.slane %v1599_v28, 4  ;;  %v1733_v18 = vmul.f32 %v1731_v52, %v4449_v38  ;;  %v1380_v10 = vrot.slane %v1379_v0, 2  ;;  %v1746_v60 = vsub.f32 %v4450_v55, %v1732_v57 }
 0x36a   : > { %v1672_v43 = vmul.f32 0.5, %v1670_v42  ;;  %v1673_v3 = vmul.f32 0.5, %v1671_v36  ;;  %v1601_v25 = vmax.f32 %v1598_v46, %v1600_v5  ;;  %v1375_v14 = vmax.f32 %v1373_v44, %v1374_v34 }
 0x36b   : > { %v1607_v48 = vmax.f32 %v1599_v28, %v1606_v15  ;;  %v1747_v41 = vsub.f32 %v4451_v27, %v1733_v18  ;;  %v1381_v59 = vmax.f32 %v1379_v0, %v1380_v10  ;;  %v1748_v22 = vmul.f32 0.5, %v1746_v60  ;;  %v1818_v0 = vpop.permute.xlu1 %1817 }
 0x36c   : > { %v1674_v58 = vsub.f32 %v1656_v4, %v1672_v43  ;;  %v1675_v61 = vsub.f32 %v1657_v62, %v1673_v3  ;;  %v1602_v13 = vrot.slane %v1601_v25, 2  ;;  %v1376_v29 = vrot.slane %v1375_v14, 1 }
 0x36d   : > { %v1608_v63 = vrot.slane %v1607_v48, 2  ;;  %v1749_v24 = vmul.f32 0.5, %v1747_v41  ;;  %v1382_v52 = vrot.slane %v1381_v59, 1  ;;  %v1750_v15 = vsub.f32 %v1732_v57, %v1748_v22 }
 0x36e   : > { %v1676_v42 = vrot.slane %v1674_v58, 4  ;;  %v1682_v36 = vrot.slane %v1675_v61, 4  ;;  %v1603_v38 = vmax.f32 %v1601_v25, %v1602_v13  ;;  %v1377_v5 = vmax.f32 %v1375_v14, %v1376_v29 }
 0x36f   : > { %v1609_v46 = vmax.f32 %v1607_v48, %v1608_v63  ;;  %v1751_v28 = vsub.f32 %v1733_v18, %v1749_v24  ;;  %v1383_v55 = vmax.f32 %v1381_v59, %v1382_v52  ;;  %v1752_v34 = vrot.slane %v1750_v15, 4 }
 0x370   : > { %v1677_v27 = vmax.f32 %v1674_v58, %v1676_v42  ;;  %v1683_v44 = vmax.f32 %v1675_v61, %v1682_v36  ;;  %v1604_v4 = vrot.slane %v1603_v38, 1  ;;  %v1536_v43 = vmax.f32 %v3906_v47, %v1377_v5  ;;  %v3974_v61 = vpop.permute.xlu0 %1945  ;;  %v2012_v42 = vpop.permute.xlu1 %2011 }
 0x371   : > { %v1610_v62 = vrot.slane %v1609_v46, 1  ;;  %v1758_v10 = vrot.slane %v1751_v28, 4  ;;  %v1537_v3 = vmax.f32 %v3908_v37, %v1383_v55  ;;  %v1753_v48 = vmax.f32 %v1750_v15, %v1752_v34 }
 0x372   : > { %v1678_v60 = vrot.slane %v1677_v27, 2  ;;  %v1684_v41 = vrot.slane %v1683_v44, 2  ;;  %v1605_v39 = vmax.f32 %v1603_v38, %v1604_v4  ;;  %v1878_v18 = vmax.f32 %v3168_v7, %v3880_v16 }
 0x373   : > { %v1611_v25 = vmax.f32 %v1609_v46, %v1610_v62  ;;  %v1759_v57 = vmax.f32 %v1751_v28, %v1758_v10  ;;  %v1879_v14 = vmax.f32 %v3170_v12, %v3880_v16  ;;  %v1754_v63 = vrot.slane %v1753_v48, 2 }
 0x374   : > { %v1679_v59 = vmax.f32 %v1677_v27, %v1678_v60  ;;  %v1685_v58 = vmax.f32 %v1683_v44, %v1684_v41  ;;  %v1612_v13 = vmax.f32 %v1536_v43, %v1605_v39  ;;  %v1872_v22 = vmin.f32 %v3172_v11, %v3852_v51 }
 0x375   : > { %v1613_v47 = vmax.f32 %v1537_v3, %v1611_v25  ;;  %v1760_v37 = vrot.slane %v1759_v57, 2  ;;  %v1873_v24 = vmin.f32 %v3174_v8, %v3852_v51  ;;  %v1755_v36 = vmax.f32 %v1753_v48, %v1754_v63  ;;  %v2028_v3 = vpop.permute.xlu0 %2027 }
 0x376   : > { %v1680_v29 = vrot.slane %v1679_v59, 1  ;;  %v1686_v52 = vrot.slane %v1685_v58, 1  ;;  %v1802_v16 = vmax.f32 %v3168_v7, %v1800_v19  ;;  %v1803_v46 = vmax.f32 %v3170_v12, %v1800_v19 }
 0x377   : > { %v1761_v38 = vmax.f32 %v1759_v57, %v1760_v37  ;;  %v1880_v15 = vsub.f32 %v1872_v22, %v1878_v18  ;;  %v1881_v39 = vsub.f32 %v1873_v24, %v1879_v14  ;;  %v1756_v55 = vrot.slane %v1755_v36, 1 }
 0x378   : > { %v1681_v28 = vmax.f32 %v1679_v59, %v1680_v29  ;;  %v1687_v5 = vmax.f32 %v1685_v58, %v1686_v52  ;;  %v4452_v44 = vmin.f32 %v3172_v11, %v3806_v45  ;;  %v4453_v51 = vmin.f32 %v3174_v8, %v3806_v45  ;;  %v2022_v59 = vpop.permute.xlu1 %2021 }
 0x379   : > { %v1762_v27 = vrot.slane %v1761_v38, 1  ;;  %v1866_v34 = vmax.f32 %v3927_v53, 0.0  ;;  %v1867_v10 = vmax.f32 %v3932_v17, 0.0  ;;  %v1757_v60 = vmax.f32 %v1755_v36, %v1756_v55  ;;  %v2046_v55 = vpop.permute.xlu0 %2045 }
 0x37a   : > { %v1804_v4 = vsub.f32 %v4452_v44, %v1802_v16  ;;  %v1805_v62 = vsub.f32 %v4453_v51, %v1803_v46  ;;  %v1688_v43 = vmax.f32 %v1612_v13, %v1681_v28  ;;  %v1689_v19 = vmax.f32 %v1613_v47, %v1687_v5 }
 0x37b   : > { %v1763_v41 = vmax.f32 %v1761_v38, %v1762_v27  ;;  %v1882_v57 = vmax.f32 %v1880_v15, 0.0  ;;  %v1883_v18 = vmax.f32 %v1881_v39, 0.0  ;;  %v1931_v14 = vmin.f32 %v3195_v49, %v3914_v23 }
 0x37c   : > { %v1806_v25 = vmax.f32 %v1804_v4, 0.0  ;;  %v1807_v48 = vmax.f32 %v1805_v62, 0.0  ;;  %v1938_v45 = vmax.f32 %v3185_v21, %v3948_v54  ;;  %v3994_v58 = vmax.f32 %v1688_v43, %v1757_v60  ;;  %v1894_v44 = vpop.permute.xlu1 %1893 }
 0x37d   : > { %v3996_v53 = vmax.f32 %v1689_v19, %v1763_v41  ;;  %v2030_v17 = vmax.f32 %v3168_v7, %v2028_v3  ;;  %v2031_v13 = vmax.f32 %v3170_v12, %v2028_v3  ;;  %v4454_v47 = vmax.f32 %v3864_v50, 0.0 }
 0x37e   : > { %v4455_v37 = vmax.f32 %v3872_v20, 0.0  ;;  %v1820_v24 = vadd.f32 %v1818_v0, %v4432_v9  ;;  %v1821_v29 = vadd.f32 %v1818_v0, %v4433_v31  ;;  %v2014_v52 = vmax.f32 %v3185_v21, %v2012_v42 }
 0x37f   : > { %v1808_v63 = vmul.f32 %v1806_v25, %v4454_v47  ;;  %v2015_v36 = vmax.f32 %v3188_v6, %v2012_v42  ;;  %v2024_v38 = vmin.f32 %v3172_v11, %v2022_v59  ;;  %v2025_v16 = vmin.f32 %v3174_v8, %v2022_v59 }
 0x380   : > { %v1809_v22 = vmul.f32 %v1807_v48, %v4455_v37  ;;  %v1948_v46 = vmin.f32 %v3172_v11, %v3974_v61  ;;  %v1949_v50 = vmin.f32 %v3174_v8, %v3974_v61  ;;  %v4456_v39 = vmin.f32 %v3195_v49, %v3709_v26 }
 0x381   : > { %v1822_v20 = vsub.f32 %v1820_v24, %v1808_v63  ;;  %v4457_v21 = vmin.f32 %v3198_v35, %v3709_v26  ;;  %v2032_v28 = vsub.f32 %v2024_v38, %v2030_v17  ;;  %v2033_v5 = vsub.f32 %v2025_v16, %v2031_v13 }
 0x382   : > { %v1823_v15 = vsub.f32 %v1821_v29, %v1809_v22  ;;  %v2016_v0 = vsub.f32 %v4456_v39, %v2014_v52  ;;  %v1954_v27 = vmax.f32 %v3168_v7, %v3964_v32  ;;  %v1955_v11 = vmax.f32 %v3170_v12, %v3964_v32  ;;  %v4462_v39 = vld [vmem:[#allocation14_spill] sm:$0xff] }
 0x383   : > { %v2017_v42 = vsub.f32 %v4457_v21, %v2015_v36  ;;  %v1824_v8 = vmul.f32 0.5, %v1822_v20  ;;  %v2034_v49 = vmax.f32 %v2032_v28, 0.0  ;;  %v2035_v62 = vmax.f32 %v2033_v5, 0.0  ;;  %v1970_v5 = vpop.permute.xlu1 %1969 }
 0x384   : > { %v1825_v61 = vmul.f32 0.5, %v1823_v15  ;;  %v2018_v4 = vmax.f32 %v2016_v0, 0.0  ;;  %v2048_v43 = vadd.f32 %v2046_v55, %v4432_v9  ;;  %v2049_v26 = vadd.f32 %v2046_v55, %v4433_v31  ;;  %v4460_v15 = vld [vmem:[#allocation47_spill] sm:$0xff] }
 0x385   : > { %v2019_v51 = vmax.f32 %v2017_v42, 0.0  ;;  %v1884_v19 = vmul.f32 %v1882_v57, %v1866_v34  ;;  %v1885_v3 = vmul.f32 %v1883_v18, %v1867_v10  ;;  %v1896_v7 = vadd.f32 %v1894_v44, %v4432_v9  ;;  %v4464_v55 = vld [vmem:[#allocation43_spill] sm:$0xff] }
 0x386   : > { %v2036_v60 = vmul.f32 %v2034_v49, %v2018_v4  ;;  %v1897_v25 = vadd.f32 %v1894_v44, %v4433_v31  ;;  %v1939_v12 = vmax.f32 %v3188_v6, %v3948_v54  ;;  %v1956_v32 = vsub.f32 %v1948_v46, %v1954_v27 }
 0x387   : > { %v2037_v41 = vmul.f32 %v2035_v62, %v2019_v51  ;;  %v1826_v48 = vsub.f32 %v1808_v63, %v1824_v8  ;;  %v1827_v59 = vsub.f32 %v1809_v22, %v1825_v61  ;;  %v1898_v47 = vsub.f32 %v1896_v7, %v1884_v19 }
 0x388   : > { %v2050_v17 = vsub.f32 %v2048_v43, %v2036_v60  ;;  %v1899_v37 = vsub.f32 %v1897_v25, %v1885_v3  ;;  %v1932_v34 = vmin.f32 %v3198_v35, %v3914_v23  ;;  %v1957_v10 = vsub.f32 %v1949_v50, %v1955_v11 }
 0x389   : > { %v2051_v13 = vsub.f32 %v2049_v26, %v2037_v41  ;;  %v2090_v57 = vmul.f32 %v3590_v40, %v3576_v1  ;;  %v2094_v18 = vadd.f32 1.0, %v3727_v33  ;;  %v1940_v24 = vsub.f32 %v1931_v14, %v1938_v45  ;;  %v4461_v45 = vld [vmem:[#allocation15_spill] sm:$0xff] }
 0x38a   : > { %v2052_v29 = vmul.f32 0.5, %v2050_v17  ;;  %v4458_v6 = vmax.f32 %v3725_v30, 0.0  ;;  %v1941_v63 = vsub.f32 %v1932_v34, %v1939_v12  ;;  %v1958_v22 = vmax.f32 %v1956_v32, 0.0  ;;  %v409_v34 = vld [vmem:[%s2867_s17 + $0x10] sm:$0xff] }
 0x38b   : > { %v2053_v52 = vmul.f32 0.5, %v2051_v13  ;;  %v1828_v36 = vrot.slane %v1826_v48, 4  ;;  %v1900_v38 = vmul.f32 0.5, %v1898_v47  ;;  %v1834_v16 = vrot.slane %v1827_v59, 4 }
 0x38c   : > { %v4038_v54 = vmul.f32 %v3793_v56, %v4458_v6  ;;  %v2054_v35 = vsub.f32 %v2036_v60, %v2052_v29  ;;  %v1901_v46 = vmul.f32 0.5, %v1899_v37  ;;  %v1959_v50 = vmax.f32 %v1957_v10, 0.0  ;;  %v4465_v60 = vld [vmem:[#allocation44_spill] sm:$0xff]  ;;  %v4077_v6 = vld [vmem:[%s2867_s17 + $0x20] sm:$0xff] }
 0x38d   : > { %v2055_v23 = vsub.f32 %v2037_v41, %v2053_v52  ;;  %v4459_v20 = vmax.f32 %v3719_v2, 0.0  ;;  %v2091_v30 = vmul.f32 %v4462_v39, %v4461_v45  ;;  %v4463_v56 = vmax.f32 %v3576_v1, 0.0  ;;  %v410_v52 = vld [vmem:[%s2867_s17 + $0x18] sm:$0xff] }
 0x38e   : > { %v1942_v21 = vmax.f32 %v1940_v24, 0.0  ;;  %v2056_v42 = vrot.slane %v2054_v35, 4  ;;  %v2095_v27 = vadd.f32 1.0, %v4464_v55  ;;  %v1943_v11 = vmax.f32 %v1941_v63, 0.0  ;;  %v4080_v63 = vld [vmem:[%s2867_s17 + $0x28] sm:$0xff] }
 0x38f   : > { %v4043_v14 = vmul.f32 %v4460_v15, %v4459_v20  ;;  %v4049_v0 = vsub.f32 %v4463_v56, %v2090_v57  ;;  %v2062_v28 = vrot.slane %v2055_v23, 4  ;;  %v1829_v8 = vmax.f32 %v1826_v48, %v1828_v36  ;;  %v4072_v57 = vld [vmem:[%s2865_s21 + $0x18] sm:$0xff]  ;;  %v4091_v15 = vld [vmem:[%s2867_s17 + $0x30] sm:$0x3] }
 0x390   : > { %v1902_v61 = vsub.f32 %v1884_v19, %v1900_v38  ;;  %2618 = vlog2.f32 %v2094_v18  ;;  %v1835_v2 = vmax.f32 %v1827_v59, %v1834_v16  ;;  %v1903_v44 = vsub.f32 %v1885_v3, %v1901_v46  ;;  %v4087_v46 = vld [vmem:[%s2865_s21 + $0x28] sm:$0xff]  ;;  %v4471_v59 = vld [vmem:[#allocation48_spill] sm:$0xff] }
 0x391   : > { %2620 = vrcp.f32 %v4038_v54  ;;  %v1960_v4 = vmul.f32 %v1958_v22, %v1942_v21  ;;  %v2057_v51 = vmax.f32 %v2054_v35, %v2056_v42  ;;  %v1961_v49 = vmul.f32 %v1959_v50, %v1943_v11  ;;  %v4083_v35 = vld [vmem:[%s2865_s21 + $0x20] sm:$0xff] }
 0x392   : > { %v1972_v62 = vadd.f32 %v1970_v5, %v4432_v9  ;;  %v1973_v43 = vadd.f32 %v1970_v5, %v4433_v31  ;;  %v2063_v26 = vmax.f32 %v2055_v23, %v2062_v28  ;;  %v4057_v41 = vsub.f32 %v4465_v60, %v4043_v14  ;;  %v4064_v31 = vld [vmem:[%s2865_s21 + $0x10] sm:$0xff]  ;;  %v4094_v28 = vld [vmem:[%s2867_s17 + $0x38] sm:$0x3]  ;;  %v4470_v23 = vld [vmem:[#allocation46_spill] sm:$0xff] }
 0x393   : > { %v4466_v19 = vmax.f32 %v4461_v45, 0.0  ;;  %2622 = vlog2.f32 %v2095_v27  ;;  %v1830_v3 = vrot.slane %v1829_v8, 2  ;;  %v1904_v25 = vrot.slane %v1902_v61, 4 }
 0x394   : > { %v1974_v12 = vsub.f32 %v1972_v62, %v1960_v4  ;;  %v1975_v32 = vsub.f32 %v1973_v43, %v1961_v49  ;;  %v1836_v9 = vrot.slane %v1835_v2, 2  ;;  %v1910_v48 = vrot.slane %v1903_v44, 4  ;;  %v4101_v62 = vld [vmem:[%s2865_s21 + $0x30] sm:$0x1] }
 0x395   : > { %v4061_v7 = vsub.f32 %v4466_v19, %v2091_v30  ;;  %2624 = vrcp.f32 %v2094_v18  ;;  %v2058_v17 = vrot.slane %v2057_v51, 2  ;;  %v2064_v37 = vrot.slane %v2063_v26, 2 }
 0x396   : > { %v1976_v13 = vmul.f32 0.5, %v1974_v12  ;;  %v1977_v47 = vmul.f32 0.5, %v1975_v32  ;;  %2626 = vrcp.f32 %v2095_v27  ;;  %v1831_v24 = vmax.f32 %v1829_v8, %v1830_v3  ;;  %v4467_v12 = vld [vmem:[#allocation45_spill] sm:$0xff] }
 0x397   : > { %2628 = vrcp.f32 %v4057_v41  ;;  %v1905_v29 = vmax.f32 %v1902_v61, %v1904_v25  ;;  %v1837_v38 = vmax.f32 %v1835_v2, %v1836_v9  ;;  %v1911_v16 = vmax.f32 %v1903_v44, %v1910_v48 }
 0x398   : > { %v1978_v22 = vsub.f32 %v1960_v4, %v1976_v13  ;;  %v1979_v36 = vsub.f32 %v1961_v49, %v1977_v47  ;;  %v2059_v20 = vmax.f32 %v2057_v51, %v2058_v17  ;;  %v2139_v21 = vrot.slane %v409_v34, 1  ;;  %v2652_v17 = vld [vmem:[%s2865_s21] sm:$0xff]  ;;  %v2653_v13 = vld [vmem:[%s2865_s21 + $0x8] sm:$0xff]  ;;  %v4469_v34 = vld [vmem:[#allocation40_spill] sm:$0xff] }
 0x399   : > { %v2065_v42 = vmax.f32 %v2063_v26, %v2064_v37  ;;  %v2141_v5 = vrot.slane %v410_v52, 1  ;;  %v4297_v27 = vrot.slane %v4077_v6, 1  ;;  %v2145_v11 = vrot.slane %v4080_v63, 1  ;;  %v4468_v47 = vld [vmem:[#allocation33_spill] sm:$0xff] }
 0x39a   : > { %v1980_v30 = vrot.slane %v1978_v22, 4  ;;  %v1986_v56 = vrot.slane %v1979_v36, 4  ;;  %v1832_v8 = vrot.slane %v1831_v24, 1  ;;  %v1906_v61 = vrot.slane %v1905_v29, 2 }
 0x39b   : > { %v1838_v51 = vrot.slane %v1837_v38, 1  ;;  %v1912_v49 = vrot.slane %v1911_v16, 2  ;;  %v2060_v19 = vrot.slane %v2059_v20, 1  ;;  %v2199_v32 = vadd.f32 1.0, %v4467_v12 }
 0x39c   : > { %v1981_v2 = vmax.f32 %v1978_v22, %v1980_v30  ;;  %v1987_v44 = vmax.f32 %v1979_v36, %v1986_v56  ;;  %v2066_v9 = vrot.slane %v2065_v42, 1  ;;  %vm2106_vm1 = vcmp.ge.f32.partialorder %v2652_v17, 0.0 }
 0x39d   : > { %v4098_v4 = vpop.eup %2618  ;;  %vm2107_vm2 = vcmp.ge.f32.partialorder %v2653_v13, 0.0  ;;  %v2140_v37 = vsel %vm2138_vm0, %v4468_v47, %v2139_v21  ;;  %v2142_v52 = vsel %vm2138_vm0, %v4469_v34, %v2141_v5  ;;  %v1833_v36 = vmax.f32 %v1831_v24, %v1832_v8  ;;  %v4472_v24 = vld [vmem:[#allocation49_spill] sm:$0xff] }
 0x39e   : > { %v2621_v60 = vpop.eup %2620  ;;  %v1982_v3 = vrot.slane %v1981_v2, 2  ;;  %v1988_v48 = vrot.slane %v1987_v44, 2  ;;  %v1907_v30 = vmax.f32 %v1905_v29, %v1906_v61  ;;  %v2144_v56 = vsel %vm2138_vm0, %v2139_v21, %v4297_v27  ;;  %v4473_v21 = vld [vmem:[#allocation50_spill] sm:$0xff] }
 0x39f   : > { %v2146_v12 = vsel %vm2138_vm0, %v2141_v5, %v2145_v11  ;;  %v1839_v43 = vmax.f32 %v1837_v38, %v1838_v51  ;;  %v1913_v50 = vmax.f32 %v1911_v16, %v1912_v49  ;;  %v2200_v18 = vadd.f32 1.0, %v4470_v23  ;;  %v4474_v5 = vld [vmem:[#allocation51_spill] sm:$0xff] }
 0x3a0   : > { %v2623_v22 = vpop.eup %2622  ;;  %v2201_v25 = vadd.f32 1.0, %v4471_v59  ;;  %v2061_v10 = vmax.f32 %v2059_v20, %v2060_v19  ;;  %v1983_v34 = vmax.f32 %v1981_v2, %v1982_v3  ;;  %v2159_v47 = vmul.f32 %v2652_v17, %v2140_v37  ;;  %v4152_v17 = vld [vmem:[%s2867_s17] sm:$0xff] }
 0x3a1   : > { %v2202_v29 = vadd.f32 1.0, %v4472_v24  ;;  %v2067_v61 = vmax.f32 %v2065_v42, %v2066_v9  ;;  %v1989_v39 = vmax.f32 %v1987_v44, %v1988_v48  ;;  %v2203_v27 = vadd.f32 1.0, %v4473_v21 }
 0x3a2   : > { %v2625_v26 = vpop.eup %2624  ;;  %2630 = vlog2.f32 %v2199_v32  ;;  %v1840_v38 = vmax.f32 %v3994_v58, %v1833_v36  ;;  %v1908_v16 = vrot.slane %v1907_v30, 1  ;;  %v2204_v23 = vadd.f32 1.0, %v4474_v5 }
 0x3a3   : > { %v2627_v8 = vpop.eup %2626  ;;  %2632 = vlog2.f32 %v2200_v18  ;;  %v1841_v59 = vmax.f32 %v3996_v53, %v1839_v43  ;;  %v1914_v20 = vrot.slane %v1913_v50, 1  ;;  %v2108_v2 = vmul.f32 %v2625_v26, %v3727_v33 }
 0x3a4   : > { %v2629_v40 = vpop.eup %2628  ;;  %2634 = vlog2.f32 %v2201_v25  ;;  %v1916_v51 = vmax.f32 %v1840_v38, %v2061_v10  ;;  %v1984_v49 = vrot.slane %v1983_v34, 1  ;;  %v2109_v42 = vmul.f32 %v2627_v8, %v4464_v55 }
 0x3a5   : > { %2636 = vlog2.f32 %v2202_v29  ;;  %v1917_v44 = vmax.f32 %v1841_v59, %v2067_v61  ;;  %v1990_v19 = vrot.slane %v1989_v39, 1  ;;  %v2160_v3 = vmul.f32 %v2653_v13, %v2142_v52  ;;  %v4156_v13 = vld [vmem:[%s2867_s17 + $0x8] sm:$0xff] }
 0x3a6   : > { %2638 = vlog2.f32 %v2203_v27  ;;  %v1909_v58 = vmax.f32 %v1907_v30, %v1908_v16  ;;  %v492_v32 = vmul.f32 %v2629_v40, %v4043_v14  ;;  %v4475_v18 = vsub.f32 %v4038_v54, %v4057_v41 }
 0x3a7   : > { %2640 = vlog2.f32 %v2204_v23  ;;  %v1915_v43 = vmax.f32 %v1913_v50, %v1914_v20  ;;  %v4476_v33 = vrot.slane %v4091_v15, 1  ;;  %v4477_v10 = vrot.slane %v4077_v6, 1 }
 0x3a8   : > { %v504_v53 = vmul.f32 %v2621_v60, %v4475_v18  ;;  %v4478_v25 = vrot.slane %v4094_v28, 1  ;;  %v2161_v40 = vmul.f32 %v4064_v31, %v2144_v56  ;;  %v1992_v54 = vmax.f32 %v1916_v51, %v1909_v58 }
 0x3a9   : > { %v2148_v55 = vsel %vm2138_vm0, %v4477_v10, %v4476_v33  ;;  %v1985_v14 = vmax.f32 %v1983_v34, %v1984_v49  ;;  %v2110_v41 = vsel %vm2106_vm1, %v2625_v26, %v2108_v2  ;;  %v2111_v50 = vsel %vm2107_vm2, %v2627_v8, %v2109_v42 }
 0x3aa   : > { %v2150_v27 = vsel %vm2138_vm0, %v2145_v11, %v4478_v25  ;;  %v1993_v6 = vmax.f32 %v1917_v44, %v1915_v43  ;;  %v1991_v60 = vmax.f32 %v1989_v39, %v1990_v19  ;;  %v2097_v9 = vmul.f32 0.6931472, %v4098_v4  ;;  %v2656_v4 = vld [vmem:[%s2865_s21 + $0x38] sm:$0x1] }
 0x3ab   : > { %v4479_v48 = vmax.f32 %v3576_v1, 0.0  ;;  %v505_v37 = vsub.f32 %v492_v32, %v504_v53  ;;  %v2099_v11 = vmul.f32 0.6931472, %v2623_v22  ;;  %v2162_v52 = vmul.f32 %v4072_v57, %v2146_v12 }
 0x3ac   : > { %v4480_v36 = vmax.f32 %v4461_v45, 0.0  ;;  %v2112_v26 = vsub.f32 %v4152_v17, %v2110_v41  ;;  %v2113_v39 = vsub.f32 %v4156_v13, %v2111_v50  ;;  %v2131_v30 = vmax.f32 %v2656_v4, 0.0 }
 0x3ad   : > { %v2167_v63 = vsub.f32 %v4479_v48, %v2159_v47  ;;  %v2163_v1 = vmul.f32 %v4083_v35, %v2148_v55  ;;  %v2068_v47 = vmax.f32 %v1992_v54, %v1985_v14  ;;  %v2100_v22 = vadd.f32 %v2097_v9, %v4049_v0 }
 0x3ae   : > { %v2168_v34 = vsub.f32 %v4480_v36, %v2160_v3  ;;  %v2164_v56 = vmul.f32 %v4087_v46, %v2150_v27  ;;  %v4481_v45 = vmov %v4476_v33  ;;  %v2069_v24 = vmax.f32 %v1993_v6, %v1991_v60 }
 0x3af   : > { %v2165_v12 = vmul.f32 %v4101_v62, %v4481_v45  ;;  %v2101_v29 = vadd.f32 %v2099_v11, %v4061_v7  ;;  %v4482_v8 = vmax.f32 %v4064_v31, 0.0  ;;  %v2217_v21 = vadd.f32 %v2167_v63, %v2097_v9  ;;  %v2631_v38 = vpop.eup %2630  ;;  %v4492_v45 = vld [vmem:[#allocation22_spill] sm:$0xff] }
 0x3b0   : > { %v4169_v16 = vsub.f32 1.0, %v505_v37  ;;  %v4483_v5 = vmov %v4478_v25  ;;  %v4484_v0 = vmax.f32 %v4072_v57, 0.0  ;;  %v2218_v20 = vadd.f32 %v2168_v34, %v2099_v11  ;;  %v2633_v15 = vpop.eup %2632  ;;  %v4488_v37 = vld [vmem:[#allocation13_spill] sm:$0xff] }
 0x3b1   : > { %v2169_v61 = vsub.f32 %v4482_v8, %v2161_v40  ;;  %v2166_v23 = vmul.f32 %v2656_v4, %v4483_v5  ;;  %v2114_v2 = vand.u32 2147483647, %v2112_v26  ;;  %v2115_v51 = vand.u32 2147483647, %v2113_v39  ;;  %v2635_v42 = vpop.eup %2634  ;;  %v4490_v39 = vld [vmem:[#allocation14_spill] sm:$0xff] }
 0x3b2   : > { %v2170_v59 = vsub.f32 %v4484_v0, %v2162_v52  ;;  %v4485_v7 = vmax.f32 %v4083_v35, 0.0  ;;  %v2206_v31 = vmul.f32 0.6931472, %v2631_v38  ;;  %vm2072_vm5 = vcmp.lt.f32.partialorder %v2068_v47, 0.0  ;;  %v2637_v57 = vpop.eup %2636  ;;  %v4494_v38 = vld [vmem:[#allocation24_spill] sm:$0xff] }
 0x3b3   : > { %v4486_v44 = vmax.f32 %v4087_v46, 0.0  ;;  %v4487_v28 = vmax.f32 %v4101_v62, 0.0  ;;  %v2208_v58 = vmul.f32 0.6931472, %v2633_v15  ;;  %vm2073_vm6 = vcmp.lt.f32.partialorder %v2069_v24, 0.0  ;;  %v2639_v43 = vpop.eup %2638 }
 0x3b4   : > { %v2171_v49 = vsub.f32 %v4485_v7, %v2163_v1  ;;  %v2210_v32 = vmul.f32 0.6931472, %v2635_v42  ;;  %v2219_v18 = vadd.f32 %v2206_v31, %v2169_v61  ;;  %v2234_v53 = vrot.slane %v2217_v21, 5  ;;  %v2641_v25 = vpop.eup %2640  ;;  %v4493_v61 = vld [vmem:[#allocation23_spill] sm:$0xff] }
 0x3b5   : > { %v2172_v19 = vsub.f32 %v4486_v44, %v2164_v56  ;;  %v2173_v3 = vsub.f32 %v4487_v28, %v2165_v12  ;;  %v2174_v33 = vsub.f32 %v2131_v30, %v2166_v23  ;;  %v2212_v10 = vmul.f32 0.6931472, %v2637_v57  ;;  %v4495_v28 = vld [vmem:[#allocation21_spill] sm:$0xff] }
 0x3b6   : > { %v2220_v35 = vadd.f32 %v2208_v58, %v2170_v59  ;;  %v2237_v55 = vrot.slane %v2218_v20, 5  ;;  %v2735_v27 = vmov 0.0   ;;  %v2214_v46 = vmul.f32 0.6931472, %v2639_v43 }
 0x3b7   : > { %v2476_v40 = vsel %vm2072_vm5, 1.0, %v2735_v27  ;;  %v2221_v54 = vadd.f32 %v2210_v32, %v2171_v49  ;;  %v2235_v14 = vrot.slane %v2219_v18, 5  ;;  %v2477_v62 = vsel %vm2073_vm6, 1.0, %v2735_v27 }
 0x3b8   : > { %v2216_v41 = vmul.f32 0.6931472, %v2641_v25  ;;  %v2222_v50 = vadd.f32 %v2212_v10, %v2172_v19  ;;  %v2238_v6 = vrot.slane %v2220_v35, 5  ;;  %v2118_v60 = vmul.f32 %v2114_v2, %v2100_v22 }
 0x3b9   : > { %v2223_v9 = vadd.f32 %v2214_v46, %v2173_v3  ;;  %v2236_v48 = vsel %vm2233_vm3, %v2234_v53, %v2235_v14  ;;  %v2240_v63 = vrot.slane %v2221_v54, 5  ;;  %v4489_v11 = vsub.f32 1.0, %v4488_v37  ;;  %v4496_v53 = vld [vmem:[#allocation33_spill] sm:$0xff] }
 0x3ba   : > { %v2224_v36 = vadd.f32 %v2216_v41, %v2174_v33  ;;  %v2239_v34 = vsel %vm2233_vm3, %v2237_v55, %v2238_v6  ;;  %v2242_v26 = vrot.slane %v2222_v50, 5  ;;  %v4491_v4 = vsub.f32 1.0, %v4490_v39 }
 0x3bb   : > { %v2078_v52 = vmul.f32 %v2476_v40, %v4489_v11  ;;  %v2119_v1 = vmul.f32 %v2115_v51, %v2101_v29  ;;  %v2241_v47 = vsel %vm2233_vm3, %v2235_v14, %v2240_v63  ;;  %v2244_v56 = vrot.slane %v2223_v9, 5  ;;  %v4499_v9 = vld [vmem:[#allocation42_spill] sm:$0xff] }
 0x3bc   : > { %v2079_v30 = vmul.f32 %v2477_v62, %v4491_v4  ;;  %v513_v22 = vmul.f32 %v4156_v13, %v4492_v45  ;;  %v2243_v12 = vsel %vm2233_vm3, %v2238_v6, %v2242_v26  ;;  %v2246_v24 = vrot.slane %v2224_v36, 5  ;;  %v4498_v6 = vld [vmem:[#allocation41_spill] sm:$0xff] }
 0x3bd   : > { %v2254_v8 = vadd.f32 %v2241_v47, %v2236_v48  ;;  %v519_v21 = vrot.slane %v4169_v16, %v4493_v61  ;;  %v523_v5 = vrot.slane %v4169_v16, %v4494_v38  ;;  %v2245_v23 = vsel %vm2233_vm3, %v2240_v63, %v2244_v56 }
 0x3be   : > { %v2264_v0 = vadd.f32 %v2243_v12, %v2239_v34  ;;  %v2116_v29 = vadd.f32 %v4152_v17, %v2078_v52  ;;  %v2120_v59 = vmul.f32 %v2118_v60, %v2114_v2  ;;  %v2247_v20 = vsel %vm2233_vm3, %v2242_v26, %v2246_v24  ;;  %v2275_v52 = vld [vmem:[#allocation2] sm:$0xff]  ;;  %v2276_v34 = vld [vmem:[#allocation2 + $0x8] sm:$0xff] }
 0x3bf   : > { %v2256_v15 = vsel %vm2255_vm4, %v2245_v23, 0.0  ;;  %v2117_v7 = vadd.f32 %v4156_v13, %v2079_v30  ;;  %v2121_v49 = vmul.f32 %v2119_v1, %v2115_v51  ;;  %v2265_v42 = vsel %vm2255_vm4, %v2247_v20, 0.0  ;;  %v4497_v51 = vld [vmem:[#allocation40_spill] sm:$0xff] }
 0x3c0   : > { %v2257_v31 = vadd.f32 %v2256_v15, %v2254_v8  ;;  %v2266_v44 = vadd.f32 %v2265_v42, %v2264_v0  ;;  %v526_v16 = vmul.f32 %v519_v21, %v4495_v28  ;;  %v2122_v3 = vmul.f32 %v2120_v59, %v2116_v29 }
 0x3c1   : > { %v527_v57 = vmul.f32 %v523_v5, %v513_v22  ;;  %v2123_v32 = vmul.f32 %v2121_v49, %v2117_v7 }
 0x3c2   : > { %v2258_v19 = vrot.slane %v2257_v31, 4  ;;  %v2267_v58 = vrot.slane %v2266_v44, 4  ;;  %v528_v43 = vmul.f32 %v526_v16, %v4496_v53  ;;  %v2124_v33 = vmul.f32 %v2122_v3, %v4496_v53 }
 0x3c3   : > { %v529_v10 = vmul.f32 %v527_v57, %v4497_v51  ;;  %v2125_v35 = vmul.f32 %v2123_v32, %v4497_v51 }
 0x3c4   : > { %v2259_v17 = vadd.f32 %v2258_v19, %v2257_v31  ;;  %v2268_v2 = vadd.f32 %v2267_v58, %v2266_v44  ;;  %v2279_v46 = vrot.slane %v528_v43, 4  ;;  %v2285_v54 = vrot.slane %v2124_v33, 3 }
 0x3c5   : > { %v2280_v62 = vrot.slane %v529_v10, 4  ;;  %v2286_v41 = vrot.slane %v2125_v35, 3 }
 0x3c6   : > { %v2260_v18 = vrot.slane %v2259_v17, 2  ;;  %v2269_v13 = vrot.slane %v2268_v2, 2  ;;  %v2296_v63 = vsel %vm2295_vm7, %v2279_v46, %v2285_v54 }
 0x3c7   : > { %v2297_v11 = vsel %vm2295_vm7, %v2280_v62, %v2286_v41 }
 0x3c8   : > { %v2261_v55 = vadd.f32 %v2260_v18, %v2259_v17  ;;  %v2270_v25 = vadd.f32 %v2269_v13, %v2268_v2 }
 0x3ca   : > { %v2262_v27 = vrot.slane %v2261_v55, 1  ;;  %v2271_v40 = vrot.slane %v2270_v25, 1 }
 0x3cc   : > { %v2263_v14 = vadd.f32 %v2262_v27, %v2261_v55  ;;  %v2272_v50 = vadd.f32 %v2271_v40, %v2270_v25 }
 0x3ce   : > { %v2273_v60 = vmul.f32 %v2263_v14, %v4498_v6  ;;  %v2274_v48 = vmul.f32 %v2272_v50, %v4499_v9 }
 0x3d0   : > { %v2291_v37 = vrot.slane %v2273_v60, 2  ;;  %v2292_v36 = vrot.slane %v2274_v48, 2 }
 0x3d2   : > { %v2299_v26 = vsel %vm2298_vm8, %v2296_v63, %v2291_v37  ;;  %v2300_v39 = vsel %vm2298_vm8, %v2297_v11, %v2292_v36  ;;  %2310 = sbr.rel (%p2478_p5) target bundleno = 991 (0x3df), region = 90 }
 0x3d3   : > { %v2301_v4 = vsel %vm2233_vm3, %v2299_v26, 0.0  ;;  %v2302_v30 = vsel %vm2233_vm3, %v2300_v39, 0.0 }
 0x3d4   : > { %v2303_v1 = vadd.f32 %v2301_v4, %v2275_v52  ;;  %v2304_v47 = vadd.f32 %v2302_v30, %v2276_v34 }
 0x3d6   : > { %2305 = vst [vmem:[#allocation2] sm:$0xff] %v2303_v1  ;;  %2306 = vst [vmem:[#allocation2 + $0x8] sm:$0xff] %v2304_v47 }
 0x3dd   : > { %v2657_v56 = vld [vmem:[#allocation2] ss:$8 sps:$4 sm:$0x77]  }
 0x3de   : > { %2317 = vst [vmem:[%s2853_s8] sm:$0x77] %v2657_v56 }
 0x3df PF: > { %s21_s28 = sadd.s32 1, %s2726_s28   ;;  %s4500_s30 = sld [smem:[#allocation8_spill]] }
 0x3e0   : > { %p18_p6 = scmp.ge.s32.totalorder %s21_s28, 8   ;;  %s4501_s23 = smov %s2706_s24 }
 0x3e1   : > { %s4502_s24 = smov %s2824_s11  ;;  %s4503_s25 = smov %s2718_s26 }
 0x3e2   : > { %s4504_s0 = smov %s2722_s27  ;;  %s4505_s26 = smov %s4508_s29 }
 0x3e3   :  { %20 = sbr.rel (!%p18_p6) target bundleno = 20 (0x14), region = 139 }
 0x3e5   : > { %s4506_s27 = smov %s4500_s30 }

</bundles_post_ra>
